<compile_context>
chip_gen: v5e
topology: v5e:2x2
jax: 0.10.0
libtpu: 0.0.40
codegen_flags: <defaults>
</compile_context>

<pallas_src>
import functools

import jax
import jax.numpy as jnp
from jax import lax
from jax.experimental import pallas as pl
from jax.experimental.pallas import tpu as pltpu


def _round_up(x, m):
    return ((x + m - 1) // m) * m


# ---------------------------------------------------------------------------
# Pallas kernel: sequential LSTM recurrence for one layer, chunked over time.
# ---------------------------------------------------------------------------
def _lstm_recurrence_kernel(gx_ref, whh_hbm, h0_ref, c0_ref,        # inputs
                            y_ref, hT_ref, cT_ref,                  # outputs
                            h_sc, c_sc, whh_vmem, dma_sem,          # scratch
                            *, t_chunk, last_valid, unroll):
    c_idx = pl.program_id(0)
    n_chunks = pl.num_programs(0)
    Hp = h_sc.shape[-1]

    @pl.when(c_idx == 0)
    def _init():
        # Start the one-time W_hh HBM->VMEM copy, overlap it with the carry
        # init, and wait only right before the first matmul can need it.
        cp = pltpu.make_async_copy(whh_hbm, whh_vmem, dma_sem)
        cp.start()
        h_sc[...] = h0_ref[...].astype(jnp.float32)
        c_sc[...] = c0_ref[...].astype(jnp.float32)
        cp.wait()

    def step(t, carry):
        h, c = carry
        h_b = h.astype(whh_vmem.dtype)
        gx = gx_ref[t]                                    # (B, 4Hp) bf16

        def gate(g):
            # Per-gate dot against a W_hh column slab: only one (B, Hp) slab
            # of pre-activations is live at a time.
            pre = jnp.dot(h_b, whh_vmem[:, g * Hp:(g + 1) * Hp],
                          preferred_element_type=jnp.float32)
            return pre + gx[:, g * Hp:(g + 1) * Hp].astype(jnp.float32)

        # Gate order [i | f | o | g]; fold each gate into c/h immediately.
        f_g = jax.nn.sigmoid(gate(1))
        c_new = f_g * c
        i_g = jax.nn.sigmoid(gate(0))
        g_g = jnp.tanh(gate(3))
        c_new = c_new + i_g * g_g
        o_g = jax.nn.sigmoid(gate(2))
        h_new = o_g * jnp.tanh(c_new)
        y_ref[t] = h_new.astype(y_ref.dtype)
        return h_new, c_new

    def run(n_steps):
        h_fin, c_fin = lax.fori_loop(
            0, n_steps, step, (h_sc[...], c_sc[...]),
            unroll=max(1, min(unroll, n_steps)))
        h_sc[...] = h_fin
        c_sc[...] = c_fin

    is_last = c_idx == n_chunks - 1
    if last_valid == t_chunk:
        # No ragged tail: every chunk runs the same static, unrolled loop.
        run(t_chunk)
    else:
        @pl.when(c_idx < n_chunks - 1)
        def _full_chunk():
            run(t_chunk)

        @pl.when(is_last)
        def _tail_chunk():
            run(last_valid)
            # Zero-fill the rows the loop never wrote so no uninitialized
            # VMEM is written back to HBM.
            tail = t_chunk - last_valid
            y_ref[pl.ds(last_valid, tail)] = jnp.zeros(
                (tail,) + tuple(y_ref.shape[1:]), y_ref.dtype)

    @pl.when(is_last)
    def _final():
        hT_ref[...] = h_sc[...].astype(hT_ref.dtype)
        cT_ref[...] = c_sc[...].astype(cT_ref.dtype)


def lstm_layer_pallas(gates_x, w_hh_p, h0_p, c0_p, *, t_real, t_chunk,
                      unroll=8):
    """Recurrent part of one LSTM layer.

    gates_x : (T_pad, B_pad, 4*H_pad) bf16, already = x @ W_ih + (b_ih + b_hh),
              gate order [i|f|o|g].
    w_hh_p  : (H_pad, 4*H_pad), gate order [i|f|o|g] (bf16).
    h0_p/c0_p: (B_pad, H_pad) f32.
    Returns y (T_pad, B_pad, H_pad) bf16 and final (h_T, c_T) (B_pad, H_pad) f32.
    """
    T_pad, B_pad, G = gates_x.shape
    H_pad = G // 4
    assert T_pad % t_chunk == 0
    n_chunks = T_pad // t_chunk
    last_valid = t_real - (n_chunks - 1) * t_chunk
    assert 0 < last_valid <= t_chunk

    gx_bytes = jnp.dtype(gates_x.dtype).itemsize
    w_bytes = jnp.dtype(w_hh_p.dtype).itemsize
    y_dtype = jnp.bfloat16
    y_bytes = jnp.dtype(y_dtype).itemsize
    # Size VMEM to actual need (double-buffered streamed blocks + resident
    # pieces) plus headroom, instead of a blanket limit that can exceed the
    # v7x 64 MiB/TC physical VMEM.
    vmem_need = (2 * t_chunk * B_pad * G * gx_bytes          # gx blocks (x2)
                 + 2 * t_chunk * B_pad * H_pad * y_bytes     # y blocks (x2)
                 + H_pad * G * w_bytes                       # resident W_hh
                 + 2 * B_pad * H_pad * 4                     # h/c carries
                 + 8 * B_pad * H_pad * 4)                    # h0/c0/hT/cT
    vmem_limit = int(vmem_need) + (4 << 20)

    kernel = functools.partial(_lstm_recurrence_kernel,
                               t_chunk=t_chunk, last_valid=last_valid,
                               unroll=unroll)

    grid_spec = pltpu.PrefetchScalarGridSpec(
        num_scalar_prefetch=0,
        grid=(n_chunks,),
        in_specs=[
            pl.BlockSpec((t_chunk, B_pad, G), lambda c: (c, 0, 0)),   # gates_x
            pl.BlockSpec(memory_space=pl.ANY),                        # W_hh (HBM)
            pl.BlockSpec((B_pad, H_pad), lambda c: (0, 0)),           # h0
            pl.BlockSpec((B_pad, H_pad), lambda c: (0, 0)),           # c0
        ],
        out_specs=(
            pl.BlockSpec((t_chunk, B_pad, H_pad), lambda c: (c, 0, 0)),  # y
            pl.BlockSpec((B_pad, H_pad), lambda c: (0, 0)),              # h_T
            pl.BlockSpec((B_pad, H_pad), lambda c: (0, 0)),              # c_T
        ),
        scratch_shapes=[
            pltpu.VMEM((B_pad, H_pad), jnp.float32),    # h carry
            pltpu.VMEM((B_pad, H_pad), jnp.float32),    # c carry
            pltpu.VMEM((H_pad, G), w_hh_p.dtype),       # resident W_hh
            pltpu.SemaphoreType.DMA(()),                # weight-copy semaphore
        ],
    )
    out_shape = (
        jax.ShapeDtypeStruct((T_pad, B_pad, H_pad), y_dtype),
        jax.ShapeDtypeStruct((B_pad, H_pad), jnp.float32),
        jax.ShapeDtypeStruct((B_pad, H_pad), jnp.float32),
    )
    return pl.pallas_call(
        kernel,
        out_shape=out_shape,
        grid_spec=grid_spec,
        compiler_params=pltpu.CompilerParams(
            dimension_semantics=("arbitrary",),     # time recurrence: sequential
            vmem_limit_bytes=vmem_limit),
    )(gates_x, w_hh_p, h0_p, c0_p)


# ---------------------------------------------------------------------------
# Parameter prep: gate reorder [i|f|g|o] -> [i|f|o|g] + lane/sublane padding.
# ---------------------------------------------------------------------------
_GATE_PERM = (0, 1, 3, 2)   # PyTorch [i, f, g, o] -> kernel [i, f, o, g]


def _prep_gate_cols(m, H, H_pad):
    """Reorder the 4H gate columns and pad each gate block to H_pad columns."""
    blocks = [m[..., k * H:(k + 1) * H] for k in _GATE_PERM]
    pad = [(0, 0)] * (m.ndim - 1) + [(0, H_pad - H)]
    return jnp.concatenate([jnp.pad(b, pad) for b in blocks], axis=-1)


def _pad_rows(m, H, H_pad):
    return jnp.pad(m, ((0, H_pad - H), (0, 0)))


# ---------------------------------------------------------------------------
# Encoder module (JAX/Pallas port of the PyTorch Encoder, mode='lstm').
# ---------------------------------------------------------------------------
class EncoderPallas:

    def __init__(self, input_size, hidden_size, n_layers, dropout=0.0,
                 mode="lstm", batch_first=True, bias=True, bidirectional=False,
                 compute_dtype=jnp.bfloat16, time_chunk=128,
                 vmem_budget_bytes=40 * 1024 * 1024, key=None):
        assert mode == "lstm", "only mode='lstm' implemented"
        assert batch_first and not bidirectional
        self.input_size = input_size
        self.hidden_size = hidden_size
        self.n_layers = n_layers
        # TODO(synk): inter-layer dropout is train-only in nn.LSTM; eval (identity) semantics used here.
        self.dropout = dropout
        self.compute_dtype = compute_dtype
        self.time_chunk = time_chunk
        self.vmem_budget_bytes = vmem_budget_bytes

        H = hidden_size
        Hp = _round_up(H, 128)          # lane-aligned hidden dim
        self.H_pad = Hp

        key = jax.random.PRNGKey(0) if key is None else key
        keys = jax.random.split(key, 1 + 4 * n_layers)
        # nn.Embedding default init: N(0, 1)
        self.embedding = jax.random.normal(
            keys[0], (input_size, H), dtype=jnp.float32)

        bound = 1.0 / (H ** 0.5)        # nn.LSTM default U(-1/sqrt(H), 1/sqrt(H))
        # Raw params kept in PyTorch layout (transposed to (H, 4H), [i|f|g|o])
        # for the pure-JAX reference.
        self.layer_params_raw = []
        for layer in range(n_layers):
            k = keys[1 + 4 * layer: 1 + 4 * (layer + 1)]
            w_ih = jax.random.uniform(k[0], (H, 4 * H), minval=-bound,
                                      maxval=bound, dtype=jnp.float32)
            w_hh = jax.random.uniform(k[1], (H, 4 * H), minval=-bound,
                                      maxval=bound, dtype=jnp.float32)
            if bias:
                b_ih = jax.random.uniform(k[2], (1, 4 * H), minval=-bound,
                                          maxval=bound, dtype=jnp.float32)
                b_hh = jax.random.uniform(k[3], (1, 4 * H), minval=-bound,
                                          maxval=bound, dtype=jnp.float32)
            else:
                b_ih = jnp.zeros((1, 4 * H), jnp.float32)
                b_hh = jnp.zeros((1, 4 * H), jnp.float32)
            self.layer_params_raw.append((w_ih, w_hh, b_ih + b_hh))

        # ---- prepped parameters for the Pallas path ------------------------
        # Layer 0: fuse embedding @ W_ih + b into a gather table (stored bf16
        # so large vocabularies don't double layer-0 HBM traffic).
        w_ih0, _, b0 = self.layer_params_raw[0]
        self.gates_table0 = _prep_gate_cols(
            self.embedding @ w_ih0 + b0, H, Hp).astype(compute_dtype)

        self.w_hh_p = []    # per layer: (Hp, 4Hp) compute_dtype
        self.w_ih_p = []    # layers >= 1 (index layer-1): (Hp, 4Hp) compute_dtype
        self.b_p = []       # layers >= 1 (index layer-1): (1, 4Hp) f32
        for layer, (w_ih, w_hh, b) in enumerate(self.layer_params_raw):
            self.w_hh_p.append(
                _pad_rows(_prep_gate_cols(w_hh, H, Hp), H, Hp)
                .astype(compute_dtype))
            if layer > 0:
                self.w_ih_p.append(
                    _pad_rows(_prep_gate_cols(w_ih, H, Hp), H, Hp)
                    .astype(compute_dtype))
                self.b_p.append(_prep_gate_cols(b, H, Hp))

    def _choose_time_chunk(self, T, B_pad, H_pad):
        itb = jnp.dtype(self.compute_dtype).itemsize
        resident = (H_pad * 4 * H_pad * itb      # resident W_hh
                    + 10 * B_pad * H_pad * 4)    # carries + small blocks
        per_step = (2 * B_pad * 4 * H_pad * itb  # double-buffered gx (bf16)
                    + 2 * B_pad * H_pad * itb)   # double-buffered y  (bf16)
        max_tc = max(1, (self.vmem_budget_bytes - resident) // per_step)
        return int(max(1, min(self.time_chunk, T, max_tc)))

    def __call__(self, enc_input, enc_hidden=None):
        # enc_input: (B, T) int32 token ids
        B, T = enc_input.shape
        H, Hp = self.hidden_size, self.H_pad
        cd = self.compute_dtype
        # bf16 packs 2 rows per sublane -> pad batch to 16 so MXU tiles fill.
        sub = 16 if jnp.dtype(cd).itemsize == 2 else 8
        Bp = _round_up(B, sub)
        tc = self._choose_time_chunk(T, Bp, Hp)
        Tp = _round_up(T, tc)

        # Layer-0 input projection == fused-table gather, streamed as bf16.
        g0 = jnp.take(self.gates_table0, enc_input, axis=0)   # (B, T, 4Hp) bf16
        g0 = jnp.transpose(g0, (1, 0, 2))                      # (T, B, 4Hp)
        gates_x = jnp.pad(g0, ((0, Tp - T), (0, Bp - B), (0, 0)))

        if enc_hidden is None:
            h0 = jnp.zeros((self.n_layers, B, H), jnp.float32)
            c0 = jnp.zeros((self.n_layers, B, H), jnp.float32)
        else:
            h0, c0 = enc_hidden
        h0p = jnp.pad(h0.astype(jnp.float32),
                      ((0, 0), (0, Bp - B), (0, Hp - H)))
        c0p = jnp.pad(c0.astype(jnp.float32),
                      ((0, 0), (0, Bp - B), (0, Hp - H)))

        h_finals, c_finals = [], []
        y = None
        for layer in range(self.n_layers):
            y, h_T, c_T = lstm_layer_pallas(
                gates_x, self.w_hh_p[layer], h0p[layer], c0p[layer],
                t_real=T, t_chunk=tc)
            h_finals.append(h_T[:B, :H])
            c_finals.append(c_T[:B, :H])
            if layer + 1 < self.n_layers:
                # Hoisted input GEMM for the next layer: one big bf16
                # (Tp*Bp, Hp) x (Hp, 4Hp) matmul; result streamed back as bf16.
                flat = y.reshape(Tp * Bp, Hp)                  # already bf16
                gx = (jnp.dot(flat, self.w_ih_p[layer],
                              preferred_element_type=jnp.float32)
                      + self.b_p[layer]).astype(cd)
                gates_x = gx.reshape(Tp, Bp, 4 * Hp)

        output = jnp.transpose(y[:T, :B, :H], (1, 0, 2)).astype(jnp.float32)
        hidden = (jnp.stack(h_finals, axis=0),                  # (n_layers, B, H)
                  jnp.stack(c_finals, axis=0))
        return output, hidden


# ---------------------------------------------------------------------------
# Pure-JAX reference (raw PyTorch-layout weights, same mixed-precision math:
# bf16 weights, bf16-streamed input projections, f32 state/elementwise).
# ---------------------------------------------------------------------------
def _encoder_ref(enc_input, enc, enc_hidden=None):
    B, T = enc_input.shape
    H = enc.hidden_size
    cd = enc.compute_dtype
    x = jnp.transpose(jnp.take(enc.embedding, enc_input, axis=0), (1, 0, 2))
    if enc_hidden is None:
        h0 = jnp.zeros((enc.n_layers, B, H), jnp.float32)
        c0 = jnp.zeros((enc.n_layers, B, H), jnp.float32)
    else:
        h0, c0 = enc_hidden

    h_fin, c_fin = [], []
    for layer, (w_ih, w_hh, b) in enumerate(enc.layer_params_raw):
        if layer == 0:
            gx_all = x @ w_ih + b                       # f32 (matches fused table)
        else:
            gx_all = (jnp.dot(x.reshape(T * B, H).astype(cd), w_ih.astype(cd),
                              preferred_element_type=jnp.float32)
                      + b).reshape(T, B, 4 * H)
        # Model the kernel's bf16 streaming of the hoisted input projection.
        gx_all = gx_all.astype(cd).astype(jnp.float32)
        w_hh_c = w_hh.astype(cd)

        def step(carry, gx_t):
            h, c = carry
            gates = gx_t + jnp.dot(h.astype(cd), w_hh_c,
                                   preferred_element_type=jnp.float32)
            i = jax.nn.sigmoid(gates[:, :H])
            f = jax.nn.sigmoid(gates[:, H:2 * H])
            g = jnp.tanh(gates[:, 2 * H:3 * H])
            o = jax.nn.sigmoid(gates[:, 3 * H:])
            c = f * c + i * g
            h = o * jnp.tanh(c)
            return (h, c), h

        (hT, cT), ys = lax.scan(step, (h0[layer], c0[layer]), gx_all)
        x = ys
        h_fin.append(hT)
        c_fin.append(cT)
    return (jnp.transpose(x, (1, 0, 2)),
            (jnp.stack(h_fin, axis=0), jnp.stack(c_fin, axis=0)))


if __name__ == "__main__":
    key = jax.random.PRNGKey(0)
    k_model, k_ids = jax.random.split(key)

    vocab_size = 50
    hidden_size = 32
    n_layers = 2
    batch, seq = 2, 8

    enc = EncoderPallas(input_size=vocab_size, hidden_size=hidden_size,
                        n_layers=n_layers, dropout=0.0, mode="lstm",
                        batch_first=True, bias=True, bidirectional=False,
                        key=k_model)

    enc_input = jax.random.randint(k_ids, (batch, seq), 0, vocab_size,
                                   dtype=jnp.int32)

    output, (h_n, c_n) = enc(enc_input)
    jax.block_until_ready((output, h_n, c_n))

    assert output.shape == (batch, seq, hidden_size)
    assert h_n.shape == (n_layers, batch, hidden_size)
    assert c_n.shape == (n_layers, batch, hidden_size)

    out_ref, (h_ref, c_ref) = _encoder_ref(enc_input, enc)
    assert jnp.allclose(output, out_ref, atol=1e-2), (
        f"output mismatch: max abs err = {jnp.max(jnp.abs(output - out_ref))}")
    assert jnp.allclose(h_n, h_ref, atol=1e-2), "h_n mismatch"
    assert jnp.allclose(c_n, c_ref, atol=1e-2), "c_n mismatch"

    print("KERNEL_OK")
</pallas_src>

<mosaic_0001>
module attributes {stable_mosaic.version = 11 : i64} {
  func.func @_lstm_recurrence_kernel(%arg0: i32, %arg1: memref<8x16x512xbf16, #tpu.memory_space<vmem>>, %arg2: memref<128x512xbf16, #tpu.memory_space<any>>, %arg3: memref<16x128xf32, #tpu.memory_space<vmem>>, %arg4: memref<16x128xf32, #tpu.memory_space<vmem>>, %arg5: memref<8x16x128xbf16, #tpu.memory_space<vmem>>, %arg6: memref<16x128xf32, #tpu.memory_space<vmem>>, %arg7: memref<16x128xf32, #tpu.memory_space<vmem>>, %arg8: memref<16x128xf32, #tpu.memory_space<vmem>>, %arg9: memref<16x128xf32, #tpu.memory_space<vmem>>, %arg10: memref<128x512xbf16, #tpu.memory_space<vmem>>, %arg11: memref<!tpu.dma_semaphore, #tpu.memory_space<semaphore_mem>>) attributes {dimension_semantics = [#tpu.dimension_semantics<arbitrary>], iteration_bounds = array<i64: 1>, scalar_prefetch = 0 : i64, scratch_operands = 4 : i64, tpu.core_type = #tpu.core_type<tc>, window_params = [{transform_indices = @transform_0, window_bounds = array<i64: 8, 16, 512>}, {}, {pipeline_mode = #tpu.pipeline_mode<synchronous>, transform_indices = @transform_2, window_bounds = array<i64: 16, 128>}, {pipeline_mode = #tpu.pipeline_mode<synchronous>, transform_indices = @transform_3, window_bounds = array<i64: 16, 128>}, {transform_indices = @transform_4, window_bounds = array<i64: 8, 16, 128>}, {pipeline_mode = #tpu.pipeline_mode<synchronous>, transform_indices = @transform_5, window_bounds = array<i64: 16, 128>}, {pipeline_mode = #tpu.pipeline_mode<synchronous>, transform_indices = @transform_6, window_bounds = array<i64: 16, 128>}]} {
    %c0_i32 = arith.constant 0 : i32
    %0 = arith.cmpi eq, %arg0, %c0_i32 : i32
    %1 = arith.extui %0 : i1 to i32
    %c0_i32_0 = arith.constant 0 : i32
    %2 = arith.cmpi ne, %1, %c0_i32_0 : i32
    scf.if %2 {
      tpu.enqueue_dma source(%arg2 : memref<128x512xbf16, #tpu.memory_space<any>>) target(%arg10 : memref<128x512xbf16, #tpu.memory_space<vmem>>) target_semaphore(%arg11 : memref<!tpu.dma_semaphore, #tpu.memory_space<semaphore_mem>>)
      %c0_159 = arith.constant 0 : index
      %c0_160 = arith.constant 0 : index
      %410 = vector.load %arg3[%c0_159, %c0_160] : memref<16x128xf32, #tpu.memory_space<vmem>>, vector<16x128xf32>
      %c0_161 = arith.constant 0 : index
      %c0_162 = arith.constant 0 : index
      %411 = vector.load %arg8[%c0_161, %c0_162] : memref<16x128xf32, #tpu.memory_space<vmem>>, vector<16x128xf32>
      tpu.vector_store %arg8[%c0_161, %c0_162], %410 {strides = array<i32>} : memref<16x128xf32, #tpu.memory_space<vmem>>, vector<16x128xf32>,
      %c0_163 = arith.constant 0 : index
      %c0_164 = arith.constant 0 : index
      %412 = vector.load %arg4[%c0_163, %c0_164] : memref<16x128xf32, #tpu.memory_space<vmem>>, vector<16x128xf32>
      %c0_165 = arith.constant 0 : index
      %c0_166 = arith.constant 0 : index
      %413 = vector.load %arg9[%c0_165, %c0_166] : memref<16x128xf32, #tpu.memory_space<vmem>>, vector<16x128xf32>
      tpu.vector_store %arg9[%c0_165, %c0_166], %412 {strides = array<i32>} : memref<16x128xf32, #tpu.memory_space<vmem>>, vector<16x128xf32>,
      tpu.wait_dma2 semaphore(%arg11 : memref<!tpu.dma_semaphore, #tpu.memory_space<semaphore_mem>>) src(%arg2 : memref<128x512xbf16, #tpu.memory_space<any>>) dst(%arg10 : memref<128x512xbf16, #tpu.memory_space<vmem>>)
    } else {
    }
    %c0_i32_1 = arith.constant 0 : i32
    %3 = arith.cmpi eq, %arg0, %c0_i32_1 : i32
    %c0 = arith.constant 0 : index
    %c0_2 = arith.constant 0 : index
    %4 = vector.load %arg8[%c0, %c0_2] : memref<16x128xf32, #tpu.memory_space<vmem>>, vector<16x128xf32>
    %c0_3 = arith.constant 0 : index
    %c0_4 = arith.constant 0 : index
    %5 = vector.load %arg9[%c0_3, %c0_4] : memref<16x128xf32, #tpu.memory_space<vmem>>, vector<16x128xf32>
    %c0_i32_5 = arith.constant 0 : i32
    %6 = arith.truncf %4 : vector<16x128xf32> to vector<16x128xbf16>
    %7 = arith.index_cast %c0_i32_5 : i32 to index
    %c0_6 = arith.constant 0 : index
    %c0_7 = arith.constant 0 : index
    %8 = vector.load %arg1[%7, %c0_6, %c0_7] : memref<8x16x512xbf16, #tpu.memory_space<vmem>>, vector<1x16x512xbf16>
    %9 = vector.shape_cast %8 : vector<1x16x512xbf16> to vector<16x512xbf16>
    %c0_8 = arith.constant 0 : index
    %c128 = arith.constant 128 : index
    %10 = vector.load %arg10[%c0_8, %c128] : memref<128x512xbf16, #tpu.memory_space<vmem>>, vector<128x128xbf16>
    %cst = arith.constant dense<0.000000e+00> : vector<16x128xf32>
    %11 = tpu.matmul %6, %10, %cst {dimension_numbers = #tpu.dot_dimension_numbers<[1], [0], [0], [1], [0, 0, 1, 1], [], []>} : vector<16x128xbf16>, vector<128x128xbf16>, vector<16x128xf32> -> vector<16x128xf32>
    %12 = vector.extract_strided_slice %9 {offsets = [0, 128], sizes = [16, 128], strides = [1, 1]} : vector<16x512xbf16> to vector<16x128xbf16>
    %13 = arith.extf %12 : vector<16x128xbf16> to vector<16x128xf32>
    %14 = arith.addf %11, %13 : vector<16x128xf32>
    %15 = arith.negf %14 : vector<16x128xf32>
    %16 = math.exp %15 : vector<16x128xf32>
    %cst_9 = arith.constant 1.000000e+00 : f32
    %17 = vector.broadcast %cst_9 : f32 to vector<16x128xf32>
    %18 = arith.addf %17, %16 : vector<16x128xf32>
    %19 = arith.divf %17, %18 : vector<16x128xf32>
    %20 = arith.mulf %19, %5 : vector<16x128xf32>
    %c0_10 = arith.constant 0 : index
    %c0_11 = arith.constant 0 : index
    %21 = vector.load %arg10[%c0_10, %c0_11] : memref<128x512xbf16, #tpu.memory_space<vmem>>, vector<128x128xbf16>
    %cst_12 = arith.constant dense<0.000000e+00> : vector<16x128xf32>
    %22 = tpu.matmul %6, %21, %cst_12 {dimension_numbers = #tpu.dot_dimension_numbers<[1], [0], [0], [1], [0, 0, 1, 1], [], []>} : vector<16x128xbf16>, vector<128x128xbf16>, vector<16x128xf32> -> vector<16x128xf32>
    %23 = vector.extract_strided_slice %9 {offsets = [0, 0], sizes = [16, 128], strides = [1, 1]} : vector<16x512xbf16> to vector<16x128xbf16>
    %24 = arith.extf %23 : vector<16x128xbf16> to vector<16x128xf32>
    %25 = arith.addf %22, %24 : vector<16x128xf32>
    %26 = arith.negf %25 : vector<16x128xf32>
    %27 = math.exp %26 : vector<16x128xf32>
    %cst_13 = arith.constant 1.000000e+00 : f32
    %28 = vector.broadcast %cst_13 : f32 to vector<16x128xf32>
    %29 = arith.addf %28, %27 : vector<16x128xf32>
    %30 = arith.divf %28, %29 : vector<16x128xf32>
    %c0_14 = arith.constant 0 : index
    %c384 = arith.constant 384 : index
    %31 = vector.load %arg10[%c0_14, %c384] : memref<128x512xbf16, #tpu.memory_space<vmem>>, vector<128x128xbf16>
    %cst_15 = arith.constant dense<0.000000e+00> : vector<16x128xf32>
    %32 = tpu.matmul %6, %31, %cst_15 {dimension_numbers = #tpu.dot_dimension_numbers<[1], [0], [0], [1], [0, 0, 1, 1], [], []>} : vector<16x128xbf16>, vector<128x128xbf16>, vector<16x128xf32> -> vector<16x128xf32>
    %33 = vector.extract_strided_slice %9 {offsets = [0, 384], sizes = [16, 128], strides = [1, 1]} : vector<16x512xbf16> to vector<16x128xbf16>
    %34 = arith.extf %33 : vector<16x128xbf16> to vector<16x128xf32>
    %35 = arith.addf %32, %34 : vector<16x128xf32>
    %36 = math.tanh %35 : vector<16x128xf32>
    %37 = arith.mulf %30, %36 : vector<16x128xf32>
    %38 = arith.addf %20, %37 : vector<16x128xf32>
    %c0_16 = arith.constant 0 : index
    %c256 = arith.constant 256 : index
    %39 = vector.load %arg10[%c0_16, %c256] : memref<128x512xbf16, #tpu.memory_space<vmem>>, vector<128x128xbf16>
    %cst_17 = arith.constant dense<0.000000e+00> : vector<16x128xf32>
    %40 = tpu.matmul %6, %39, %cst_17 {dimension_numbers = #tpu.dot_dimension_numbers<[1], [0], [0], [1], [0, 0, 1, 1], [], []>} : vector<16x128xbf16>, vector<128x128xbf16>, vector<16x128xf32> -> vector<16x128xf32>
    %41 = vector.extract_strided_slice %9 {offsets = [0, 256], sizes = [16, 128], strides = [1, 1]} : vector<16x512xbf16> to vector<16x128xbf16>
    %42 = arith.extf %41 : vector<16x128xbf16> to vector<16x128xf32>
    %43 = arith.addf %40, %42 : vector<16x128xf32>
    %44 = arith.negf %43 : vector<16x128xf32>
    %45 = math.exp %44 : vector<16x128xf32>
    %cst_18 = arith.constant 1.000000e+00 : f32
    %46 = vector.broadcast %cst_18 : f32 to vector<16x128xf32>
    %47 = arith.addf %46, %45 : vector<16x128xf32>
    %48 = arith.divf %46, %47 : vector<16x128xf32>
    %49 = math.tanh %38 : vector<16x128xf32>
    %50 = arith.mulf %48, %49 : vector<16x128xf32>
    %51 = arith.truncf %50 : vector<16x128xf32> to vector<16x128xbf16>
    %52 = arith.index_cast %c0_i32_5 : i32 to index
    %c0_19 = arith.constant 0 : index
    %c0_20 = arith.constant 0 : index
    %53 = vector.load %arg5[%52, %c0_19, %c0_20] : memref<8x16x128xbf16, #tpu.memory_space<vmem>>, vector<1x16x128xbf16>
    %54 = vector.shape_cast %53 : vector<1x16x128xbf16> to vector<16x128xbf16>
    %55 = vector.shape_cast %51 : vector<16x128xbf16> to vector<1x16x128xbf16>
    tpu.vector_store %arg5[%52, %c0_19, %c0_20], %55 {strides = array<i32>} : memref<8x16x128xbf16, #tpu.memory_space<vmem>>, vector<1x16x128xbf16>,
    %c1_i32 = arith.constant 1 : i32
    %56 = arith.truncf %50 : vector<16x128xf32> to vector<16x128xbf16>
    %57 = arith.index_cast %c1_i32 : i32 to index
    %c0_21 = arith.constant 0 : index
    %c0_22 = arith.constant 0 : index
    %58 = vector.load %arg1[%57, %c0_21, %c0_22] : memref<8x16x512xbf16, #tpu.memory_space<vmem>>, vector<1x16x512xbf16>
    %59 = vector.shape_cast %58 : vector<1x16x512xbf16> to vector<16x512xbf16>
    %c0_23 = arith.constant 0 : index
    %c128_24 = arith.constant 128 : index
    %60 = vector.load %arg10[%c0_23, %c128_24] : memref<128x512xbf16, #tpu.memory_space<vmem>>, vector<128x128xbf16>
    %cst_25 = arith.constant dense<0.000000e+00> : vector<16x128xf32>
    %61 = tpu.matmul %56, %60, %cst_25 {dimension_numbers = #tpu.dot_dimension_numbers<[1], [0], [0], [1], [0, 0, 1, 1], [], []>} : vector<16x128xbf16>, vector<128x128xbf16>, vector<16x128xf32> -> vector<16x128xf32>
    %62 = vector.extract_strided_slice %59 {offsets = [0, 128], sizes = [16, 128], strides = [1, 1]} : vector<16x512xbf16> to vector<16x128xbf16>
    %63 = arith.extf %62 : vector<16x128xbf16> to vector<16x128xf32>
    %64 = arith.addf %61, %63 : vector<16x128xf32>
    %65 = arith.negf %64 : vector<16x128xf32>
    %66 = math.exp %65 : vector<16x128xf32>
    %cst_26 = arith.constant 1.000000e+00 : f32
    %67 = vector.broadcast %cst_26 : f32 to vector<16x128xf32>
    %68 = arith.addf %67, %66 : vector<16x128xf32>
    %69 = arith.divf %67, %68 : vector<16x128xf32>
    %70 = arith.mulf %69, %38 : vector<16x128xf32>
    %c0_27 = arith.constant 0 : index
    %c0_28 = arith.constant 0 : index
    %71 = vector.load %arg10[%c0_27, %c0_28] : memref<128x512xbf16, #tpu.memory_space<vmem>>, vector<128x128xbf16>
    %cst_29 = arith.constant dense<0.000000e+00> : vector<16x128xf32>
    %72 = tpu.matmul %56, %71, %cst_29 {dimension_numbers = #tpu.dot_dimension_numbers<[1], [0], [0], [1], [0, 0, 1, 1], [], []>} : vector<16x128xbf16>, vector<128x128xbf16>, vector<16x128xf32> -> vector<16x128xf32>
    %73 = vector.extract_strided_slice %59 {offsets = [0, 0], sizes = [16, 128], strides = [1, 1]} : vector<16x512xbf16> to vector<16x128xbf16>
    %74 = arith.extf %73 : vector<16x128xbf16> to vector<16x128xf32>
    %75 = arith.addf %72, %74 : vector<16x128xf32>
    %76 = arith.negf %75 : vector<16x128xf32>
    %77 = math.exp %76 : vector<16x128xf32>
    %cst_30 = arith.constant 1.000000e+00 : f32
    %78 = vector.broadcast %cst_30 : f32 to vector<16x128xf32>
    %79 = arith.addf %78, %77 : vector<16x128xf32>
    %80 = arith.divf %78, %79 : vector<16x128xf32>
    %c0_31 = arith.constant 0 : index
    %c384_32 = arith.constant 384 : index
    %81 = vector.load %arg10[%c0_31, %c384_32] : memref<128x512xbf16, #tpu.memory_space<vmem>>, vector<128x128xbf16>
    %cst_33 = arith.constant dense<0.000000e+00> : vector<16x128xf32>
    %82 = tpu.matmul %56, %81, %cst_33 {dimension_numbers = #tpu.dot_dimension_numbers<[1], [0], [0], [1], [0, 0, 1, 1], [], []>} : vector<16x128xbf16>, vector<128x128xbf16>, vector<16x128xf32> -> vector<16x128xf32>
    %83 = vector.extract_strided_slice %59 {offsets = [0, 384], sizes = [16, 128], strides = [1, 1]} : vector<16x512xbf16> to vector<16x128xbf16>
    %84 = arith.extf %83 : vector<16x128xbf16> to vector<16x128xf32>
    %85 = arith.addf %82, %84 : vector<16x128xf32>
    %86 = math.tanh %85 : vector<16x128xf32>
    %87 = arith.mulf %80, %86 : vector<16x128xf32>
    %88 = arith.addf %70, %87 : vector<16x128xf32>
    %c0_34 = arith.constant 0 : index
    %c256_35 = arith.constant 256 : index
    %89 = vector.load %arg10[%c0_34, %c256_35] : memref<128x512xbf16, #tpu.memory_space<vmem>>, vector<128x128xbf16>
    %cst_36 = arith.constant dense<0.000000e+00> : vector<16x128xf32>
    %90 = tpu.matmul %56, %89, %cst_36 {dimension_numbers = #tpu.dot_dimension_numbers<[1], [0], [0], [1], [0, 0, 1, 1], [], []>} : vector<16x128xbf16>, vector<128x128xbf16>, vector<16x128xf32> -> vector<16x128xf32>
    %91 = vector.extract_strided_slice %59 {offsets = [0, 256], sizes = [16, 128], strides = [1, 1]} : vector<16x512xbf16> to vector<16x128xbf16>
    %92 = arith.extf %91 : vector<16x128xbf16> to vector<16x128xf32>
    %93 = arith.addf %90, %92 : vector<16x128xf32>
    %94 = arith.negf %93 : vector<16x128xf32>
    %95 = math.exp %94 : vector<16x128xf32>
    %cst_37 = arith.constant 1.000000e+00 : f32
    %96 = vector.broadcast %cst_37 : f32 to vector<16x128xf32>
    %97 = arith.addf %96, %95 : vector<16x128xf32>
    %98 = arith.divf %96, %97 : vector<16x128xf32>
    %99 = math.tanh %88 : vector<16x128xf32>
    %100 = arith.mulf %98, %99 : vector<16x128xf32>
    %101 = arith.truncf %100 : vector<16x128xf32> to vector<16x128xbf16>
    %102 = arith.index_cast %c1_i32 : i32 to index
    %c0_38 = arith.constant 0 : index
    %c0_39 = arith.constant 0 : index
    %103 = vector.load %arg5[%102, %c0_38, %c0_39] : memref<8x16x128xbf16, #tpu.memory_space<vmem>>, vector<1x16x128xbf16>
    %104 = vector.shape_cast %103 : vector<1x16x128xbf16> to vector<16x128xbf16>
    %105 = vector.shape_cast %101 : vector<16x128xbf16> to vector<1x16x128xbf16>
    tpu.vector_store %arg5[%102, %c0_38, %c0_39], %105 {strides = array<i32>} : memref<8x16x128xbf16, #tpu.memory_space<vmem>>, vector<1x16x128xbf16>,
    %c2_i32 = arith.constant 2 : i32
    %106 = arith.truncf %100 : vector<16x128xf32> to vector<16x128xbf16>
    %107 = arith.index_cast %c2_i32 : i32 to index
    %c0_40 = arith.constant 0 : index
    %c0_41 = arith.constant 0 : index
    %108 = vector.load %arg1[%107, %c0_40, %c0_41] : memref<8x16x512xbf16, #tpu.memory_space<vmem>>, vector<1x16x512xbf16>
    %109 = vector.shape_cast %108 : vector<1x16x512xbf16> to vector<16x512xbf16>
    %c0_42 = arith.constant 0 : index
    %c128_43 = arith.constant 128 : index
    %110 = vector.load %arg10[%c0_42, %c128_43] : memref<128x512xbf16, #tpu.memory_space<vmem>>, vector<128x128xbf16>
    %cst_44 = arith.constant dense<0.000000e+00> : vector<16x128xf32>
    %111 = tpu.matmul %106, %110, %cst_44 {dimension_numbers = #tpu.dot_dimension_numbers<[1], [0], [0], [1], [0, 0, 1, 1], [], []>} : vector<16x128xbf16>, vector<128x128xbf16>, vector<16x128xf32> -> vector<16x128xf32>
    %112 = vector.extract_strided_slice %109 {offsets = [0, 128], sizes = [16, 128], strides = [1, 1]} : vector<16x512xbf16> to vector<16x128xbf16>
    %113 = arith.extf %112 : vector<16x128xbf16> to vector<16x128xf32>
    %114 = arith.addf %111, %113 : vector<16x128xf32>
    %115 = arith.negf %114 : vector<16x128xf32>
    %116 = math.exp %115 : vector<16x128xf32>
    %cst_45 = arith.constant 1.000000e+00 : f32
    %117 = vector.broadcast %cst_45 : f32 to vector<16x128xf32>
    %118 = arith.addf %117, %116 : vector<16x128xf32>
    %119 = arith.divf %117, %118 : vector<16x128xf32>
    %120 = arith.mulf %119, %88 : vector<16x128xf32>
    %c0_46 = arith.constant 0 : index
    %c0_47 = arith.constant 0 : index
    %121 = vector.load %arg10[%c0_46, %c0_47] : memref<128x512xbf16, #tpu.memory_space<vmem>>, vector<128x128xbf16>
    %cst_48 = arith.constant dense<0.000000e+00> : vector<16x128xf32>
    %122 = tpu.matmul %106, %121, %cst_48 {dimension_numbers = #tpu.dot_dimension_numbers<[1], [0], [0], [1], [0, 0, 1, 1], [], []>} : vector<16x128xbf16>, vector<128x128xbf16>, vector<16x128xf32> -> vector<16x128xf32>
    %123 = vector.extract_strided_slice %109 {offsets = [0, 0], sizes = [16, 128], strides = [1, 1]} : vector<16x512xbf16> to vector<16x128xbf16>
    %124 = arith.extf %123 : vector<16x128xbf16> to vector<16x128xf32>
    %125 = arith.addf %122, %124 : vector<16x128xf32>
    %126 = arith.negf %125 : vector<16x128xf32>
    %127 = math.exp %126 : vector<16x128xf32>
    %cst_49 = arith.constant 1.000000e+00 : f32
    %128 = vector.broadcast %cst_49 : f32 to vector<16x128xf32>
    %129 = arith.addf %128, %127 : vector<16x128xf32>
    %130 = arith.divf %128, %129 : vector<16x128xf32>
    %c0_50 = arith.constant 0 : index
    %c384_51 = arith.constant 384 : index
    %131 = vector.load %arg10[%c0_50, %c384_51] : memref<128x512xbf16, #tpu.memory_space<vmem>>, vector<128x128xbf16>
    %cst_52 = arith.constant dense<0.000000e+00> : vector<16x128xf32>
    %132 = tpu.matmul %106, %131, %cst_52 {dimension_numbers = #tpu.dot_dimension_numbers<[1], [0], [0], [1], [0, 0, 1, 1], [], []>} : vector<16x128xbf16>, vector<128x128xbf16>, vector<16x128xf32> -> vector<16x128xf32>
    %133 = vector.extract_strided_slice %109 {offsets = [0, 384], sizes = [16, 128], strides = [1, 1]} : vector<16x512xbf16> to vector<16x128xbf16>
    %134 = arith.extf %133 : vector<16x128xbf16> to vector<16x128xf32>
    %135 = arith.addf %132, %134 : vector<16x128xf32>
    %136 = math.tanh %135 : vector<16x128xf32>
    %137 = arith.mulf %130, %136 : vector<16x128xf32>
    %138 = arith.addf %120, %137 : vector<16x128xf32>
    %c0_53 = arith.constant 0 : index
    %c256_54 = arith.constant 256 : index
    %139 = vector.load %arg10[%c0_53, %c256_54] : memref<128x512xbf16, #tpu.memory_space<vmem>>, vector<128x128xbf16>
    %cst_55 = arith.constant dense<0.000000e+00> : vector<16x128xf32>
    %140 = tpu.matmul %106, %139, %cst_55 {dimension_numbers = #tpu.dot_dimension_numbers<[1], [0], [0], [1], [0, 0, 1, 1], [], []>} : vector<16x128xbf16>, vector<128x128xbf16>, vector<16x128xf32> -> vector<16x128xf32>
    %141 = vector.extract_strided_slice %109 {offsets = [0, 256], sizes = [16, 128], strides = [1, 1]} : vector<16x512xbf16> to vector<16x128xbf16>
    %142 = arith.extf %141 : vector<16x128xbf16> to vector<16x128xf32>
    %143 = arith.addf %140, %142 : vector<16x128xf32>
    %144 = arith.negf %143 : vector<16x128xf32>
    %145 = math.exp %144 : vector<16x128xf32>
    %cst_56 = arith.constant 1.000000e+00 : f32
    %146 = vector.broadcast %cst_56 : f32 to vector<16x128xf32>
    %147 = arith.addf %146, %145 : vector<16x128xf32>
    %148 = arith.divf %146, %147 : vector<16x128xf32>
    %149 = math.tanh %138 : vector<16x128xf32>
    %150 = arith.mulf %148, %149 : vector<16x128xf32>
    %151 = arith.truncf %150 : vector<16x128xf32> to vector<16x128xbf16>
    %152 = arith.index_cast %c2_i32 : i32 to index
    %c0_57 = arith.constant 0 : index
    %c0_58 = arith.constant 0 : index
    %153 = vector.load %arg5[%152, %c0_57, %c0_58] : memref<8x16x128xbf16, #tpu.memory_space<vmem>>, vector<1x16x128xbf16>
    %154 = vector.shape_cast %153 : vector<1x16x128xbf16> to vector<16x128xbf16>
    %155 = vector.shape_cast %151 : vector<16x128xbf16> to vector<1x16x128xbf16>
    tpu.vector_store %arg5[%152, %c0_57, %c0_58], %155 {strides = array<i32>} : memref<8x16x128xbf16, #tpu.memory_space<vmem>>, vector<1x16x128xbf16>,
    %c3_i32 = arith.constant 3 : i32
    %156 = arith.truncf %150 : vector<16x128xf32> to vector<16x128xbf16>
    %157 = arith.index_cast %c3_i32 : i32 to index
    %c0_59 = arith.constant 0 : index
    %c0_60 = arith.constant 0 : index
    %158 = vector.load %arg1[%157, %c0_59, %c0_60] : memref<8x16x512xbf16, #tpu.memory_space<vmem>>, vector<1x16x512xbf16>
    %159 = vector.shape_cast %158 : vector<1x16x512xbf16> to vector<16x512xbf16>
    %c0_61 = arith.constant 0 : index
    %c128_62 = arith.constant 128 : index
    %160 = vector.load %arg10[%c0_61, %c128_62] : memref<128x512xbf16, #tpu.memory_space<vmem>>, vector<128x128xbf16>
    %cst_63 = arith.constant dense<0.000000e+00> : vector<16x128xf32>
    %161 = tpu.matmul %156, %160, %cst_63 {dimension_numbers = #tpu.dot_dimension_numbers<[1], [0], [0], [1], [0, 0, 1, 1], [], []>} : vector<16x128xbf16>, vector<128x128xbf16>, vector<16x128xf32> -> vector<16x128xf32>
    %162 = vector.extract_strided_slice %159 {offsets = [0, 128], sizes = [16, 128], strides = [1, 1]} : vector<16x512xbf16> to vector<16x128xbf16>
    %163 = arith.extf %162 : vector<16x128xbf16> to vector<16x128xf32>
    %164 = arith.addf %161, %163 : vector<16x128xf32>
    %165 = arith.negf %164 : vector<16x128xf32>
    %166 = math.exp %165 : vector<16x128xf32>
    %cst_64 = arith.constant 1.000000e+00 : f32
    %167 = vector.broadcast %cst_64 : f32 to vector<16x128xf32>
    %168 = arith.addf %167, %166 : vector<16x128xf32>
    %169 = arith.divf %167, %168 : vector<16x128xf32>
    %170 = arith.mulf %169, %138 : vector<16x128xf32>
    %c0_65 = arith.constant 0 : index
    %c0_66 = arith.constant 0 : index
    %171 = vector.load %arg10[%c0_65, %c0_66] : memref<128x512xbf16, #tpu.memory_space<vmem>>, vector<128x128xbf16>
    %cst_67 = arith.constant dense<0.000000e+00> : vector<16x128xf32>
    %172 = tpu.matmul %156, %171, %cst_67 {dimension_numbers = #tpu.dot_dimension_numbers<[1], [0], [0], [1], [0, 0, 1, 1], [], []>} : vector<16x128xbf16>, vector<128x128xbf16>, vector<16x128xf32> -> vector<16x128xf32>
    %173 = vector.extract_strided_slice %159 {offsets = [0, 0], sizes = [16, 128], strides = [1, 1]} : vector<16x512xbf16> to vector<16x128xbf16>
    %174 = arith.extf %173 : vector<16x128xbf16> to vector<16x128xf32>
    %175 = arith.addf %172, %174 : vector<16x128xf32>
    %176 = arith.negf %175 : vector<16x128xf32>
    %177 = math.exp %176 : vector<16x128xf32>
    %cst_68 = arith.constant 1.000000e+00 : f32
    %178 = vector.broadcast %cst_68 : f32 to vector<16x128xf32>
    %179 = arith.addf %178, %177 : vector<16x128xf32>
    %180 = arith.divf %178, %179 : vector<16x128xf32>
    %c0_69 = arith.constant 0 : index
    %c384_70 = arith.constant 384 : index
    %181 = vector.load %arg10[%c0_69, %c384_70] : memref<128x512xbf16, #tpu.memory_space<vmem>>, vector<128x128xbf16>
    %cst_71 = arith.constant dense<0.000000e+00> : vector<16x128xf32>
    %182 = tpu.matmul %156, %181, %cst_71 {dimension_numbers = #tpu.dot_dimension_numbers<[1], [0], [0], [1], [0, 0, 1, 1], [], []>} : vector<16x128xbf16>, vector<128x128xbf16>, vector<16x128xf32> -> vector<16x128xf32>
    %183 = vector.extract_strided_slice %159 {offsets = [0, 384], sizes = [16, 128], strides = [1, 1]} : vector<16x512xbf16> to vector<16x128xbf16>
    %184 = arith.extf %183 : vector<16x128xbf16> to vector<16x128xf32>
    %185 = arith.addf %182, %184 : vector<16x128xf32>
    %186 = math.tanh %185 : vector<16x128xf32>
    %187 = arith.mulf %180, %186 : vector<16x128xf32>
    %188 = arith.addf %170, %187 : vector<16x128xf32>
    %c0_72 = arith.constant 0 : index
    %c256_73 = arith.constant 256 : index
    %189 = vector.load %arg10[%c0_72, %c256_73] : memref<128x512xbf16, #tpu.memory_space<vmem>>, vector<128x128xbf16>
    %cst_74 = arith.constant dense<0.000000e+00> : vector<16x128xf32>
    %190 = tpu.matmul %156, %189, %cst_74 {dimension_numbers = #tpu.dot_dimension_numbers<[1], [0], [0], [1], [0, 0, 1, 1], [], []>} : vector<16x128xbf16>, vector<128x128xbf16>, vector<16x128xf32> -> vector<16x128xf32>
    %191 = vector.extract_strided_slice %159 {offsets = [0, 256], sizes = [16, 128], strides = [1, 1]} : vector<16x512xbf16> to vector<16x128xbf16>
    %192 = arith.extf %191 : vector<16x128xbf16> to vector<16x128xf32>
    %193 = arith.addf %190, %192 : vector<16x128xf32>
    %194 = arith.negf %193 : vector<16x128xf32>
    %195 = math.exp %194 : vector<16x128xf32>
    %cst_75 = arith.constant 1.000000e+00 : f32
    %196 = vector.broadcast %cst_75 : f32 to vector<16x128xf32>
    %197 = arith.addf %196, %195 : vector<16x128xf32>
    %198 = arith.divf %196, %197 : vector<16x128xf32>
    %199 = math.tanh %188 : vector<16x128xf32>
    %200 = arith.mulf %198, %199 : vector<16x128xf32>
    %201 = arith.truncf %200 : vector<16x128xf32> to vector<16x128xbf16>
    %202 = arith.index_cast %c3_i32 : i32 to index
    %c0_76 = arith.constant 0 : index
    %c0_77 = arith.constant 0 : index
    %203 = vector.load %arg5[%202, %c0_76, %c0_77] : memref<8x16x128xbf16, #tpu.memory_space<vmem>>, vector<1x16x128xbf16>
    %204 = vector.shape_cast %203 : vector<1x16x128xbf16> to vector<16x128xbf16>
    %205 = vector.shape_cast %201 : vector<16x128xbf16> to vector<1x16x128xbf16>
    tpu.vector_store %arg5[%202, %c0_76, %c0_77], %205 {strides = array<i32>} : memref<8x16x128xbf16, #tpu.memory_space<vmem>>, vector<1x16x128xbf16>,
    %c4_i32 = arith.constant 4 : i32
    %206 = arith.truncf %200 : vector<16x128xf32> to vector<16x128xbf16>
    %207 = arith.index_cast %c4_i32 : i32 to index
    %c0_78 = arith.constant 0 : index
    %c0_79 = arith.constant 0 : index
    %208 = vector.load %arg1[%207, %c0_78, %c0_79] : memref<8x16x512xbf16, #tpu.memory_space<vmem>>, vector<1x16x512xbf16>
    %209 = vector.shape_cast %208 : vector<1x16x512xbf16> to vector<16x512xbf16>
    %c0_80 = arith.constant 0 : index
    %c128_81 = arith.constant 128 : index
    %210 = vector.load %arg10[%c0_80, %c128_81] : memref<128x512xbf16, #tpu.memory_space<vmem>>, vector<128x128xbf16>
    %cst_82 = arith.constant dense<0.000000e+00> : vector<16x128xf32>
    %211 = tpu.matmul %206, %210, %cst_82 {dimension_numbers = #tpu.dot_dimension_numbers<[1], [0], [0], [1], [0, 0, 1, 1], [], []>} : vector<16x128xbf16>, vector<128x128xbf16>, vector<16x128xf32> -> vector<16x128xf32>
    %212 = vector.extract_strided_slice %209 {offsets = [0, 128], sizes = [16, 128], strides = [1, 1]} : vector<16x512xbf16> to vector<16x128xbf16>
    %213 = arith.extf %212 : vector<16x128xbf16> to vector<16x128xf32>
    %214 = arith.addf %211, %213 : vector<16x128xf32>
    %215 = arith.negf %214 : vector<16x128xf32>
    %216 = math.exp %215 : vector<16x128xf32>
    %cst_83 = arith.constant 1.000000e+00 : f32
    %217 = vector.broadcast %cst_83 : f32 to vector<16x128xf32>
    %218 = arith.addf %217, %216 : vector<16x128xf32>
    %219 = arith.divf %217, %218 : vector<16x128xf32>
    %220 = arith.mulf %219, %188 : vector<16x128xf32>
    %c0_84 = arith.constant 0 : index
    %c0_85 = arith.constant 0 : index
    %221 = vector.load %arg10[%c0_84, %c0_85] : memref<128x512xbf16, #tpu.memory_space<vmem>>, vector<128x128xbf16>
    %cst_86 = arith.constant dense<0.000000e+00> : vector<16x128xf32>
    %222 = tpu.matmul %206, %221, %cst_86 {dimension_numbers = #tpu.dot_dimension_numbers<[1], [0], [0], [1], [0, 0, 1, 1], [], []>} : vector<16x128xbf16>, vector<128x128xbf16>, vector<16x128xf32> -> vector<16x128xf32>
    %223 = vector.extract_strided_slice %209 {offsets = [0, 0], sizes = [16, 128], strides = [1, 1]} : vector<16x512xbf16> to vector<16x128xbf16>
    %224 = arith.extf %223 : vector<16x128xbf16> to vector<16x128xf32>
    %225 = arith.addf %222, %224 : vector<16x128xf32>
    %226 = arith.negf %225 : vector<16x128xf32>
    %227 = math.exp %226 : vector<16x128xf32>
    %cst_87 = arith.constant 1.000000e+00 : f32
    %228 = vector.broadcast %cst_87 : f32 to vector<16x128xf32>
    %229 = arith.addf %228, %227 : vector<16x128xf32>
    %230 = arith.divf %228, %229 : vector<16x128xf32>
    %c0_88 = arith.constant 0 : index
    %c384_89 = arith.constant 384 : index
    %231 = vector.load %arg10[%c0_88, %c384_89] : memref<128x512xbf16, #tpu.memory_space<vmem>>, vector<128x128xbf16>
    %cst_90 = arith.constant dense<0.000000e+00> : vector<16x128xf32>
    %232 = tpu.matmul %206, %231, %cst_90 {dimension_numbers = #tpu.dot_dimension_numbers<[1], [0], [0], [1], [0, 0, 1, 1], [], []>} : vector<16x128xbf16>, vector<128x128xbf16>, vector<16x128xf32> -> vector<16x128xf32>
    %233 = vector.extract_strided_slice %209 {offsets = [0, 384], sizes = [16, 128], strides = [1, 1]} : vector<16x512xbf16> to vector<16x128xbf16>
    %234 = arith.extf %233 : vector<16x128xbf16> to vector<16x128xf32>
    %235 = arith.addf %232, %234 : vector<16x128xf32>
    %236 = math.tanh %235 : vector<16x128xf32>
    %237 = arith.mulf %230, %236 : vector<16x128xf32>
    %238 = arith.addf %220, %237 : vector<16x128xf32>
    %c0_91 = arith.constant 0 : index
    %c256_92 = arith.constant 256 : index
    %239 = vector.load %arg10[%c0_91, %c256_92] : memref<128x512xbf16, #tpu.memory_space<vmem>>, vector<128x128xbf16>
    %cst_93 = arith.constant dense<0.000000e+00> : vector<16x128xf32>
    %240 = tpu.matmul %206, %239, %cst_93 {dimension_numbers = #tpu.dot_dimension_numbers<[1], [0], [0], [1], [0, 0, 1, 1], [], []>} : vector<16x128xbf16>, vector<128x128xbf16>, vector<16x128xf32> -> vector<16x128xf32>
    %241 = vector.extract_strided_slice %209 {offsets = [0, 256], sizes = [16, 128], strides = [1, 1]} : vector<16x512xbf16> to vector<16x128xbf16>
    %242 = arith.extf %241 : vector<16x128xbf16> to vector<16x128xf32>
    %243 = arith.addf %240, %242 : vector<16x128xf32>
    %244 = arith.negf %243 : vector<16x128xf32>
    %245 = math.exp %244 : vector<16x128xf32>
    %cst_94 = arith.constant 1.000000e+00 : f32
    %246 = vector.broadcast %cst_94 : f32 to vector<16x128xf32>
    %247 = arith.addf %246, %245 : vector<16x128xf32>
    %248 = arith.divf %246, %247 : vector<16x128xf32>
    %249 = math.tanh %238 : vector<16x128xf32>
    %250 = arith.mulf %248, %249 : vector<16x128xf32>
    %251 = arith.truncf %250 : vector<16x128xf32> to vector<16x128xbf16>
    %252 = arith.index_cast %c4_i32 : i32 to index
    %c0_95 = arith.constant 0 : index
    %c0_96 = arith.constant 0 : index
    %253 = vector.load %arg5[%252, %c0_95, %c0_96] : memref<8x16x128xbf16, #tpu.memory_space<vmem>>, vector<1x16x128xbf16>
    %254 = vector.shape_cast %253 : vector<1x16x128xbf16> to vector<16x128xbf16>
    %255 = vector.shape_cast %251 : vector<16x128xbf16> to vector<1x16x128xbf16>
    tpu.vector_store %arg5[%252, %c0_95, %c0_96], %255 {strides = array<i32>} : memref<8x16x128xbf16, #tpu.memory_space<vmem>>, vector<1x16x128xbf16>,
    %c5_i32 = arith.constant 5 : i32
    %256 = arith.truncf %250 : vector<16x128xf32> to vector<16x128xbf16>
    %257 = arith.index_cast %c5_i32 : i32 to index
    %c0_97 = arith.constant 0 : index
    %c0_98 = arith.constant 0 : index
    %258 = vector.load %arg1[%257, %c0_97, %c0_98] : memref<8x16x512xbf16, #tpu.memory_space<vmem>>, vector<1x16x512xbf16>
    %259 = vector.shape_cast %258 : vector<1x16x512xbf16> to vector<16x512xbf16>
    %c0_99 = arith.constant 0 : index
    %c128_100 = arith.constant 128 : index
    %260 = vector.load %arg10[%c0_99, %c128_100] : memref<128x512xbf16, #tpu.memory_space<vmem>>, vector<128x128xbf16>
    %cst_101 = arith.constant dense<0.000000e+00> : vector<16x128xf32>
    %261 = tpu.matmul %256, %260, %cst_101 {dimension_numbers = #tpu.dot_dimension_numbers<[1], [0], [0], [1], [0, 0, 1, 1], [], []>} : vector<16x128xbf16>, vector<128x128xbf16>, vector<16x128xf32> -> vector<16x128xf32>
    %262 = vector.extract_strided_slice %259 {offsets = [0, 128], sizes = [16, 128], strides = [1, 1]} : vector<16x512xbf16> to vector<16x128xbf16>
    %263 = arith.extf %262 : vector<16x128xbf16> to vector<16x128xf32>
    %264 = arith.addf %261, %263 : vector<16x128xf32>
    %265 = arith.negf %264 : vector<16x128xf32>
    %266 = math.exp %265 : vector<16x128xf32>
    %cst_102 = arith.constant 1.000000e+00 : f32
    %267 = vector.broadcast %cst_102 : f32 to vector<16x128xf32>
    %268 = arith.addf %267, %266 : vector<16x128xf32>
    %269 = arith.divf %267, %268 : vector<16x128xf32>
    %270 = arith.mulf %269, %238 : vector<16x128xf32>
    %c0_103 = arith.constant 0 : index
    %c0_104 = arith.constant 0 : index
    %271 = vector.load %arg10[%c0_103, %c0_104] : memref<128x512xbf16, #tpu.memory_space<vmem>>, vector<128x128xbf16>
    %cst_105 = arith.constant dense<0.000000e+00> : vector<16x128xf32>
    %272 = tpu.matmul %256, %271, %cst_105 {dimension_numbers = #tpu.dot_dimension_numbers<[1], [0], [0], [1], [0, 0, 1, 1], [], []>} : vector<16x128xbf16>, vector<128x128xbf16>, vector<16x128xf32> -> vector<16x128xf32>
    %273 = vector.extract_strided_slice %259 {offsets = [0, 0], sizes = [16, 128], strides = [1, 1]} : vector<16x512xbf16> to vector<16x128xbf16>
    %274 = arith.extf %273 : vector<16x128xbf16> to vector<16x128xf32>
    %275 = arith.addf %272, %274 : vector<16x128xf32>
    %276 = arith.negf %275 : vector<16x128xf32>
    %277 = math.exp %276 : vector<16x128xf32>
    %cst_106 = arith.constant 1.000000e+00 : f32
    %278 = vector.broadcast %cst_106 : f32 to vector<16x128xf32>
    %279 = arith.addf %278, %277 : vector<16x128xf32>
    %280 = arith.divf %278, %279 : vector<16x128xf32>
    %c0_107 = arith.constant 0 : index
    %c384_108 = arith.constant 384 : index
    %281 = vector.load %arg10[%c0_107, %c384_108] : memref<128x512xbf16, #tpu.memory_space<vmem>>, vector<128x128xbf16>
    %cst_109 = arith.constant dense<0.000000e+00> : vector<16x128xf32>
    %282 = tpu.matmul %256, %281, %cst_109 {dimension_numbers = #tpu.dot_dimension_numbers<[1], [0], [0], [1], [0, 0, 1, 1], [], []>} : vector<16x128xbf16>, vector<128x128xbf16>, vector<16x128xf32> -> vector<16x128xf32>
    %283 = vector.extract_strided_slice %259 {offsets = [0, 384], sizes = [16, 128], strides = [1, 1]} : vector<16x512xbf16> to vector<16x128xbf16>
    %284 = arith.extf %283 : vector<16x128xbf16> to vector<16x128xf32>
    %285 = arith.addf %282, %284 : vector<16x128xf32>
    %286 = math.tanh %285 : vector<16x128xf32>
    %287 = arith.mulf %280, %286 : vector<16x128xf32>
    %288 = arith.addf %270, %287 : vector<16x128xf32>
    %c0_110 = arith.constant 0 : index
    %c256_111 = arith.constant 256 : index
    %289 = vector.load %arg10[%c0_110, %c256_111] : memref<128x512xbf16, #tpu.memory_space<vmem>>, vector<128x128xbf16>
    %cst_112 = arith.constant dense<0.000000e+00> : vector<16x128xf32>
    %290 = tpu.matmul %256, %289, %cst_112 {dimension_numbers = #tpu.dot_dimension_numbers<[1], [0], [0], [1], [0, 0, 1, 1], [], []>} : vector<16x128xbf16>, vector<128x128xbf16>, vector<16x128xf32> -> vector<16x128xf32>
    %291 = vector.extract_strided_slice %259 {offsets = [0, 256], sizes = [16, 128], strides = [1, 1]} : vector<16x512xbf16> to vector<16x128xbf16>
    %292 = arith.extf %291 : vector<16x128xbf16> to vector<16x128xf32>
    %293 = arith.addf %290, %292 : vector<16x128xf32>
    %294 = arith.negf %293 : vector<16x128xf32>
    %295 = math.exp %294 : vector<16x128xf32>
    %cst_113 = arith.constant 1.000000e+00 : f32
    %296 = vector.broadcast %cst_113 : f32 to vector<16x128xf32>
    %297 = arith.addf %296, %295 : vector<16x128xf32>
    %298 = arith.divf %296, %297 : vector<16x128xf32>
    %299 = math.tanh %288 : vector<16x128xf32>
    %300 = arith.mulf %298, %299 : vector<16x128xf32>
    %301 = arith.truncf %300 : vector<16x128xf32> to vector<16x128xbf16>
    %302 = arith.index_cast %c5_i32 : i32 to index
    %c0_114 = arith.constant 0 : index
    %c0_115 = arith.constant 0 : index
    %303 = vector.load %arg5[%302, %c0_114, %c0_115] : memref<8x16x128xbf16, #tpu.memory_space<vmem>>, vector<1x16x128xbf16>
    %304 = vector.shape_cast %303 : vector<1x16x128xbf16> to vector<16x128xbf16>
    %305 = vector.shape_cast %301 : vector<16x128xbf16> to vector<1x16x128xbf16>
    tpu.vector_store %arg5[%302, %c0_114, %c0_115], %305 {strides = array<i32>} : memref<8x16x128xbf16, #tpu.memory_space<vmem>>, vector<1x16x128xbf16>,
    %c6_i32 = arith.constant 6 : i32
    %306 = arith.truncf %300 : vector<16x128xf32> to vector<16x128xbf16>
    %307 = arith.index_cast %c6_i32 : i32 to index
    %c0_116 = arith.constant 0 : index
    %c0_117 = arith.constant 0 : index
    %308 = vector.load %arg1[%307, %c0_116, %c0_117] : memref<8x16x512xbf16, #tpu.memory_space<vmem>>, vector<1x16x512xbf16>
    %309 = vector.shape_cast %308 : vector<1x16x512xbf16> to vector<16x512xbf16>
    %c0_118 = arith.constant 0 : index
    %c128_119 = arith.constant 128 : index
    %310 = vector.load %arg10[%c0_118, %c128_119] : memref<128x512xbf16, #tpu.memory_space<vmem>>, vector<128x128xbf16>
    %cst_120 = arith.constant dense<0.000000e+00> : vector<16x128xf32>
    %311 = tpu.matmul %306, %310, %cst_120 {dimension_numbers = #tpu.dot_dimension_numbers<[1], [0], [0], [1], [0, 0, 1, 1], [], []>} : vector<16x128xbf16>, vector<128x128xbf16>, vector<16x128xf32> -> vector<16x128xf32>
    %312 = vector.extract_strided_slice %309 {offsets = [0, 128], sizes = [16, 128], strides = [1, 1]} : vector<16x512xbf16> to vector<16x128xbf16>
    %313 = arith.extf %312 : vector<16x128xbf16> to vector<16x128xf32>
    %314 = arith.addf %311, %313 : vector<16x128xf32>
    %315 = arith.negf %314 : vector<16x128xf32>
    %316 = math.exp %315 : vector<16x128xf32>
    %cst_121 = arith.constant 1.000000e+00 : f32
    %317 = vector.broadcast %cst_121 : f32 to vector<16x128xf32>
    %318 = arith.addf %317, %316 : vector<16x128xf32>
    %319 = arith.divf %317, %318 : vector<16x128xf32>
    %320 = arith.mulf %319, %288 : vector<16x128xf32>
    %c0_122 = arith.constant 0 : index
    %c0_123 = arith.constant 0 : index
    %321 = vector.load %arg10[%c0_122, %c0_123] : memref<128x512xbf16, #tpu.memory_space<vmem>>, vector<128x128xbf16>
    %cst_124 = arith.constant dense<0.000000e+00> : vector<16x128xf32>
    %322 = tpu.matmul %306, %321, %cst_124 {dimension_numbers = #tpu.dot_dimension_numbers<[1], [0], [0], [1], [0, 0, 1, 1], [], []>} : vector<16x128xbf16>, vector<128x128xbf16>, vector<16x128xf32> -> vector<16x128xf32>
    %323 = vector.extract_strided_slice %309 {offsets = [0, 0], sizes = [16, 128], strides = [1, 1]} : vector<16x512xbf16> to vector<16x128xbf16>
    %324 = arith.extf %323 : vector<16x128xbf16> to vector<16x128xf32>
    %325 = arith.addf %322, %324 : vector<16x128xf32>
    %326 = arith.negf %325 : vector<16x128xf32>
    %327 = math.exp %326 : vector<16x128xf32>
    %cst_125 = arith.constant 1.000000e+00 : f32
    %328 = vector.broadcast %cst_125 : f32 to vector<16x128xf32>
    %329 = arith.addf %328, %327 : vector<16x128xf32>
    %330 = arith.divf %328, %329 : vector<16x128xf32>
    %c0_126 = arith.constant 0 : index
    %c384_127 = arith.constant 384 : index
    %331 = vector.load %arg10[%c0_126, %c384_127] : memref<128x512xbf16, #tpu.memory_space<vmem>>, vector<128x128xbf16>
    %cst_128 = arith.constant dense<0.000000e+00> : vector<16x128xf32>
    %332 = tpu.matmul %306, %331, %cst_128 {dimension_numbers = #tpu.dot_dimension_numbers<[1], [0], [0], [1], [0, 0, 1, 1], [], []>} : vector<16x128xbf16>, vector<128x128xbf16>, vector<16x128xf32> -> vector<16x128xf32>
    %333 = vector.extract_strided_slice %309 {offsets = [0, 384], sizes = [16, 128], strides = [1, 1]} : vector<16x512xbf16> to vector<16x128xbf16>
    %334 = arith.extf %333 : vector<16x128xbf16> to vector<16x128xf32>
    %335 = arith.addf %332, %334 : vector<16x128xf32>
    %336 = math.tanh %335 : vector<16x128xf32>
    %337 = arith.mulf %330, %336 : vector<16x128xf32>
    %338 = arith.addf %320, %337 : vector<16x128xf32>
    %c0_129 = arith.constant 0 : index
    %c256_130 = arith.constant 256 : index
    %339 = vector.load %arg10[%c0_129, %c256_130] : memref<128x512xbf16, #tpu.memory_space<vmem>>, vector<128x128xbf16>
    %cst_131 = arith.constant dense<0.000000e+00> : vector<16x128xf32>
    %340 = tpu.matmul %306, %339, %cst_131 {dimension_numbers = #tpu.dot_dimension_numbers<[1], [0], [0], [1], [0, 0, 1, 1], [], []>} : vector<16x128xbf16>, vector<128x128xbf16>, vector<16x128xf32> -> vector<16x128xf32>
    %341 = vector.extract_strided_slice %309 {offsets = [0, 256], sizes = [16, 128], strides = [1, 1]} : vector<16x512xbf16> to vector<16x128xbf16>
    %342 = arith.extf %341 : vector<16x128xbf16> to vector<16x128xf32>
    %343 = arith.addf %340, %342 : vector<16x128xf32>
    %344 = arith.negf %343 : vector<16x128xf32>
    %345 = math.exp %344 : vector<16x128xf32>
    %cst_132 = arith.constant 1.000000e+00 : f32
    %346 = vector.broadcast %cst_132 : f32 to vector<16x128xf32>
    %347 = arith.addf %346, %345 : vector<16x128xf32>
    %348 = arith.divf %346, %347 : vector<16x128xf32>
    %349 = math.tanh %338 : vector<16x128xf32>
    %350 = arith.mulf %348, %349 : vector<16x128xf32>
    %351 = arith.truncf %350 : vector<16x128xf32> to vector<16x128xbf16>
    %352 = arith.index_cast %c6_i32 : i32 to index
    %c0_133 = arith.constant 0 : index
    %c0_134 = arith.constant 0 : index
    %353 = vector.load %arg5[%352, %c0_133, %c0_134] : memref<8x16x128xbf16, #tpu.memory_space<vmem>>, vector<1x16x128xbf16>
    %354 = vector.shape_cast %353 : vector<1x16x128xbf16> to vector<16x128xbf16>
    %355 = vector.shape_cast %351 : vector<16x128xbf16> to vector<1x16x128xbf16>
    tpu.vector_store %arg5[%352, %c0_133, %c0_134], %355 {strides = array<i32>} : memref<8x16x128xbf16, #tpu.memory_space<vmem>>, vector<1x16x128xbf16>,
    %c7_i32 = arith.constant 7 : i32
    %356 = arith.truncf %350 : vector<16x128xf32> to vector<16x128xbf16>
    %357 = arith.index_cast %c7_i32 : i32 to index
    %c0_135 = arith.constant 0 : index
    %c0_136 = arith.constant 0 : index
    %358 = vector.load %arg1[%357, %c0_135, %c0_136] : memref<8x16x512xbf16, #tpu.memory_space<vmem>>, vector<1x16x512xbf16>
    %359 = vector.shape_cast %358 : vector<1x16x512xbf16> to vector<16x512xbf16>
    %c0_137 = arith.constant 0 : index
    %c128_138 = arith.constant 128 : index
    %360 = vector.load %arg10[%c0_137, %c128_138] : memref<128x512xbf16, #tpu.memory_space<vmem>>, vector<128x128xbf16>
    %cst_139 = arith.constant dense<0.000000e+00> : vector<16x128xf32>
    %361 = tpu.matmul %356, %360, %cst_139 {dimension_numbers = #tpu.dot_dimension_numbers<[1], [0], [0], [1], [0, 0, 1, 1], [], []>} : vector<16x128xbf16>, vector<128x128xbf16>, vector<16x128xf32> -> vector<16x128xf32>
    %362 = vector.extract_strided_slice %359 {offsets = [0, 128], sizes = [16, 128], strides = [1, 1]} : vector<16x512xbf16> to vector<16x128xbf16>
    %363 = arith.extf %362 : vector<16x128xbf16> to vector<16x128xf32>
    %364 = arith.addf %361, %363 : vector<16x128xf32>
    %365 = arith.negf %364 : vector<16x128xf32>
    %366 = math.exp %365 : vector<16x128xf32>
    %cst_140 = arith.constant 1.000000e+00 : f32
    %367 = vector.broadcast %cst_140 : f32 to vector<16x128xf32>
    %368 = arith.addf %367, %366 : vector<16x128xf32>
    %369 = arith.divf %367, %368 : vector<16x128xf32>
    %370 = arith.mulf %369, %338 : vector<16x128xf32>
    %c0_141 = arith.constant 0 : index
    %c0_142 = arith.constant 0 : index
    %371 = vector.load %arg10[%c0_141, %c0_142] : memref<128x512xbf16, #tpu.memory_space<vmem>>, vector<128x128xbf16>
    %cst_143 = arith.constant dense<0.000000e+00> : vector<16x128xf32>
    %372 = tpu.matmul %356, %371, %cst_143 {dimension_numbers = #tpu.dot_dimension_numbers<[1], [0], [0], [1], [0, 0, 1, 1], [], []>} : vector<16x128xbf16>, vector<128x128xbf16>, vector<16x128xf32> -> vector<16x128xf32>
    %373 = vector.extract_strided_slice %359 {offsets = [0, 0], sizes = [16, 128], strides = [1, 1]} : vector<16x512xbf16> to vector<16x128xbf16>
    %374 = arith.extf %373 : vector<16x128xbf16> to vector<16x128xf32>
    %375 = arith.addf %372, %374 : vector<16x128xf32>
    %376 = arith.negf %375 : vector<16x128xf32>
    %377 = math.exp %376 : vector<16x128xf32>
    %cst_144 = arith.constant 1.000000e+00 : f32
    %378 = vector.broadcast %cst_144 : f32 to vector<16x128xf32>
    %379 = arith.addf %378, %377 : vector<16x128xf32>
    %380 = arith.divf %378, %379 : vector<16x128xf32>
    %c0_145 = arith.constant 0 : index
    %c384_146 = arith.constant 384 : index
    %381 = vector.load %arg10[%c0_145, %c384_146] : memref<128x512xbf16, #tpu.memory_space<vmem>>, vector<128x128xbf16>
    %cst_147 = arith.constant dense<0.000000e+00> : vector<16x128xf32>
    %382 = tpu.matmul %356, %381, %cst_147 {dimension_numbers = #tpu.dot_dimension_numbers<[1], [0], [0], [1], [0, 0, 1, 1], [], []>} : vector<16x128xbf16>, vector<128x128xbf16>, vector<16x128xf32> -> vector<16x128xf32>
    %383 = vector.extract_strided_slice %359 {offsets = [0, 384], sizes = [16, 128], strides = [1, 1]} : vector<16x512xbf16> to vector<16x128xbf16>
    %384 = arith.extf %383 : vector<16x128xbf16> to vector<16x128xf32>
    %385 = arith.addf %382, %384 : vector<16x128xf32>
    %386 = math.tanh %385 : vector<16x128xf32>
    %387 = arith.mulf %380, %386 : vector<16x128xf32>
    %388 = arith.addf %370, %387 : vector<16x128xf32>
    %c0_148 = arith.constant 0 : index
    %c256_149 = arith.constant 256 : index
    %389 = vector.load %arg10[%c0_148, %c256_149] : memref<128x512xbf16, #tpu.memory_space<vmem>>, vector<128x128xbf16>
    %cst_150 = arith.constant dense<0.000000e+00> : vector<16x128xf32>
    %390 = tpu.matmul %356, %389, %cst_150 {dimension_numbers = #tpu.dot_dimension_numbers<[1], [0], [0], [1], [0, 0, 1, 1], [], []>} : vector<16x128xbf16>, vector<128x128xbf16>, vector<16x128xf32> -> vector<16x128xf32>
    %391 = vector.extract_strided_slice %359 {offsets = [0, 256], sizes = [16, 128], strides = [1, 1]} : vector<16x512xbf16> to vector<16x128xbf16>
    %392 = arith.extf %391 : vector<16x128xbf16> to vector<16x128xf32>
    %393 = arith.addf %390, %392 : vector<16x128xf32>
    %394 = arith.negf %393 : vector<16x128xf32>
    %395 = math.exp %394 : vector<16x128xf32>
    %cst_151 = arith.constant 1.000000e+00 : f32
    %396 = vector.broadcast %cst_151 : f32 to vector<16x128xf32>
    %397 = arith.addf %396, %395 : vector<16x128xf32>
    %398 = arith.divf %396, %397 : vector<16x128xf32>
    %399 = math.tanh %388 : vector<16x128xf32>
    %400 = arith.mulf %398, %399 : vector<16x128xf32>
    %401 = arith.truncf %400 : vector<16x128xf32> to vector<16x128xbf16>
    %402 = arith.index_cast %c7_i32 : i32 to index
    %c0_152 = arith.constant 0 : index
    %c0_153 = arith.constant 0 : index
    %403 = vector.load %arg5[%402, %c0_152, %c0_153] : memref<8x16x128xbf16, #tpu.memory_space<vmem>>, vector<1x16x128xbf16>
    %404 = vector.shape_cast %403 : vector<1x16x128xbf16> to vector<16x128xbf16>
    %405 = vector.shape_cast %401 : vector<16x128xbf16> to vector<1x16x128xbf16>
    tpu.vector_store %arg5[%402, %c0_152, %c0_153], %405 {strides = array<i32>} : memref<8x16x128xbf16, #tpu.memory_space<vmem>>, vector<1x16x128xbf16>,
    %c8_i32 = arith.constant 8 : i32
    %c0_154 = arith.constant 0 : index
    %c0_155 = arith.constant 0 : index
    %406 = vector.load %arg8[%c0_154, %c0_155] : memref<16x128xf32, #tpu.memory_space<vmem>>, vector<16x128xf32>
    tpu.vector_store %arg8[%c0_154, %c0_155], %400 {strides = array<i32>} : memref<16x128xf32, #tpu.memory_space<vmem>>, vector<16x128xf32>,
    %c0_156 = arith.constant 0 : index
    %c0_157 = arith.constant 0 : index
    %407 = vector.load %arg9[%c0_156, %c0_157] : memref<16x128xf32, #tpu.memory_space<vmem>>, vector<16x128xf32>
    tpu.vector_store %arg9[%c0_156, %c0_157], %388 {strides = array<i32>} : memref<16x128xf32, #tpu.memory_space<vmem>>, vector<16x128xf32>,
    %408 = arith.extui %3 : i1 to i32
    %c0_i32_158 = arith.constant 0 : i32
    %409 = arith.cmpi ne, %408, %c0_i32_158 : i32
    scf.if %409 {
      %c0_159 = arith.constant 0 : index
      %c0_160 = arith.constant 0 : index
      %410 = vector.load %arg8[%c0_159, %c0_160] : memref<16x128xf32, #tpu.memory_space<vmem>>, vector<16x128xf32>
      %c0_161 = arith.constant 0 : index
      %c0_162 = arith.constant 0 : index
      %411 = vector.load %arg6[%c0_161, %c0_162] : memref<16x128xf32, #tpu.memory_space<vmem>>, vector<16x128xf32>
      tpu.vector_store %arg6[%c0_161, %c0_162], %410 {strides = array<i32>} : memref<16x128xf32, #tpu.memory_space<vmem>>, vector<16x128xf32>,
      %c0_163 = arith.constant 0 : index
      %c0_164 = arith.constant 0 : index
      %412 = vector.load %arg9[%c0_163, %c0_164] : memref<16x128xf32, #tpu.memory_space<vmem>>, vector<16x128xf32>
      %c0_165 = arith.constant 0 : index
      %c0_166 = arith.constant 0 : index
      %413 = vector.load %arg7[%c0_165, %c0_166] : memref<16x128xf32, #tpu.memory_space<vmem>>, vector<16x128xf32>
      tpu.vector_store %arg7[%c0_165, %c0_166], %412 {strides = array<i32>} : memref<16x128xf32, #tpu.memory_space<vmem>>, vector<16x128xf32>,
    } else {
    }
    return
  }
  func.func @transform_0(%arg0: i32) -> (i32, i32, i32) {
    %c0_i32 = arith.constant 0 : i32
    %c0_i32_0 = arith.constant 0 : i32
    %c0_i32_1 = arith.constant 0 : i32
    return %arg0, %c0_i32, %c0_i32_0 : i32, i32, i32
  }
  func.func @transform_2(%arg0: i32) -> (i32, i32) {
    %c0_i32 = arith.constant 0 : i32
    %c0_i32_0 = arith.constant 0 : i32
    %c0_i32_1 = arith.constant 0 : i32
    return %c0_i32, %c0_i32_0 : i32, i32
  }
  func.func @transform_3(%arg0: i32) -> (i32, i32) {
    %c0_i32 = arith.constant 0 : i32
    %c0_i32_0 = arith.constant 0 : i32
    %c0_i32_1 = arith.constant 0 : i32
    return %c0_i32, %c0_i32_0 : i32, i32
  }
  func.func @transform_4(%arg0: i32) -> (i32, i32, i32) {
    %c0_i32 = arith.constant 0 : i32
    %c0_i32_0 = arith.constant 0 : i32
    %c0_i32_1 = arith.constant 0 : i32
    return %arg0, %c0_i32, %c0_i32_0 : i32, i32, i32
  }
  func.func @transform_5(%arg0: i32) -> (i32, i32) {
    %c0_i32 = arith.constant 0 : i32
    %c0_i32_0 = arith.constant 0 : i32
    %c0_i32_1 = arith.constant 0 : i32
    return %c0_i32, %c0_i32_0 : i32, i32
  }
  func.func @transform_6(%arg0: i32) -> (i32, i32) {
    %c0_i32 = arith.constant 0 : i32
    %c0_i32_0 = arith.constant 0 : i32
    %c0_i32_1 = arith.constant 0 : i32
    return %c0_i32, %c0_i32_0 : i32, i32
  }
}

</mosaic_0001>

<bundles_post_ra>
// kernel: tpu_custom_call.1
= control target key start
LH: loop header
LB: loop body
LE: loop exit
PB: predicated region body
PF: predicated region fallthrough
CT: control target
= control target key end

     0   :  { %12 = vsyncpa [#allocation7], 0  ;;  %s7037_s0 = inlined_call_operand.hbm [shape: bf16[8,16,512], index: 0, kind: input, shape index: {}]   ;;  %s7038_s1 = inlined_call_operand.hbm [shape: bf16[128,512], index: 1, kind: input, shape index: {}]   ;;  %s7039_s2 = inlined_call_operand.hbm [shape: f32[16,128], index: 2, kind: input, shape index: {}]   ;;  %s7040_s3 = inlined_call_operand.hbm [shape: f32[16,128], index: 3, kind: input, shape index: {}]   ;;  %s7041_s4 = inlined_call_operand.hbm [shape: bf16[8,16,128], index: 4, kind: output, shape index: {0}]   ;;  %s7042_s5 = inlined_call_operand.hbm [shape: f32[16,128], index: 5, kind: output, shape index: {1}]   ;;  %s7043_s6 = inlined_call_operand.hbm [shape: f32[16,128], index: 6, kind: output, shape index: {2}]  }
   0x1   :  { %13 = vsyncpa [#allocation10], 0 }
   0x2   :  { %14 = vsyncpa [#allocation8], 0  ;;  %s33_s23 = sshll.u32 %s7039_s2, 4  ;;  %s34_s23 = int_to_ptr.hbm [resolvable:$true] %s33_s23 }
   0x3   :  { %15 = vsyncpa [#allocation14], 0  ;;  %s5777_s24 = smov [#allocation9]   ;;  %s20_s28 = sshll.u32 %s7037_s0, 4  ;;  %s21_s28 = int_to_ptr.hbm [resolvable:$true] %s20_s28 }
   0x4   :  { %s35_s25 = sshll.u32 %s5777_s24, 4  ;;  %s5778_s29 = smov 128   ;;  %s36_s25 = int_to_ptr.vmem [resolvable:$true] %s35_s25 }
   0x5   :  { %s5779_s30 = smov 8   ;;  %s5780_s7 = smov [#allocation6]  }
   0x6   :  { %41 = dma.hbm_to_vmem [thread:$0]  %s34_s23, 256, %s36_s25, [#allocation10], %s5778_s29, %s5778_s29, %s5779_s30  }
   0x7   :  { %s22_s8 = sshll.u32 %s5780_s7, 4  ;;  %s5781_s2 = smov 256   ;;  %s23_s8 = int_to_ptr.vmem [resolvable:$true] %s22_s8 }
   0x8   :  { %s5782_s9 = smov 16   ;;  %s46_s12 = sshll.u32 %s7040_s3, 4  ;;  %s47_s12 = int_to_ptr.hbm [resolvable:$true] %s46_s12 }
   0x9   :  { %28 = dma.hbm_to_vmem [thread:$0]  %s21_s28, 4096, %s23_s8, [#allocation7], %s5781_s2, %s5781_s2, %s5782_s9  }
   0xa   :  { %s5783_s13 = smov [#allocation11]  }
   0xb   :  { %s48_s0 = sshll.u32 %s5783_s13, 4  ;;  %s49_s0 = int_to_ptr.vmem [resolvable:$true] %s48_s0 }
   0xc   :  { %54 = dma.hbm_to_vmem [thread:$0]  %s47_s12, 256, %s49_s0, [#allocation10], %s5778_s29, %s5778_s29, %s5779_s30  }
   0xd   :  { %5767 = dma.done.wait [#allocation7], 4096  }
   0xe   :  { %5768 = vsyncadd [#allocation7], 4294963200 }
   0xf   :  { %5769 = dma.done.wait [#allocation10], 512  }
  0x10   :  { %5770 = vsyncadd [#allocation10], 4294966784  ;;  %s78_s16 = sshll.u32 %s7038_s1, 4  ;;  %s5784_s17 = smov [#allocation4]   ;;  %v5843_v0 = vld [vmem:[#allocation9] sm:$0xff]  ;;  %v5845_v1 = vld [vmem:[#allocation9 + $0x8] sm:$0xff]  ;;  %s79_s16 = int_to_ptr.hbm [resolvable:$true] %s78_s16 }
  0x11   :  { %s80_s18 = sshll.u32 %s5784_s17, 4  ;;  %v5847_v2 = vld [vmem:[#allocation11] sm:$0xff]  ;;  %v5849_v3 = vld [vmem:[#allocation11 + $0x8] sm:$0xff]  ;;  %s81_s18 = int_to_ptr.vmem [resolvable:$true] %s80_s18 }
  0x12   :  { %83 = dma.hbm_to_vmem [thread:$0]  %s79_s16, 4096, %s81_s18, [#allocation5] }
  0x13   :  { %5771 = dma.done.wait [#allocation5], 4096 }
  0x14   :  { %5772 = vsyncadd [#allocation5], 4294963200  ;;  %v3991_v4 = vld [vmem:[#allocation4 + $0xe4] sm:$0xf]  ;;  %v5041_v5 = vld [vmem:[#allocation4 + $0xf0] sm:$0xf0] }
  0x15   :  { %v4025_v6 = vld [vmem:[#allocation4 + $0xe0] sm:$0xf]  ;;  %v3992_v7 = vor.u32 %v5041_v5, %v3991_v4  ;;  %v5049_v8 = vld [vmem:[#allocation4 + $0xec] sm:$0xf0]  ;;  %v4091_v9 = vld [vmem:[#allocation4 + $0xe8] sm:$0xf] }
  0x16   :  { %v5065_v10 = vld [vmem:[#allocation4 + $0xf4] sm:$0xf0]  ;;  %v4026_v11 = vor.u32 %v5049_v8, %v4025_v6  ;;  %v3987_v13 = vld [vmem:[#allocation4 + $0xc4] sm:$0xf]  ;;  %v5040_v14 = vld [vmem:[#allocation4 + $0xd0] sm:$0xf0] }
  0x17   :  { %v4092_v12 = vor.u32 %v5065_v10, %v4091_v9  ;;  %v4021_v15 = vld [vmem:[#allocation4 + $0xc0] sm:$0xf]  ;;  %177 = vmatpush.bf16.msra.mxu0 %v3992_v7  ;;  %v3988_v16 = vor.u32 %v5040_v14, %v3987_v13  ;;  %v5048_v17 = vld [vmem:[#allocation4 + $0xcc] sm:$0xf0]  ;;  %v4087_v18 = vld [vmem:[#allocation4 + $0xc8] sm:$0xf] }
  0x18   :  { %v5064_v19 = vld [vmem:[#allocation4 + $0xd4] sm:$0xf0]  ;;  %297 = vmatpush.bf16.msra.mxu1 %v4026_v11  ;;  %v4022_v20 = vor.u32 %v5048_v17, %v4021_v15  ;;  %v4059_v22 = vld [vmem:[#allocation4 + $0xec] sm:$0xf]  ;;  %v5057_v23 = vld [vmem:[#allocation4 + $0xf8] sm:$0xf0] }
  0x19   :  { %507 = vmatpush.bf16.msra.mxu3 %v4092_v12  ;;  %v4088_v21 = vor.u32 %v5064_v19, %v4087_v18  ;;  %v3983_v24 = vld [vmem:[#allocation4 + $0xa4] sm:$0xf]  ;;  %v4060_v25 = vor.u32 %v5057_v23, %v4059_v22  ;;  %v5039_v26 = vld [vmem:[#allocation4 + $0xb0] sm:$0xf0]  ;;  %v4017_v27 = vld [vmem:[#allocation4 + $0xa0] sm:$0xf] }
  0x1a   :  { %v5047_v28 = vld [vmem:[#allocation4 + $0xac] sm:$0xf0]  ;;  %v4083_v29 = vld [vmem:[#allocation4 + $0xa8] sm:$0xf]  ;;  %v5063_v30 = vld [vmem:[#allocation4 + $0xb4] sm:$0xf0]  ;;  %v3984_v32 = vor.u32 %v5039_v26, %v3983_v24 }
  0x1b   :  { %v4055_v31 = vld [vmem:[#allocation4 + $0xcc] sm:$0xf]  ;;  %178 = vmatpush.bf16.msra.mxu0 %v3988_v16  ;;  %421 = vmatpush.bf16.msra.mxu2 %v4060_v25  ;;  %v5056_v33 = vld [vmem:[#allocation4 + $0xd8] sm:$0xf0]  ;;  %v3979_v34 = vld [vmem:[#allocation4 + $0x84] sm:$0xf]  ;;  %v4018_v36 = vor.u32 %v5047_v28, %v4017_v27  ;;  %v4084_v37 = vor.u32 %v5063_v30, %v4083_v29 }
  0x1c   :  { %v5038_v35 = vld [vmem:[#allocation4 + $0x90] sm:$0xf0]  ;;  %298 = vmatpush.bf16.msra.mxu1 %v4022_v20  ;;  %v4056_v38 = vor.u32 %v5056_v33, %v4055_v31  ;;  %v4013_v39 = vld [vmem:[#allocation4 + $0x80] sm:$0xf]  ;;  %v5046_v40 = vld [vmem:[#allocation4 + $0x8c] sm:$0xf0] }
  0x1d   :  { %508 = vmatpush.bf16.msra.mxu3 %v4088_v21  ;;  %v4079_v41 = vld [vmem:[#allocation4 + $0x88] sm:$0xf]  ;;  %v5062_v42 = vld [vmem:[#allocation4 + $0x94] sm:$0xf0]  ;;  %v4051_v43 = vld [vmem:[#allocation4 + $0xac] sm:$0xf]  ;;  %v3980_v45 = vor.u32 %v5038_v35, %v3979_v34  ;;  %v4014_v49 = vor.u32 %v5046_v40, %v4013_v39  ;;  %v100_v39 = vpack.c.bf16 %v5845_v1, %v5843_v0 }
  0x1e   :  { %v5055_v44 = vld [vmem:[#allocation4 + $0xb8] sm:$0xf0]  ;;  %v3975_v47 = vld [vmem:[#allocation4 + $0x64] sm:$0xf]  ;;  %v5037_v48 = vld [vmem:[#allocation4 + $0x70] sm:$0xf0]  ;;  %v4080_v50 = vor.u32 %v5062_v42, %v4079_v41 }
  0x1f   :  { %179 = vmatpush.bf16.msra.mxu0 %v3984_v32  ;;  %422 = vmatpush.bf16.msra.mxu2 %v4056_v38  ;;  %v4052_v46 = vor.u32 %v5055_v44, %v4051_v43  ;;  %v4009_v51 = vld [vmem:[#allocation4 + $0x60] sm:$0xf]  ;;  %v4047_v52 = vld [vmem:[#allocation4 + $0x8c] sm:$0xf]  ;;  %v5054_v53 = vld [vmem:[#allocation4 + $0x98] sm:$0xf0]  ;;  %v3976_v57 = vor.u32 %v5037_v48, %v3975_v47 }
  0x20   :  { %299 = vmatpush.bf16.msra.mxu1 %v4018_v36  ;;  %v5045_v54 = vld [vmem:[#allocation4 + $0x6c] sm:$0xf0]  ;;  %v4075_v55 = vld [vmem:[#allocation4 + $0x68] sm:$0xf]  ;;  %v5061_v56 = vld [vmem:[#allocation4 + $0x74] sm:$0xf0]  ;;  %v4048_v58 = vor.u32 %v5054_v53, %v4047_v52 }
  0x21   :  { %509 = vmatpush.bf16.msra.mxu3 %v4084_v37  ;;  %v3971_v59 = vld [vmem:[#allocation4 + $0x44] sm:$0xf]  ;;  %v5036_v60 = vld [vmem:[#allocation4 + $0x50] sm:$0xf0]  ;;  %v4010_v61 = vor.u32 %v5045_v54, %v4009_v51  ;;  %v4076_v62 = vor.u32 %v5061_v56, %v4075_v55  ;;  %v4005_v63 = vld [vmem:[#allocation4 + $0x40] sm:$0xf] }
  0x22   :  { %v4043_v4 = vld [vmem:[#allocation4 + $0x6c] sm:$0xf]  ;;  %v5053_v5 = vld [vmem:[#allocation4 + $0x78] sm:$0xf0]  ;;  %v5044_v6 = vld [vmem:[#allocation4 + $0x4c] sm:$0xf0]  ;;  %v3972_v9 = vor.u32 %v5036_v60, %v3971_v59 }
  0x23   :  { %180 = vmatpush.bf16.msra.mxu0 %v3980_v45  ;;  %423 = vmatpush.bf16.msra.mxu2 %v4052_v46  ;;  %v4071_v7 = vld [vmem:[#allocation4 + $0x48] sm:$0xf]  ;;  %v5060_v8 = vld [vmem:[#allocation4 + $0x54] sm:$0xf0]  ;;  %v4044_v10 = vor.u32 %v5053_v5, %v4043_v4  ;;  %v3967_v11 = vld [vmem:[#allocation4 + $0x24] sm:$0xf]  ;;  %v4006_v13 = vor.u32 %v5044_v6, %v4005_v63 }
  0x24   :  { %300 = vmatpush.bf16.msra.mxu1 %v4014_v49  ;;  %v5035_v12 = vld [vmem:[#allocation4 + $0x30] sm:$0xf0]  ;;  %v4072_v14 = vor.u32 %v5060_v8, %v4071_v7  ;;  %v4001_v15 = vld [vmem:[#allocation4 + $0x20] sm:$0xf]  ;;  %v4039_v16 = vld [vmem:[#allocation4 + $0x4c] sm:$0xf] }
  0x25   :  { %510 = vmatpush.bf16.msra.mxu3 %v4080_v50  ;;  %v5052_v17 = vld [vmem:[#allocation4 + $0x58] sm:$0xf0]  ;;  %v5043_v18 = vld [vmem:[#allocation4 + $0x2c] sm:$0xf0]  ;;  %v4067_v19 = vld [vmem:[#allocation4 + $0x28] sm:$0xf]  ;;  %v3968_v21 = vor.u32 %v5035_v12, %v3967_v11 }
  0x26   :  { %v5059_v20 = vld [vmem:[#allocation4 + $0x34] sm:$0xf0]  ;;  %v4040_v22 = vor.u32 %v5052_v17, %v4039_v16  ;;  %v3963_v23 = vld [vmem:[#allocation4 + $0x4] sm:$0xf]  ;;  %v5034_v24 = vld [vmem:[#allocation4 + $0x10] sm:$0xf0]  ;;  %v4002_v25 = vor.u32 %v5043_v18, %v4001_v15 }
  0x27   :  { %181 = vmatpush.bf16.msra.mxu0 %v3976_v57  ;;  %424 = vmatpush.bf16.msra.mxu2 %v4048_v58  ;;  %v4068_v26 = vor.u32 %v5059_v20, %v4067_v19  ;;  %v3997_v27 = vld [vmem:[#allocation4] sm:$0xf]  ;;  %v4035_v28 = vld [vmem:[#allocation4 + $0x2c] sm:$0xf]  ;;  %v5051_v29 = vld [vmem:[#allocation4 + $0x38] sm:$0xf0]  ;;  %v3964_v33 = vor.u32 %v5034_v24, %v3963_v23 }
  0x28   :  { %301 = vmatpush.bf16.msra.mxu1 %v4010_v61  ;;  %v5042_v30 = vld [vmem:[#allocation4 + $0xc] sm:$0xf0]  ;;  %v4063_v31 = vld [vmem:[#allocation4 + $0x8] sm:$0xf]  ;;  %v5058_v32 = vld [vmem:[#allocation4 + $0x14] sm:$0xf0]  ;;  %v4036_v34 = vor.u32 %v5051_v29, %v4035_v28 }
  0x29   :  { %511 = vmatpush.bf16.msra.mxu3 %v4076_v62  ;;  %v3998_v35 = vor.u32 %v5042_v30, %v3997_v27  ;;  %v4064_v36 = vor.u32 %v5058_v32, %v4063_v31  ;;  %v4031_v37 = vld [vmem:[#allocation4 + $0xc] sm:$0xf]  ;;  %v5050_v38 = vld [vmem:[#allocation4 + $0x18] sm:$0xf0]  ;;  %v101_v41 = vld [vmem:[#allocation6] sm:$0xff]  ;;  %s5785_s1 = smov [#allocation13]  }
  0x2a   :  { %v4032_v40 = vor.u32 %v5050_v38, %v4031_v37  ;;  %v123_v42 = vrot.slane %v101_v41, 4  ;;  %v5853_v43 = vld [vmem:[#allocation6 + $0x10] sm:$0xff]  ;;  %v4125_v44 = vld [vmem:[#allocation4 + $0xe4] sm:$0xf]  ;;  %v4159_v46 = vld [vmem:[#allocation4 + $0xe0] sm:$0xf]  ;;  %v247_v50 = vunpack.c.l.bf16 %v101_v41 }
  0x2b   :  { %182 = vmatpush.bf16.msra.mxu0 %v3972_v9  ;;  %425 = vmatpush.bf16.msra.mxu2 %v4044_v10  ;;  %v5073_v45 = vld [vmem:[#allocation4 + $0xf0] sm:$0xf0]  ;;  %v5081_v0 = vld [vmem:[#allocation4 + $0xec] sm:$0xf0]  ;;  %v4193_v1 = vld [vmem:[#allocation4 + $0xec] sm:$0xf]  ;;  %v248_v24 = vunpack.c.l.bf16 %v5853_v43 }
  0x2c   :  { %302 = vmatpush.bf16.msra.mxu1 %v4006_v13  ;;  %v127_v47 = vunpack.c.l.bf16 %v123_v42  ;;  %v4126_v48 = vor.u32 %v5073_v45, %v4125_v44  ;;  %v5089_v49 = vld [vmem:[#allocation4 + $0xf8] sm:$0xf0]  ;;  %v4160_v51 = vor.u32 %v5081_v0, %v4159_v46  ;;  %v4225_v53 = vld [vmem:[#allocation4 + $0xe8] sm:$0xf]  ;;  %v5097_v54 = vld [vmem:[#allocation4 + $0xf4] sm:$0xf0] }
  0x2d   :  { %512 = vmatpush.bf16.msra.mxu3 %v4072_v14  ;;  %v4194_v52 = vor.u32 %v5089_v49, %v4193_v1  ;;  %v5855_v55 = vld [vmem:[#allocation6 + $0x8] sm:$0xff]  ;;  %v124_v56 = vrot.slane %v5853_v43, 4  ;;  %v4226_v57 = vor.u32 %v5097_v54, %v4225_v53  ;;  %v4121_v59 = vld [vmem:[#allocation4 + $0xc4] sm:$0xf]  ;;  %v5072_v60 = vld [vmem:[#allocation4 + $0xd0] sm:$0xf0] }
  0x2e   :  { %v4155_v61 = vld [vmem:[#allocation4 + $0xc0] sm:$0xf]  ;;  %v4122_v4 = vor.u32 %v5072_v60, %v4121_v59  ;;  %v5080_v5 = vld [vmem:[#allocation4 + $0xcc] sm:$0xf0]  ;;  %v4189_v6 = vld [vmem:[#allocation4 + $0xcc] sm:$0xf]  ;;  %v457_v16 = vunpack.c.l.bf16 %v5855_v55 }
  0x2f   :  { %183 = vmatpush.bf16.msra.mxu0 %v3968_v21  ;;  %426 = vmatpush.bf16.msra.mxu2 %v4040_v22  ;;  %v5088_v7 = vld [vmem:[#allocation4 + $0xd8] sm:$0xf0]  ;;  %v4156_v9 = vor.u32 %v5080_v5, %v4155_v61  ;;  %v4221_v11 = vld [vmem:[#allocation4 + $0xc8] sm:$0xf]  ;;  %v5096_v12 = vld [vmem:[#allocation4 + $0xd4] sm:$0xf0]  ;;  %v128_v19 = vunpack.c.l.bf16 %v124_v56 }
  0x30   :  { %303 = vmatpush.bf16.msra.mxu1 %v4002_v25  ;;  %v4190_v10 = vor.u32 %v5088_v7, %v4189_v6  ;;  %v4222_v14 = vor.u32 %v5096_v12, %v4221_v11  ;;  %v4117_v17 = vld [vmem:[#allocation4 + $0xa4] sm:$0xf]  ;;  %v5071_v18 = vld [vmem:[#allocation4 + $0xb0] sm:$0xf0]  ;;  %v4151_v21 = vld [vmem:[#allocation4 + $0xa0] sm:$0xf] }
  0x31   :  { %513 = vmatpush.bf16.msra.mxu3 %v4068_v26  ;;  %v4118_v20 = vor.u32 %v5071_v18, %v4117_v17  ;;  %v5079_v22 = vld [vmem:[#allocation4 + $0xac] sm:$0xf0]  ;;  %v4185_v23 = vld [vmem:[#allocation4 + $0xac] sm:$0xf]  ;;  %v5087_v26 = vld [vmem:[#allocation4 + $0xb8] sm:$0xf0] }
  0x32   :  { %v4152_v25 = vor.u32 %v5079_v22, %v4151_v21  ;;  %v4217_v27 = vld [vmem:[#allocation4 + $0xa8] sm:$0xf]  ;;  %v5095_v28 = vld [vmem:[#allocation4 + $0xb4] sm:$0xf0]  ;;  %v4186_v31 = vor.u32 %v5087_v26, %v4185_v23  ;;  %v4147_v37 = vld [vmem:[#allocation4 + $0x80] sm:$0xf] }
  0x33   :  { %184 = vmatpush.bf16.msra.mxu0 %v3964_v33  ;;  %427 = vmatpush.bf16.msra.mxu2 %v4036_v34  ;;  %v5860_v30 = vld [vmem:[#allocation6 + $0x18] sm:$0xff]  ;;  %v4218_v32 = vor.u32 %v5095_v28, %v4217_v27  ;;  %v5078_v41 = vld [vmem:[#allocation4 + $0x8c] sm:$0xf0]  ;;  %v4181_v42 = vld [vmem:[#allocation4 + $0x8c] sm:$0xf]  ;;  %s3917_s3 = sshll.u32 %s5785_s1, 4  ;;  %s3918_s3 = int_to_ptr.vmem [resolvable:$true] %s3917_s3 }
  0x34   :  { %304 = vmatpush.bf16.msra.mxu1 %v3998_v35  ;;  %v4113_v35 = vld [vmem:[#allocation4 + $0x84] sm:$0xf]  ;;  %v5086_v43 = vld [vmem:[#allocation4 + $0x98] sm:$0xf0]  ;;  %v4148_v46 = vor.u32 %v5078_v41, %v4147_v37  ;;  %v5094_v0 = vld [vmem:[#allocation4 + $0x94] sm:$0xf0]  ;;  %v458_v56 = vunpack.c.l.bf16 %v5860_v30 }
  0x35   :  { %514 = vmatpush.bf16.msra.mxu3 %v4064_v36  ;;  %v5070_v36 = vld [vmem:[#allocation4 + $0x90] sm:$0xf0]  ;;  %v4143_v61 = vld [vmem:[#allocation4 + $0x60] sm:$0xf]  ;;  %v5085_v5 = vld [vmem:[#allocation4 + $0x78] sm:$0xf0] }
  0x36   :  { %185 = vmatmul.bf16.vlgmr.msra.gmra.mxu0 %v100_v39  ;;  %v5069_v59 = vld [vmem:[#allocation4 + $0x70] sm:$0xf0]  ;;  %v4209_v6 = vld [vmem:[#allocation4 + $0x68] sm:$0xf]  ;;  %v4105_v11 = vld [vmem:[#allocation4 + $0x44] sm:$0xf] }
  0x37   :  { %305 = vmatmul.bf16.vlgmr.msra.gmra.mxu1 %v100_v39  ;;  %428 = vmatpush.bf16.msra.mxu2 %v4032_v40  ;;  %v4114_v40 = vor.u32 %v5070_v36, %v4113_v35  ;;  %v5068_v17 = vld [vmem:[#allocation4 + $0x50] sm:$0xf0]  ;;  %v4139_v18 = vld [vmem:[#allocation4 + $0x40] sm:$0xf]  ;;  %v5076_v23 = vld [vmem:[#allocation4 + $0x4c] sm:$0xf0] }
  0x38   :  { %515 = vmatmul.bf16.vlgmr.msra.gmra.mxu3 %v100_v39  ;;  %650 = vmatpush.bf16.msrb.mxu0 %v4126_v48  ;;  %v4213_v48 = vld [vmem:[#allocation4 + $0x88] sm:$0xf]  ;;  %v4106_v22 = vor.u32 %v5068_v17, %v4105_v11  ;;  %v4140_v26 = vor.u32 %v5076_v23, %v4139_v18  ;;  %v5091_v18 = vld [vmem:[#allocation4 + $0x34] sm:$0xf0]  ;;  %s3919_s21 = sshll.u32 %s7042_s5, 4  ;;  %s5786_s22 = smov [#allocation12]   ;;  %s3920_s21 = int_to_ptr.hbm [resolvable:$true] %s3919_s21 }
  0x39   :  { %770 = vmatpush.bf16.msrb.mxu1 %v4160_v51  ;;  %980 = vmatpush.bf16.msrb.mxu3 %v4226_v57  ;;  %v4214_v51 = vor.u32 %v5094_v0, %v4213_v48  ;;  %v4201_v17 = vld [vmem:[#allocation4 + $0x28] sm:$0xf]  ;;  %s3904_s23 = sshll.u32 %s5786_s22, 4  ;;  %s3906_s26 = sshll.u32 %s7041_s4, 4  ;;  %s3905_s23 = int_to_ptr.vmem [resolvable:$true] %s3904_s23  ;;  %s3907_s26 = int_to_ptr.hbm [resolvable:$true] %s3906_s26 }
  0x3a   :  { %429 = vmatmul.bf16.vlgmr.msra.gmra.mxu2 %v100_v39  ;;  %s5787_s27 = smov [#allocation15]   ;;  %s3932_s2 = sshll.u32 %s7043_s6, 4  ;;  %s3933_s2 = int_to_ptr.hbm [resolvable:$true] %s3932_s2 }
  0x3b   :  { %894 = vmatpush.bf16.msrb.mxu2 %v4194_v52  ;;  %s3930_s28 = sshll.u32 %s5787_s27, 4  ;;  %s5788_s4 = smov 64   ;;  %s3931_s28 = int_to_ptr.vmem [resolvable:$true] %s3930_s28 }
  0x3c   :  { %651 = vmatpush.bf16.msrb.mxu0 %v4122_v4  ;;  %s5789_s5 = smov 4  }
  0x3d   :  { %771 = vmatpush.bf16.msrb.mxu1 %v4156_v9  ;;  %981 = vmatpush.bf16.msrb.mxu3 %v4222_v14 }
  0x3f   :  { %895 = vmatpush.bf16.msrb.mxu2 %v4190_v10  ;;  %v5093_v10 = vld [vmem:[#allocation4 + $0x74] sm:$0xf0] }
  0x40   :  { %652 = vmatpush.bf16.msrb.mxu0 %v4118_v20 }
  0x41   :  { %772 = vmatpush.bf16.msrb.mxu1 %v4152_v25  ;;  %982 = vmatpush.bf16.msrb.mxu3 %v4218_v32 }
  0x43   :  { %896 = vmatpush.bf16.msrb.mxu2 %v4186_v31 }
  0x44   :  { %653 = vmatpush.bf16.msrb.mxu0 %v4114_v40  ;;  %v5084_v40 = vld [vmem:[#allocation4 + $0x58] sm:$0xf0] }
  0x45   :  { %773 = vmatpush.bf16.msrb.mxu1 %v4148_v46  ;;  %983 = vmatpush.bf16.msrb.mxu3 %v4214_v51 }
  0xb3   :  { %v186_v58 = vpop.f32.mrf.mxu0 }
  0xb4   :  { %v187_v62 = vadd.f32 %v186_v58, %v127_v47  ;;  %v306_v63 = vpop.f32.mrf.mxu1  ;;  %v4182_v47 = vor.u32 %v5086_v43, %v4181_v42  ;;  %v4109_v58 = vld [vmem:[#allocation4 + $0x64] sm:$0xf] }
  0xb5   :  { %v307_v8 = vadd.f32 %v306_v63, %v247_v50  ;;  %v367_v50 = vrot.slane %v5855_v55, 4  ;;  %v4177_v63 = vld [vmem:[#allocation4 + $0x6c] sm:$0xf]  ;;  %v4110_v9 = vor.u32 %v5069_v59, %v4109_v58 }
  0xb6   :  { %v3993_v13 = vmul.f32 -1.442695, %v187_v62  ;;  %897 = vmatpush.bf16.msrb.mxu2 %v4182_v47  ;;  %v5077_v62 = vld [vmem:[#allocation4 + $0x6c] sm:$0xf0] }
  0xb7   :  { %v4027_v15 = vmul.f32 -1.442695, %v307_v8  ;;  %v371_v55 = vunpack.c.l.bf16 %v367_v50  ;;  %v368_v8 = vrot.slane %v5860_v30, 4  ;;  %v4144_v14 = vor.u32 %v5077_v62, %v4143_v61  ;;  %654 = vmatpush.bf16.msrb.mxu0 %v4110_v9  ;;  %v4101_v61 = vld [vmem:[#allocation4 + $0x24] sm:$0xf] }
  0xb8   :  { %5343 = vpow2.f32 %v3993_v13  ;;  %v5067_v62 = vld [vmem:[#allocation4 + $0x30] sm:$0xf0] }
  0xb9   :  { %5345 = vpow2.f32 %v4027_v15  ;;  %v4178_v15 = vor.u32 %v5085_v5, %v4177_v63  ;;  %774 = vmatpush.bf16.msrb.mxu1 %v4144_v14 }
  0xbb   :  { %v516_v29 = vpop.f32.mrf.mxu3  ;;  %v188_v34 = vpop.f32.mrf.mxu0  ;;  %898 = vmatpush.bf16.msrb.mxu2 %v4178_v15  ;;  %655 = vmatpush.bf16.msrb.mxu0 %v4106_v22 }
  0xbc   :  { %v517_v33 = vadd.f32 %v516_v29, %v457_v16  ;;  %v189_v38 = vadd.f32 %v188_v34, %v128_v19  ;;  %v308_v39 = vpop.f32.mrf.mxu1  ;;  %v4210_v16 = vor.u32 %v5093_v10, %v4209_v6  ;;  %v372_v29 = vunpack.c.l.bf16 %v368_v8  ;;  %v4135_v6 = vld [vmem:[#allocation4 + $0x20] sm:$0xf] }
  0xbd   :  { %v309_v45 = vadd.f32 %v308_v39, %v248_v24  ;;  %v430_v7 = vpop.f32.mrf.mxu2  ;;  %775 = vmatpush.bf16.msrb.mxu1 %v4140_v26  ;;  %v4173_v39 = vld [vmem:[#allocation4 + $0x4c] sm:$0xf]  ;;  %v5066_v26 = vld [vmem:[#allocation4 + $0x10] sm:$0xf0] }
  0xbe   :  { %v4093_v44 = vmul.f32 -1.442695, %v517_v33  ;;  %v5344_v1 = vpop.eup %5343  ;;  %v3994_v49 = vmul.f32 -1.442695, %v189_v38  ;;  %v431_v21 = vadd.f32 %v430_v7, %v371_v55  ;;  %984 = vmatpush.bf16.msrb.mxu3 %v4210_v16  ;;  %v4174_v50 = vor.u32 %v5084_v40, %v4173_v39  ;;  %v4205_v55 = vld [vmem:[#allocation4 + $0x48] sm:$0xf] }
  0xbf   :  { %v5346_v52 = vpop.eup %5345  ;;  %v5863_v53 = vadd.f32 1.0, %v5344_v1  ;;  %v4028_v54 = vmul.f32 -1.442695, %v309_v45  ;;  %v5075_v7 = vld [vmem:[#allocation4 + $0x2c] sm:$0xf0]  ;;  %v4202_v40 = vor.u32 %v5091_v18, %v4201_v17 }
  0xc0   :  { %5347 = vpow2.f32 %v4093_v44  ;;  %v5866_v57 = vadd.f32 1.0, %v5346_v52  ;;  %899 = vmatpush.bf16.msrb.mxu2 %v4174_v50  ;;  %v4197_v45 = vld [vmem:[#allocation4 + $0x8] sm:$0xf] }
  0xc1   :  { %5349 = vpow2.f32 %v3994_v49  ;;  %v210_v31 = vand.u32 2147483648, %v5863_v53  ;;  %v208_v33 = vand.u32 2147483647, %v5863_v53  ;;  %vm204_vm0 = vweird.f32 %v5863_v53 }
  0xc2   :  { %5351 = vrcp.f32 %v5863_v53  ;;  %v328_v36 = vand.u32 2147483647, %v5866_v57  ;;  %vm324_vm1 = vweird.f32 %v5866_v57  ;;  %v330_v38 = vand.u32 2147483648, %v5866_v57 }
  0xc3   :  { %5353 = vrcp.f32 %v5866_v57  ;;  %v518_v60 = vpop.f32.mrf.mxu3  ;;  %v211_v44 = vor.u32 1.1754944e-38, %v210_v31  ;;  %vm5897_vm3 = vcmp.eq.f32.partialorder %v208_v33, 8.507059e+37  ;;  %v5074_v31 = vld [vmem:[#allocation4 + $0xc] sm:$0xf0] }
  0xc4   :  { %5355 = vpow2.f32 %v4028_v54  ;;  %v519_v4 = vadd.f32 %v518_v60, %v458_v56  ;;  %vm5922_vm6 = vcmp.eq.f32.partialorder %v328_v36, 8.507059e+37  ;;  %v331_v59 = vor.u32 1.1754944e-38, %v330_v38  ;;  %v5092_v60 = vld [vmem:[#allocation4 + $0x54] sm:$0xf0]  ;;  %v5082_v38 = vld [vmem:[#allocation4 + $0x18] sm:$0xf0] }
  0xc5   :  { %v432_v49 = vpop.f32.mrf.mxu2 }
  0xc6   :  { %v5348_v12 = vpop.eup %5347  ;;  %v4094_v13 = vmul.f32 -1.442695, %v519_v4  ;;  %v433_v11 = vadd.f32 %v432_v49, %v372_v29  ;;  %v4102_v29 = vor.u32 %v5067_v62, %v4101_v61 }
  0xc7   :  { %v5350_v19 = vpop.eup %5349  ;;  %v5871_v20 = vadd.f32 1.0, %v5348_v12  ;;  %v4169_v12 = vld [vmem:[#allocation4 + $0x2c] sm:$0xf] }
  0xc8   :  { %v5873_v24 = vpop.eup %5351  ;;  %v5875_v25 = vadd.f32 1.0, %v5350_v19  ;;  %5357 = vpow2.f32 %v4094_v13  ;;  %v5083_v13 = vld [vmem:[#allocation4 + $0x38] sm:$0xf0]  ;;  %656 = vmatpush.bf16.msrb.mxu0 %v4102_v29 }
  0xc9   :  { %v5877_v27 = vpop.eup %5353  ;;  %v200_v28 = vmul.f32 %v5873_v24, %v5863_v53  ;;  %5359 = vrcp.f32 %v5871_v20  ;;  %vm205_vm2 = vweird.f32 %v5873_v24  ;;  %v4170_v36 = vor.u32 %v5083_v13, %v4169_v12 }
  0xca   :  { %v5356_v30 = vpop.eup %5355  ;;  %v320_v32 = vmul.f32 %v5877_v27, %v5866_v57  ;;  %5361 = vrcp.f32 %v5875_v25  ;;  %v225_v42 = vand.u32 2147483648, %v5875_v25  ;;  %vm325_vm4 = vweird.f32 %v5877_v27  ;;  %vm5917_vm5 = vmor %vm204_vm0, %vm205_vm2 }
  0xcb   :  { %v201_v34 = vsub.f32 1.0, %v200_v28  ;;  %v5887_v35 = vadd.f32 1.0, %v5356_v30  ;;  %5363 = vtanh.f32 %v431_v21  ;;  %v223_v1 = vand.u32 2147483647, %v5875_v25  ;;  %vm326_vm7 = vmor %vm324_vm1, %vm325_vm4  ;;  %v4131_v30 = vld [vmem:[#allocation4] sm:$0xf]  ;;  %900 = vmatpush.bf16.msrb.mxu2 %v4170_v36 }
  0xcc   :  { %v321_v37 = vsub.f32 1.0, %v320_v32  ;;  %v226_v53 = vor.u32 1.1754944e-38, %v225_v42  ;;  %vm219_vm8 = vweird.f32 %v5875_v25  ;;  %v4206_v28 = vor.u32 %v5092_v60, %v4205_v55 }
  0xcd   :  { %v202_v41 = vmul.f32 %v5873_v24, %v201_v34  ;;  %5365 = vrcp.f32 %v5887_v35  ;;  %v343_v10 = vand.u32 2147483647, %v5887_v35  ;;  %vm5945_vm9 = vcmp.eq.f32.partialorder %v223_v1, 8.507059e+37 }
  0xce   :  { %v5358_v43 = vpop.eup %5357  ;;  %v322_v46 = vmul.f32 %v5877_v27, %v321_v37  ;;  %v345_v33 = vand.u32 2147483648, %v5887_v35  ;;  %v4136_v34 = vor.u32 %v5075_v7, %v4135_v6  ;;  %v4165_v37 = vld [vmem:[#allocation4 + $0xc] sm:$0xf]  ;;  %985 = vmatpush.bf16.msrb.mxu3 %v4206_v28  ;;  %v4132_v49 = vor.u32 %v5074_v31, %v4131_v30 }
  0xcf   :  { %v5903_v47 = vpop.eup %5359  ;;  %v203_v48 = vadd.f32 %v5873_v24, %v202_v41  ;;  %v5906_v0 = vadd.f32 1.0, %v5358_v43  ;;  %v4166_v50 = vor.u32 %v5082_v38, %v4165_v37  ;;  %vm339_vm13 = vweird.f32 %v5887_v35  ;;  %v5994_v31 = vld [vmem:[#allocation6 + $0x28] sm:$0xff]  ;;  %v5113_v37 = vld [vmem:[#allocation4 + $0xec] sm:$0xf0] }
  0xd0   :  { %v5909_v51 = vpop.eup %5361  ;;  %v5913_v52 = vmul.f32 %v5903_v47, %v5871_v20  ;;  %v323_v56 = vadd.f32 %v5877_v27, %v322_v46  ;;  %776 = vmatpush.bf16.msrb.mxu1 %v4136_v34  ;;  %v5090_v46 = vld [vmem:[#allocation4 + $0x14] sm:$0xf0]  ;;  %vm344_vm15 = vcmp.eq.f32.partialorder %v343_v10, 8.507059e+37  ;;  %vm535_vm0 = vweird.f32 %v5903_v47  ;;  %v4293_v34 = vld [vmem:[#allocation4 + $0xe0] sm:$0xf] }
  0xd1   :  { %v5364_v63 = vpop.eup %5363  ;;  %v215_v4 = vmul.f32 %v5909_v51, %v5875_v25  ;;  %v207_v5 = vsel %vm5917_vm5, %v5873_v24, %v203_v48  ;;  %5367 = vrcp.f32 %v5906_v0  ;;  %v4097_v24 = vld [vmem:[#allocation4 + $0x4] sm:$0xf]  ;;  %vm220_vm10 = vweird.f32 %v5909_v51  ;;  %901 = vmatpush.bf16.msrb.mxu2 %v4166_v50  ;;  %v4327_v38 = vld [vmem:[#allocation4 + $0xec] sm:$0xf] }
  0xd2   :  { %v212_v8 = vsel %vm5897_vm3, %v211_v44, %v207_v5  ;;  %v327_v9 = vsel %vm326_vm7, %v5877_v27, %v323_v56  ;;  %v531_v19 = vsub.f32 1.0, %v5913_v52  ;;  %5369 = vtanh.f32 %v433_v11  ;;  %vm221_vm11 = vmor %vm219_vm8, %vm220_vm10  ;;  %986 = vmatpush.bf16.msrb.mxu3 %v4202_v40  ;;  %v4255_v50 = vld [vmem:[#allocation4 + $0xc4] sm:$0xf] }
  0xd3   :  { %v5940_v14 = vpop.eup %5365  ;;  %v216_v15 = vsub.f32 1.0, %v215_v4  ;;  %v332_v57 = vsel %vm5922_vm6, %v331_v59, %v327_v9  ;;  %v229_v22 = vmul.f32 %v212_v8, %v5847_v2  ;;  %v4098_v41 = vor.u32 %v5066_v26, %v4097_v24  ;;  %v570_v24 = vld [vmem:[#allocation6 + $0x30] sm:$0xff] }
  0xd4   :  { %v335_v21 = vmul.f32 %v5940_v14, %v5887_v35  ;;  %v437_v23 = vmul.f32 %v5364_v63, %v332_v57  ;;  %vm340_vm12 = vweird.f32 %v5940_v14  ;;  %v532_v48 = vmul.f32 %v5903_v47, %v531_v19  ;;  %777 = vmatpush.bf16.msrb.mxu1 %v4132_v49 }
  0xd5   :  { %v217_v27 = vmul.f32 %v5909_v51, %v216_v15  ;;  %vm341_vm14 = vmor %vm339_vm13, %vm340_vm12  ;;  %v346_v56 = vor.u32 1.1754944e-38, %v345_v33  ;;  %657 = vmatpush.bf16.msrb.mxu0 %v4098_v41  ;;  %v4198_v58 = vor.u32 %v5090_v46, %v4197_v45  ;;  %v540_v62 = vand.u32 2147483648, %v5871_v20  ;;  %v5105_v33 = vld [vmem:[#allocation4 + $0xf0] sm:$0xf0]  ;;  %v5129_v46 = vld [vmem:[#allocation4 + $0xf4] sm:$0xf0] }
  0xd6   :  { %v336_v32 = vsub.f32 1.0, %v335_v21  ;;  %v5959_v42 = vadd.f32 %v437_v23, %v229_v22  ;;  %v533_v61 = vadd.f32 %v5903_v47, %v532_v48  ;;  %vm534_vm1 = vweird.f32 %v5871_v20 }
  0xd7   :  { %v5956_v39 = vpop.eup %5367  ;;  %v218_v2 = vadd.f32 %v5909_v51, %v217_v27  ;;  %987 = vmatpush.bf16.msrb.mxu3 %v4198_v58  ;;  %vm536_vm2 = vmor %vm534_vm1, %vm535_vm0  ;;  %v541_v7 = vor.u32 1.1754944e-38, %v540_v62  ;;  %v555_v8 = vand.u32 2147483648, %v5906_v0  ;;  %vm549_vm4 = vweird.f32 %v5906_v0  ;;  %v4323_v58 = vld [vmem:[#allocation4 + $0xcc] sm:$0xf] }
  0xd8   :  { %v545_v43 = vmul.f32 %v5956_v39, %v5906_v0  ;;  %v337_v44 = vmul.f32 %v5940_v14, %v336_v32  ;;  %5371 = vtanh.f32 %v5959_v42  ;;  %v5370_v55 = vpop.eup %5369  ;;  %vm550_vm3 = vweird.f32 %v5956_v39  ;;  %v4259_v32 = vld [vmem:[#allocation4 + $0xe4] sm:$0xf] }
  0xd9   :  { %v222_v1 = vsel %vm221_vm11, %v5909_v51, %v218_v2  ;;  %vm551_vm6 = vmor %vm549_vm4, %vm550_vm3  ;;  %v556_v12 = vor.u32 1.1754944e-38, %v555_v8  ;;  %v591_v28 = vrot.slane %v570_v24, 4  ;;  %v4260_v36 = vor.u32 %v5105_v33, %v4259_v32  ;;  %v4251_v8 = vld [vmem:[#allocation4 + $0xa4] sm:$0xf]  ;;  %v4281_v32 = vld [vmem:[#allocation4 + $0x80] sm:$0xf] }
  0xda   :  { %v546_v52 = vsub.f32 1.0, %v545_v43  ;;  %v227_v54 = vsel %vm5945_vm9, %v226_v53, %v222_v1  ;;  %v338_v25 = vadd.f32 %v5940_v14, %v337_v44  ;;  %v537_v53 = vsel %vm536_vm2, %v5903_v47, %v533_v61  ;;  %v4359_v44 = vld [vmem:[#allocation4 + $0xe8] sm:$0xf]  ;;  %v5128_v61 = vld [vmem:[#allocation4 + $0xd4] sm:$0xf0] }
  0xdb   :  { %v230_v59 = vmul.f32 %v227_v54, %v5849_v3  ;;  %v538_v3 = vand.u32 2147483647, %v5871_v20  ;;  %v553_v20 = vand.u32 2147483647, %v5906_v0  ;;  %v568_v0 = vld [vmem:[#allocation6 + $0x20] sm:$0xff]  ;;  %v4294_v41 = vor.u32 %v5113_v37, %v4293_v34  ;;  %1124 = vmatpush.bf16.msra.mxu0 %v4260_v36 }
  0xdc   :  { %v342_v51 = vsel %vm341_vm14, %v5940_v14, %v338_v25  ;;  %v547_v60 = vmul.f32 %v5956_v39, %v546_v52  ;;  %v590_v21 = vrot.slane %v568_v0, 4  ;;  %v720_v23 = vunpack.c.l.bf16 %v568_v0  ;;  %v5104_v52 = vld [vmem:[#allocation4 + $0xd0] sm:$0xf0]  ;;  %v4289_v54 = vld [vmem:[#allocation4 + $0xc0] sm:$0xf]  ;;  %v571_v0 = vld [vmem:[#allocation6 + $0x38] sm:$0xff] }
  0xdd   :  { %v347_v35 = vsel %vm344_vm15, %v346_v56, %v342_v51  ;;  %vm539_vm5 = vcmp.eq.f32.partialorder %v538_v3, 8.507059e+37  ;;  %vm554_vm7 = vcmp.eq.f32.partialorder %v553_v20, 8.507059e+37  ;;  %v930_v45 = vunpack.c.l.bf16 %v5994_v31  ;;  %1244 = vmatpush.bf16.msra.mxu1 %v4294_v41  ;;  %v5112_v56 = vld [vmem:[#allocation4 + $0xcc] sm:$0xf0]  ;;  %v5103_v20 = vld [vmem:[#allocation4 + $0xb0] sm:$0xf0] }
  0xde   :  { %v438_v63 = vmul.f32 %v5370_v55, %v347_v35  ;;  %v548_v5 = vadd.f32 %v5956_v39, %v547_v60  ;;  %v5372_v6 = vpop.eup %5371  ;;  %v542_v9 = vsel %vm539_vm5, %v541_v7, %v537_v53  ;;  %v594_v22 = vunpack.c.l.bf16 %v590_v21  ;;  %v4355_v35 = vld [vmem:[#allocation4 + $0xc8] sm:$0xf]  ;;  %v5110_v33 = vld [vmem:[#allocation4 + $0x8c] sm:$0xf0]  ;;  %v4315_v37 = vld [vmem:[#allocation4 + $0x8c] sm:$0xf] }
  0xdf   :  { %v561_v11 = vmul.f32 %v5372_v6, %v542_v9  ;;  %v595_v48 = vunpack.c.l.bf16 %v591_v28  ;;  %v721_v1 = vunpack.c.l.bf16 %v570_v24  ;;  %v4360_v49 = vor.u32 %v5129_v46, %v4359_v44  ;;  %v4285_v9 = vld [vmem:[#allocation4 + $0xa0] sm:$0xf]  ;;  %v4247_v28 = vld [vmem:[#allocation4 + $0x84] sm:$0xf]  ;;  %v4347_v41 = vld [vmem:[#allocation4 + $0x88] sm:$0xf] }
  0xe0   :  { %v5984_v4 = vadd.f32 %v438_v63, %v230_v59  ;;  %v552_v10 = vsel %vm551_vm6, %v5956_v39, %v548_v5  ;;  %v5121_v39 = vld [vmem:[#allocation4 + $0xf8] sm:$0xf0]  ;;  %v4256_v25 = vor.u32 %v5104_v52, %v4255_v50  ;;  %v4290_v55 = vor.u32 %v5112_v56, %v4289_v54  ;;  %v4277_v50 = vld [vmem:[#allocation4 + $0x60] sm:$0xf] }
  0xe1   :  { %v557_v13 = vsel %vm554_vm7, %v556_v12, %v552_v10  ;;  %v563_v15 = vpack.c.bf16 %v561_v11, %v561_v11  ;;  %v4328_v43 = vor.u32 %v5121_v39, %v4327_v38  ;;  %v5120_v59 = vld [vmem:[#allocation4 + $0xd8] sm:$0xf0]  ;;  %1454 = vmatpush.bf16.msra.mxu3 %v4360_v49  ;;  %v840_v62 = vrot.slane %v5994_v31, 4  ;;  %v5111_v12 = vld [vmem:[#allocation4 + $0xac] sm:$0xf0] }
  0xe2   :  { %5373 = vtanh.f32 %v5984_v4  ;;  %v4324_v60 = vor.u32 %v5120_v59, %v4323_v58  ;;  %1125 = vmatpush.bf16.msra.mxu0 %v4256_v25  ;;  %v4356_v5 = vor.u32 %v5128_v61, %v4355_v35  ;;  %1245 = vmatpush.bf16.msra.mxu1 %v4290_v55  ;;  %v841_v36 = vrot.slane %v571_v0, 4  ;;  %v5118_v38 = vld [vmem:[#allocation4 + $0x98] sm:$0xf0]  ;;  %v5101_v49 = vld [vmem:[#allocation4 + $0x70] sm:$0xf0] }
  0xe3   :  { %v598_v17 = vunpack.c.l.b16 %v563_v15  ;;  %1368 = vmatpush.bf16.msra.mxu2 %v4328_v43  ;;  %v5126_v43 = vld [vmem:[#allocation4 + $0x94] sm:$0xf0]  ;;  %v4316_v46 = vor.u32 %v5118_v38, %v4315_v37  ;;  %v5109_v58 = vld [vmem:[#allocation4 + $0x6c] sm:$0xf0] }
  0xe4   :  { %v845_v55 = vunpack.c.l.bf16 %v841_v36  ;;  %v4278_v35 = vor.u32 %v5109_v58, %v4277_v50 }
  0xe5   :  { %1455 = vmatpush.bf16.msra.mxu3 %v4356_v5 }
  0xe7   :  { %1369 = vmatpush.bf16.msra.mxu2 %v4324_v60 }
  0xe8   :  { %v5374_v47 = vpop.eup %5373 }
  0xe9   :  { %v562_v14 = vmul.f32 %v5374_v47, %v557_v13  ;;  %v4319_v47 = vld [vmem:[#allocation4 + $0xac] sm:$0xf] }
  0xeb   :  { %v564_v57 = vpack.c.bf16 %v562_v14, %v562_v14  ;;  %v5293_v16 = vpack.c.bf16 %v562_v14, %v561_v11  ;;  %v4252_v11 = vor.u32 %v5103_v20, %v4251_v8  ;;  %v4311_v20 = vld [vmem:[#allocation4 + $0x6c] sm:$0xf] }
  0xed   :  { %5294 = vst [vmem:[#allocation12] sm:$0xff] %v5293_v16   ;;  %v599_v18 = vunpack.c.l.b16 %v564_v57  ;;  %v4286_v57 = vor.u32 %v5111_v12, %v4285_v9  ;;  %v5119_v16 = vld [vmem:[#allocation4 + $0xb8] sm:$0xf0]  ;;  %1126 = vmatpush.bf16.msra.mxu0 %v4252_v11  ;;  %v4343_v12 = vld [vmem:[#allocation4 + $0x68] sm:$0xf] }
  0xee   :  { %v4320_v21 = vor.u32 %v5119_v16, %v4319_v47  ;;  %v5117_v9 = vld [vmem:[#allocation4 + $0x78] sm:$0xf0]  ;;  %v5125_v47 = vld [vmem:[#allocation4 + $0x74] sm:$0xf0] }
  0xef   :  { %v600_v19 = vpack.c.b16 %v599_v18, %v598_v17  ;;  %1246 = vmatpush.bf16.msra.mxu1 %v4286_v57  ;;  %v5100_v57 = vld [vmem:[#allocation4 + $0x50] sm:$0xf0] }
  0xf0   :  { %1370 = vmatpush.bf16.msra.mxu2 %v4320_v21 }
  0xf1   :  { %658 = vmatmul.bf16.vlgmr.msrb.gmra.mxu0 %v600_v19  ;;  %778 = vmatmul.bf16.vlgmr.msrb.gmra.mxu1 %v600_v19 }
  0xf2   :  { %902 = vmatmul.bf16.vlgmr.msrb.gmra.mxu2 %v600_v19  ;;  %988 = vmatmul.bf16.vlgmr.msrb.gmra.mxu3 %v600_v19 }
  0xf4   :  { %1371 = vmatpush.bf16.msra.mxu2 %v4316_v46  ;;  %v5124_v46 = vld [vmem:[#allocation4 + $0x54] sm:$0xf0] }
 0x16e   :  { %v659_v26 = vpop.f32.mrf.mxu0  ;;  %v779_v27 = vpop.f32.mrf.mxu1 }
 0x16f   :  { %v660_v29 = vadd.f32 %v659_v26, %v594_v22  ;;  %v780_v30 = vadd.f32 %v779_v27, %v720_v23  ;;  %v4351_v22 = vld [vmem:[#allocation4 + $0xa8] sm:$0xf]  ;;  %v5127_v23 = vld [vmem:[#allocation4 + $0xb4] sm:$0xf0]  ;;  %v931_v26 = vunpack.c.l.bf16 %v571_v0 }
 0x170   :  { %v4352_v27 = vor.u32 %v5127_v23, %v4351_v22 }
 0x171   :  { %v4127_v2 = vmul.f32 -1.442695, %v660_v29  ;;  %v4161_v40 = vmul.f32 -1.442695, %v780_v30  ;;  %v5102_v29 = vld [vmem:[#allocation4 + $0x90] sm:$0xf0]  ;;  %v844_v30 = vunpack.c.l.bf16 %v840_v62 }
 0x172   :  { %1456 = vmatpush.bf16.msra.mxu3 %v4352_v27  ;;  %v4344_v27 = vor.u32 %v5125_v47, %v4343_v12  ;;  %v4265_v47 = vld [vmem:[#allocation4] sm:$0xf] }
 0x173   :  { %5375 = vpow2.f32 %v4127_v2 }
 0x174   :  { %5377 = vpow2.f32 %v4161_v40  ;;  %v4248_v40 = vor.u32 %v5102_v29, %v4247_v28  ;;  %v4273_v29 = vld [vmem:[#allocation4 + $0x40] sm:$0xf] }
 0x175   :  { %v989_v51 = vpop.f32.mrf.mxu3  ;;  %v903_v19 = vpop.f32.mrf.mxu2 }
 0x176   :  { %v990_v63 = vadd.f32 %v989_v51, %v930_v45  ;;  %v661_v3 = vpop.f32.mrf.mxu0  ;;  %v781_v53 = vpop.f32.mrf.mxu1  ;;  %v4282_v45 = vor.u32 %v5110_v33, %v4281_v32  ;;  %v904_v54 = vadd.f32 %v903_v19, %v844_v30  ;;  %1127 = vmatpush.bf16.msra.mxu0 %v4248_v40  ;;  %v5108_v30 = vld [vmem:[#allocation4 + $0x4c] sm:$0xf0] }
 0x177   :  { %v662_v6 = vadd.f32 %v661_v3, %v595_v48  ;;  %v782_v7 = vadd.f32 %v781_v53, %v721_v1  ;;  %v4348_v48 = vor.u32 %v5126_v43, %v4347_v41  ;;  %v4243_v1 = vld [vmem:[#allocation4 + $0x64] sm:$0xf]  ;;  %v4307_v43 = vld [vmem:[#allocation4 + $0x4c] sm:$0xf]  ;;  %v4274_v50 = vor.u32 %v5108_v30, %v4273_v29 }
 0x178   :  { %v4227_v10 = vmul.f32 -1.442695, %v990_v63  ;;  %v4244_v56 = vor.u32 %v5101_v49, %v4243_v1  ;;  %1247 = vmatpush.bf16.msra.mxu1 %v4282_v45  ;;  %v4339_v45 = vld [vmem:[#allocation4 + $0x48] sm:$0xf] }
 0x179   :  { %v5376_v13 = vpop.eup %5375  ;;  %v4128_v14 = vmul.f32 -1.442695, %v662_v6  ;;  %v4162_v15 = vmul.f32 -1.442695, %v782_v7  ;;  %1457 = vmatpush.bf16.msra.mxu3 %v4348_v48  ;;  %v4231_v7 = vld [vmem:[#allocation4 + $0x4] sm:$0xf]  ;;  %v4340_v12 = vor.u32 %v5124_v46, %v4339_v45 }
 0x17a   :  { %v5378_v17 = vpop.eup %5377  ;;  %v5998_v18 = vadd.f32 1.0, %v5376_v13  ;;  %5379 = vpow2.f32 %v4227_v10  ;;  %1128 = vmatpush.bf16.msra.mxu0 %v4244_v56  ;;  %v4423_v45 = vld [vmem:[#allocation4 + $0xc0] sm:$0xf] }
 0x17b   :  { %v6000_v24 = vadd.f32 1.0, %v5378_v17  ;;  %5381 = vpow2.f32 %v4128_v14 }
 0x17c   :  { %5383 = vrcp.f32 %v5998_v18  ;;  %v683_v34 = vand.u32 2147483648, %v5998_v18  ;;  %v681_v39 = vand.u32 2147483647, %v5998_v18  ;;  %vm677_vm9 = vweird.f32 %v5998_v18  ;;  %1248 = vmatpush.bf16.msra.mxu1 %v4278_v35  ;;  %v4269_v35 = vld [vmem:[#allocation4 + $0x20] sm:$0xf] }
 0x17d   :  { %5385 = vrcp.f32 %v6000_v24  ;;  %v991_v31 = vpop.f32.mrf.mxu3  ;;  %v801_v63 = vand.u32 2147483647, %v6000_v24  ;;  %v803_v3 = vand.u32 2147483648, %v6000_v24  ;;  %v905_v8 = vpop.f32.mrf.mxu2  ;;  %vm797_vm10 = vweird.f32 %v6000_v24  ;;  %1458 = vmatpush.bf16.msra.mxu3 %v4344_v27  ;;  %v4331_v27 = vld [vmem:[#allocation4 + $0x8] sm:$0xf] }
 0x17e   :  { %5387 = vpow2.f32 %v4162_v15  ;;  %v992_v2 = vadd.f32 %v991_v31, %v931_v26  ;;  %v684_v5 = vor.u32 1.1754944e-38, %v683_v34  ;;  %vm6021_vm8 = vcmp.eq.f32.partialorder %v681_v39, 8.507059e+37  ;;  %v4239_v15 = vld [vmem:[#allocation4 + $0x44] sm:$0xf] }
 0x17f   :  { %v906_v17 = vadd.f32 %v905_v8, %v845_v55  ;;  %vm6036_vm13 = vcmp.eq.f32.partialorder %v801_v63, 8.507059e+37  ;;  %v804_v21 = vor.u32 1.1754944e-38, %v803_v3  ;;  %v4312_v26 = vor.u32 %v5117_v9, %v4311_v20  ;;  %v4303_v3 = vld [vmem:[#allocation4 + $0x2c] sm:$0xf]  ;;  %v5098_v8 = vld [vmem:[#allocation4 + $0x10] sm:$0xf0] }
 0x180   :  { %v5380_v44 = vpop.eup %5379  ;;  %v4228_v60 = vmul.f32 -1.442695, %v992_v2  ;;  %v4240_v28 = vor.u32 %v5100_v57, %v4239_v15  ;;  %1249 = vmatpush.bf16.msra.mxu1 %v4274_v50  ;;  %v4232_v30 = vor.u32 %v5098_v8, %v4231_v7  ;;  %v1044_v8 = vld [vmem:[#allocation6 + $0x50] sm:$0xff] }
 0x181   :  { %v5382_v52 = vpop.eup %5381  ;;  %v6006_v25 = vadd.f32 1.0, %v5380_v44  ;;  %1372 = vmatpush.bf16.msra.mxu2 %v4312_v26  ;;  %v5116_v44 = vld [vmem:[#allocation4 + $0x58] sm:$0xf0]  ;;  %1459 = vmatpush.bf16.msra.mxu3 %v4340_v12 }
 0x182   :  { %v6008_v59 = vpop.eup %5383  ;;  %v6010_v51 = vadd.f32 1.0, %v5382_v52  ;;  %1129 = vmatpush.bf16.msra.mxu0 %v4240_v28  ;;  %v4235_v52 = vld [vmem:[#allocation4 + $0x24] sm:$0xf]  ;;  %v5114_v26 = vld [vmem:[#allocation4 + $0x18] sm:$0xf0] }
 0x183   :  { %v6012_v61 = vpop.eup %5385  ;;  %v673_v62 = vmul.f32 %v6008_v59, %v5998_v18  ;;  %5389 = vrcp.f32 %v6006_v25  ;;  %vm678_vm11 = vweird.f32 %v6008_v59  ;;  %v5122_v28 = vld [vmem:[#allocation4 + $0x14] sm:$0xf0] }
 0x184   :  { %v5388_v53 = vpop.eup %5387  ;;  %v793_v6 = vmul.f32 %v6012_v61, %v6000_v24  ;;  %5391 = vrcp.f32 %v6010_v51  ;;  %v698_v14 = vand.u32 2147483648, %v6010_v51  ;;  %vm798_vm12 = vweird.f32 %v6012_v61  ;;  %vm6049_vm14 = vmor %vm677_vm9, %vm678_vm11 }
 0x185   :  { %v674_v10 = vsub.f32 1.0, %v673_v62  ;;  %5393 = vtanh.f32 %v904_v54  ;;  %v6027_v11 = vadd.f32 1.0, %v5388_v53  ;;  %v696_v37 = vand.u32 2147483647, %v6010_v51  ;;  %vm6066_vm15 = vmor %vm797_vm10, %vm798_vm12  ;;  %v5099_v54 = vld [vmem:[#allocation4 + $0x30] sm:$0xf0] }
 0x186   :  { %v794_v13 = vsub.f32 1.0, %v793_v6  ;;  %5395 = vpow2.f32 %v4228_v60  ;;  %v6056_v36 = vor.u32 1.1754944e-38, %v698_v14  ;;  %v5107_v62 = vld [vmem:[#allocation4 + $0x2c] sm:$0xf0]  ;;  %v5115_v53 = vld [vmem:[#allocation4 + $0x38] sm:$0xf0]  ;;  %vm692_vm1 = vweird.f32 %v6010_v51 }
 0x187   :  { %v675_v16 = vmul.f32 %v6008_v59, %v674_v10  ;;  %5397 = vrcp.f32 %v6027_v11  ;;  %v816_v40 = vand.u32 2147483647, %v6027_v11  ;;  %v818_v41 = vand.u32 2147483648, %v6027_v11  ;;  %v5123_v6 = vld [vmem:[#allocation4 + $0x34] sm:$0xf0] }
 0x188   :  { %v795_v19 = vmul.f32 %v6012_v61, %v794_v13  ;;  %5399 = vtanh.f32 %v906_v17  ;;  %v4308_v10 = vor.u32 %v5116_v44, %v4307_v43  ;;  %v5106_v13 = vld [vmem:[#allocation4 + $0xc] sm:$0xf0]  ;;  %v4270_v17 = vor.u32 %v5107_v62, %v4269_v35 }
 0x189   :  { %v6040_v22 = vpop.eup %5389  ;;  %v676_v23 = vadd.f32 %v6008_v59, %v675_v16  ;;  %v4236_v16 = vor.u32 %v5099_v54, %v4235_v52  ;;  %vm697_vm4 = vcmp.eq.f32.partialorder %v696_v37, 8.507059e+37  ;;  %v4266_v32 = vor.u32 %v5106_v13, %v4265_v47 }
 0x18a   :  { %v6043_v31 = vpop.eup %5391  ;;  %v796_v33 = vadd.f32 %v6012_v61, %v795_v19  ;;  %v1003_v34 = vmul.f32 %v6040_v22, %v6006_v25  ;;  %v4299_v19 = vld [vmem:[#allocation4 + $0xc] sm:$0xf]  ;;  %1373 = vmatpush.bf16.msra.mxu2 %v4308_v10  ;;  %1250 = vmatpush.bf16.msra.mxu1 %v4270_v17  ;;  %vm812_vm5 = vweird.f32 %v6027_v11  ;;  %vm817_vm7 = vcmp.eq.f32.partialorder %v816_v40, 8.507059e+37 }
 0x18b   :  { %v5394_v38 = vpop.eup %5393  ;;  %v680_v39 = vsel %vm6049_vm14, %v6008_v59, %v676_v23  ;;  %v688_v2 = vmul.f32 %v6043_v31, %v6010_v51  ;;  %vm693_vm0 = vweird.f32 %v6043_v31  ;;  %1130 = vmatpush.bf16.msra.mxu0 %v4236_v16  ;;  %v819_v51 = vor.u32 1.1754944e-38, %v818_v41 }
 0x18c   :  { %v5396_v48 = vpop.eup %5395  ;;  %v685_v24 = vsel %vm6021_vm8, %v684_v5, %v680_v39  ;;  %v800_v1 = vsel %vm6066_vm15, %v6012_v61, %v796_v33  ;;  %v1004_v49 = vsub.f32 1.0, %v1003_v34  ;;  %v4335_v5 = vld [vmem:[#allocation4 + $0x28] sm:$0xf]  ;;  %vm6097_vm2 = vmor %vm692_vm1, %vm693_vm0  ;;  %v4332_v37 = vor.u32 %v5122_v28, %v4331_v27  ;;  %v5145_v28 = vld [vmem:[#allocation4 + $0xec] sm:$0xf0] }
 0x18d   :  { %v6079_v56 = vpop.eup %5397  ;;  %v702_v58 = vmul.f32 %v685_v24, %v5959_v42  ;;  %v805_v59 = vsel %vm6036_vm13, %v804_v21, %v800_v1  ;;  %v689_v55 = vsub.f32 1.0, %v688_v2  ;;  %v6084_v60 = vadd.f32 1.0, %v5396_v48 }
 0x18e   :  { %v910_v63 = vmul.f32 %v5394_v38, %v805_v59  ;;  %v808_v61 = vmul.f32 %v6079_v56, %v6027_v11  ;;  %v1005_v20 = vmul.f32 %v6040_v22, %v1004_v49  ;;  %vm813_vm3 = vweird.f32 %v6079_v56  ;;  %v5400_v33 = vpop.eup %5399  ;;  %1251 = vmatpush.bf16.msra.mxu1 %v4266_v32 }
 0x18f   :  { %v690_v42 = vmul.f32 %v6043_v31, %v689_v55  ;;  %5401 = vrcp.f32 %v6084_v60  ;;  %v4304_v21 = vor.u32 %v5115_v53, %v4303_v3  ;;  %v4336_v23 = vor.u32 %v5123_v6, %v4335_v5  ;;  %vm814_vm6 = vmor %vm812_vm5, %vm813_vm3  ;;  %1131 = vmatpush.bf16.msra.mxu0 %v4232_v30  ;;  %v5153_v30 = vld [vmem:[#allocation4 + $0xf8] sm:$0xf0] }
 0x190   :  { %v809_v9 = vsub.f32 1.0, %v808_v61  ;;  %v6093_v14 = vadd.f32 %v910_v63, %v702_v58  ;;  %vm1008_vm8 = vweird.f32 %v6040_v22  ;;  %v1006_v11 = vadd.f32 %v6040_v22, %v1005_v20 }
 0x191   :  { %v691_v57 = vadd.f32 %v6043_v31, %v690_v42  ;;  %1374 = vmatpush.bf16.msra.mxu2 %v4304_v21  ;;  %1460 = vmatpush.bf16.msra.mxu3 %v4336_v23  ;;  %v1013_v40 = vand.u32 2147483648, %v6006_v25  ;;  %vm1007_vm9 = vweird.f32 %v6006_v25  ;;  %vm1022_vm12 = vweird.f32 %v6084_v60  ;;  %v5137_v21 = vld [vmem:[#allocation4 + $0xf0] sm:$0xf0]  ;;  %v4427_v23 = vld [vmem:[#allocation4 + $0xe0] sm:$0xf] }
 0x192   :  { %v810_v0 = vmul.f32 %v6079_v56, %v809_v9  ;;  %5403 = vtanh.f32 %v6093_v14  ;;  %vm6127_vm10 = vmor %vm1007_vm9, %vm1008_vm8  ;;  %v1026_v52 = vand.u32 2147483647, %v6084_v60  ;;  %v1065_v47 = vrot.slane %v1044_v8, 4 }
 0x193   :  { %v695_v29 = vsel %vm6097_vm2, %v6043_v31, %v691_v57  ;;  %v4300_v31 = vor.u32 %v5114_v26, %v4299_v19  ;;  %v1010_v24 = vsel %vm6127_vm10, %v6040_v22, %v1006_v11  ;;  %v1014_v49 = vor.u32 1.1754944e-38, %v1013_v40  ;;  %v1043_v57 = vld [vmem:[#allocation6 + $0x48] sm:$0xff]  ;;  %v5136_v11 = vld [vmem:[#allocation4 + $0xd0] sm:$0xf0] }
 0x194   :  { %v700_v34 = vsel %vm697_vm4, %v6056_v36, %v695_v29  ;;  %v811_v38 = vadd.f32 %v6079_v56, %v810_v0  ;;  %vm1027_vm15 = vcmp.eq.f32.partialorder %v1026_v52, 8.507059e+37  ;;  %v1404_v16 = vunpack.c.l.bf16 %v1043_v57  ;;  %v4393_v0 = vld [vmem:[#allocation4 + $0xe4] sm:$0xf]  ;;  %v4461_v29 = vld [vmem:[#allocation4 + $0xec] sm:$0xf] }
 0x195   :  { %v5402_v39 = vpop.eup %5401  ;;  %v703_v36 = vmul.f32 %v700_v34, %v5984_v4  ;;  %v1011_v4 = vand.u32 2147483647, %v6006_v25  ;;  %1375 = vmatpush.bf16.msra.mxu2 %v4300_v31  ;;  %1461 = vmatpush.bf16.msra.mxu3 %v4332_v37  ;;  %v1028_v25 = vand.u32 2147483648, %v6084_v60  ;;  %v1069_v17 = vunpack.c.l.bf16 %v1065_v47  ;;  %v5161_v31 = vld [vmem:[#allocation4 + $0xf4] sm:$0xf0] }
 0x196   :  { %v815_v18 = vsel %vm814_vm6, %v6079_v56, %v811_v38  ;;  %v1018_v2 = vmul.f32 %v5402_v39, %v6084_v60  ;;  %vm1023_vm11 = vweird.f32 %v5402_v39  ;;  %v1042_v60 = vld [vmem:[#allocation6 + $0x40] sm:$0xff]  ;;  %v1195_v19 = vunpack.c.l.bf16 %v1044_v8  ;;  %v4485_v47 = vld [vmem:[#allocation4 + $0xa8] sm:$0xf] }
 0x197   :  { %v820_v43 = vsel %vm817_vm7, %v819_v51, %v815_v18  ;;  %vm1012_vm13 = vcmp.eq.f32.partialorder %v1011_v4, 8.507059e+37  ;;  %vm1024_vm14 = vmor %vm1022_vm12, %vm1023_vm11  ;;  %v1029_v59 = vor.u32 1.1754944e-38, %v1028_v25  ;;  %v1064_v42 = vrot.slane %v1042_v60, 4  ;;  %v4493_v51 = vld [vmem:[#allocation4 + $0xe8] sm:$0xf] }
 0x198   :  { %v911_v41 = vmul.f32 %v5400_v33, %v820_v43  ;;  %v1019_v44 = vsub.f32 1.0, %v1018_v2  ;;  %v5404_v1 = vpop.eup %5403  ;;  %v1015_v54 = vsel %vm1012_vm13, %v1014_v49, %v1010_v24  ;;  %v1194_v7 = vunpack.c.l.bf16 %v1042_v60  ;;  %v4389_v43 = vld [vmem:[#allocation4 + $0xc4] sm:$0xf]  ;;  %v1045_v49 = vld [vmem:[#allocation6 + $0x58] sm:$0xff]  ;;  %v5144_v25 = vld [vmem:[#allocation4 + $0xcc] sm:$0xf0] }
 0x199   :  { %v1034_v58 = vmul.f32 %v5404_v1, %v1015_v54  ;;  %v1068_v6 = vunpack.c.l.bf16 %v1064_v42  ;;  %v4394_v27 = vor.u32 %v5137_v21, %v4393_v0  ;;  %v4428_v38 = vor.u32 %v5145_v28, %v4427_v23 }
 0x19a   :  { %v6131_v46 = vadd.f32 %v911_v41, %v703_v36  ;;  %v1020_v48 = vmul.f32 %v5402_v39, %v1019_v44  ;;  %v4494_v18 = vor.u32 %v5161_v31, %v4493_v51  ;;  %v1314_v41 = vrot.slane %v1043_v57, 4  ;;  %v5134_v51 = vld [vmem:[#allocation4 + $0x90] sm:$0xf0] }
 0x19b   :  { %v1036_v62 = vpack.c.bf16 %v1034_v58, %v1034_v58  ;;  %1598 = vmatpush.bf16.msrb.mxu0 %v4394_v27  ;;  %1718 = vmatpush.bf16.msrb.mxu1 %v4428_v38  ;;  %v4390_v4 = vor.u32 %v5136_v11, %v4389_v43  ;;  %v1405_v54 = vunpack.c.l.bf16 %v1045_v49 }
 0x19c   :  { %5405 = vtanh.f32 %v6131_v46  ;;  %v1021_v50 = vadd.f32 %v5402_v39, %v1020_v48  ;;  %1928 = vmatpush.bf16.msrb.mxu3 %v4494_v18  ;;  %v4415_v18 = vld [vmem:[#allocation4 + $0x80] sm:$0xf] }
 0x19d   :  { %v1072_v3 = vunpack.c.l.b16 %v1036_v62  ;;  %v5160_v62 = vld [vmem:[#allocation4 + $0xd4] sm:$0xf0] }
 0x19e   :  { %v1025_v56 = vsel %vm1024_vm14, %v5402_v39, %v1021_v50  ;;  %v4462_v39 = vor.u32 %v5153_v30, %v4461_v29 }
 0x19f   :  { %v1030_v22 = vsel %vm1027_vm15, %v1029_v59, %v1025_v56  ;;  %1599 = vmatpush.bf16.msrb.mxu0 %v4390_v4  ;;  %v4424_v56 = vor.u32 %v5144_v25, %v4423_v45  ;;  %v5152_v59 = vld [vmem:[#allocation4 + $0xd8] sm:$0xf0] }
 0x1a0   :  { %1842 = vmatpush.bf16.msrb.mxu2 %v4462_v39  ;;  %v4381_v39 = vld [vmem:[#allocation4 + $0x84] sm:$0xf] }
 0x1a1   :  { %1719 = vmatpush.bf16.msrb.mxu1 %v4424_v56 }
 0x1a2   :  { %v5406_v55 = vpop.eup %5405 }
 0x1a3   :  { %v1035_v35 = vmul.f32 %v5406_v55, %v1030_v22  ;;  %v1318_v55 = vunpack.c.l.bf16 %v1314_v41  ;;  %v5150_v41 = vld [vmem:[#allocation4 + $0x98] sm:$0xf0] }
 0x1a5   :  { %v1037_v63 = vpack.c.bf16 %v1035_v35, %v1035_v35  ;;  %v5298_v61 = vpack.c.bf16 %v1035_v35, %v1034_v58  ;;  %v4457_v58 = vld [vmem:[#allocation4 + $0xcc] sm:$0xf]  ;;  %v4489_v35 = vld [vmem:[#allocation4 + $0xc8] sm:$0xf] }
 0x1a6   :  { %v4458_v42 = vor.u32 %v5152_v59, %v4457_v58  ;;  %v4481_v58 = vld [vmem:[#allocation4 + $0x88] sm:$0xf]  ;;  %v5158_v59 = vld [vmem:[#allocation4 + $0x94] sm:$0xf0] }
 0x1a7   :  { %5299 = vst [vmem:[#allocation12 + $0x8] sm:$0xff] %v5298_v61   ;;  %v1073_v53 = vunpack.c.l.b16 %v1037_v63  ;;  %v4385_v63 = vld [vmem:[#allocation4 + $0xa4] sm:$0xf]  ;;  %v1315_v61 = vrot.slane %v1045_v49, 4 }
 0x1a8   :  { %1843 = vmatpush.bf16.msrb.mxu2 %v4458_v42 }
 0x1a9   :  { %v1074_v5 = vpack.c.b16 %v1073_v53, %v1072_v3  ;;  %v5135_v3 = vld [vmem:[#allocation4 + $0xb0] sm:$0xf0]  ;;  %v4419_v53 = vld [vmem:[#allocation4 + $0xa0] sm:$0xf]  ;;  %v1319_v21 = vunpack.c.l.bf16 %v1315_v61 }
 0x1ab   :  { %1132 = vmatmul.bf16.vlgmr.msra.gmra.mxu0 %v1074_v5  ;;  %1252 = vmatmul.bf16.vlgmr.msra.gmra.mxu1 %v1074_v5 }
 0x1ac   :  { %1376 = vmatmul.bf16.vlgmr.msra.gmra.mxu2 %v1074_v5  ;;  %1462 = vmatmul.bf16.vlgmr.msra.gmra.mxu3 %v1074_v5 }
 0x228   :  { %v1133_v20 = vpop.f32.mrf.mxu0  ;;  %v1253_v9 = vpop.f32.mrf.mxu1 }
 0x229   :  { %v1134_v10 = vadd.f32 %v1133_v20, %v1068_v6  ;;  %v1254_v12 = vadd.f32 %v1253_v9, %v1194_v7  ;;  %v5143_v6 = vld [vmem:[#allocation4 + $0xac] sm:$0xf0]  ;;  %v4453_v7 = vld [vmem:[#allocation4 + $0xac] sm:$0xf]  ;;  %v4490_v20 = vor.u32 %v5160_v62, %v4489_v35  ;;  %v4386_v9 = vor.u32 %v5135_v3, %v4385_v63 }
 0x22b   :  { %v4261_v13 = vmul.f32 -1.442695, %v1134_v10  ;;  %v4295_v15 = vmul.f32 -1.442695, %v1254_v12  ;;  %v4420_v10 = vor.u32 %v5143_v6, %v4419_v53  ;;  %v5151_v12 = vld [vmem:[#allocation4 + $0xb8] sm:$0xf0]  ;;  %1929 = vmatpush.bf16.msrb.mxu3 %v4490_v20  ;;  %1600 = vmatpush.bf16.msrb.mxu0 %v4386_v9 }
 0x22c   :  { %v4377_v6 = vld [vmem:[#allocation4 + $0x64] sm:$0xf] }
 0x22d   :  { %5407 = vpow2.f32 %v4261_v13  ;;  %v5159_v13 = vld [vmem:[#allocation4 + $0xb4] sm:$0xf0]  ;;  %1720 = vmatpush.bf16.msrb.mxu1 %v4420_v10 }
 0x22e   :  { %5409 = vpow2.f32 %v4295_v15 }
 0x22f   :  { %v1463_v26 = vpop.f32.mrf.mxu3  ;;  %v1377_v52 = vpop.f32.mrf.mxu2 }
 0x230   :  { %v1464_v32 = vadd.f32 %v1463_v26, %v1404_v16  ;;  %v1135_v33 = vpop.f32.mrf.mxu0  ;;  %v1255_v34 = vpop.f32.mrf.mxu1  ;;  %v1378_v57 = vadd.f32 %v1377_v52, %v1318_v55  ;;  %v4486_v26 = vor.u32 %v5159_v13, %v4485_v47  ;;  %v4382_v52 = vor.u32 %v5134_v51, %v4381_v39  ;;  %v5141_v47 = vld [vmem:[#allocation4 + $0x6c] sm:$0xf0]  ;;  %v4445_v13 = vld [vmem:[#allocation4 + $0x6c] sm:$0xf]  ;;  %v5148_v39 = vld [vmem:[#allocation4 + $0x58] sm:$0xf0] }
 0x231   :  { %v1136_v37 = vadd.f32 %v1135_v33, %v1069_v17  ;;  %v1256_v36 = vadd.f32 %v1255_v34, %v1195_v19  ;;  %v4454_v17 = vor.u32 %v5151_v12, %v4453_v7  ;;  %v5133_v7 = vld [vmem:[#allocation4 + $0x70] sm:$0xf0]  ;;  %v4482_v12 = vor.u32 %v5158_v59, %v4481_v58 }
 0x232   :  { %v4361_v2 = vmul.f32 -1.442695, %v1464_v32  ;;  %1930 = vmatpush.bf16.msrb.mxu3 %v4486_v26  ;;  %1601 = vmatpush.bf16.msrb.mxu0 %v4382_v52  ;;  %v4477_v26 = vld [vmem:[#allocation4 + $0x68] sm:$0xf]  ;;  %v5131_v52 = vld [vmem:[#allocation4 + $0x30] sm:$0xf0] }
 0x233   :  { %v5408_v40 = vpop.eup %5407  ;;  %v4262_v44 = vmul.f32 -1.442695, %v1136_v37  ;;  %v4296_v1 = vmul.f32 -1.442695, %v1256_v36  ;;  %1844 = vmatpush.bf16.msrb.mxu2 %v4454_v17 }
 0x234   :  { %v5410_v48 = vpop.eup %5409  ;;  %v6140_v24 = vadd.f32 1.0, %v5408_v40  ;;  %5411 = vpow2.f32 %v4361_v2  ;;  %v5142_v2 = vld [vmem:[#allocation4 + $0x8c] sm:$0xf0]  ;;  %v4449_v40 = vld [vmem:[#allocation4 + $0x8c] sm:$0xf] }
 0x235   :  { %v6142_v50 = vadd.f32 1.0, %v5410_v48  ;;  %5413 = vpow2.f32 %v4262_v44  ;;  %v4450_v56 = vor.u32 %v5150_v41, %v4449_v40 }
 0x236   :  { %5415 = vrcp.f32 %v6140_v24  ;;  %v1157_v5 = vand.u32 2147483648, %v6140_v24  ;;  %v1155_v29 = vand.u32 2147483647, %v6140_v24  ;;  %vm1151_vm0 = vweird.f32 %v6140_v24  ;;  %1931 = vmatpush.bf16.msrb.mxu3 %v4482_v12  ;;  %v4399_v12 = vld [vmem:[#allocation4] sm:$0xf] }
 0x237   :  { %5417 = vrcp.f32 %v6142_v50  ;;  %v1465_v22 = vpop.f32.mrf.mxu3  ;;  %v1275_v30 = vand.u32 2147483647, %v6142_v50  ;;  %v1277_v38 = vand.u32 2147483648, %v6142_v50  ;;  %v1379_v36 = vpop.f32.mrf.mxu2  ;;  %vm1271_vm1 = vweird.f32 %v6142_v50  ;;  %1845 = vmatpush.bf16.msrb.mxu2 %v4450_v56  ;;  %v5139_v56 = vld [vmem:[#allocation4 + $0x2c] sm:$0xf0] }
 0x238   :  { %5419 = vpow2.f32 %v4296_v1  ;;  %v1466_v60 = vadd.f32 %v1465_v22, %v1405_v54  ;;  %v1158_v33 = vor.u32 1.1754944e-38, %v1157_v5  ;;  %vm6171_vm3 = vcmp.eq.f32.partialorder %v1155_v29, 8.507059e+37 }
 0x239   :  { %vm6178_vm5 = vcmp.eq.f32.partialorder %v1275_v30, 8.507059e+37  ;;  %v1380_v1 = vadd.f32 %v1379_v36, %v1319_v21  ;;  %v4416_v54 = vor.u32 %v5142_v2, %v4415_v18  ;;  %v1278_v62 = vor.u32 1.1754944e-38, %v1277_v38  ;;  %v4373_v30 = vld [vmem:[#allocation4 + $0x44] sm:$0xf]  ;;  %v4441_v38 = vld [vmem:[#allocation4 + $0x4c] sm:$0xf] }
 0x23a   :  { %v5412_v8 = vpop.eup %5411  ;;  %v4362_v23 = vmul.f32 -1.442695, %v1466_v60  ;;  %v4378_v36 = vor.u32 %v5133_v7, %v4377_v6  ;;  %v4473_v2 = vld [vmem:[#allocation4 + $0x48] sm:$0xf]  ;;  %v4442_v59 = vor.u32 %v5148_v39, %v4441_v38 }
 0x23b   :  { %v5414_v15 = vpop.eup %5413  ;;  %v6147_v16 = vadd.f32 1.0, %v5412_v8  ;;  %1721 = vmatpush.bf16.msrb.mxu1 %v4416_v54  ;;  %v4411_v8 = vld [vmem:[#allocation4 + $0x60] sm:$0xf]  ;;  %v4469_v6 = vld [vmem:[#allocation4 + $0x28] sm:$0xf] }
 0x23c   :  { %v6149_v19 = vpop.eup %5415  ;;  %v6151_v0 = vadd.f32 1.0, %v5414_v15  ;;  %v5149_v15 = vld [vmem:[#allocation4 + $0x78] sm:$0xf0]  ;;  %v4412_v18 = vor.u32 %v5141_v47, %v4411_v8  ;;  %1602 = vmatpush.bf16.msrb.mxu0 %v4378_v36  ;;  %v4403_v54 = vld [vmem:[#allocation4 + $0x20] sm:$0xf] }
 0x23d   :  { %v6153_v27 = vpop.eup %5417  ;;  %v1147_v28 = vmul.f32 %v6149_v19, %v6140_v24  ;;  %5421 = vrcp.f32 %v6147_v16  ;;  %vm1152_vm2 = vweird.f32 %v6149_v19  ;;  %v4404_v8 = vor.u32 %v5139_v56, %v4403_v54  ;;  %v1516_v54 = vld [vmem:[#allocation6 + $0x60] sm:$0xff] }
 0x23e   :  { %v5420_v32 = vpop.eup %5419  ;;  %v1267_v34 = vmul.f32 %v6153_v27, %v6142_v50  ;;  %5423 = vrcp.f32 %v6151_v0  ;;  %v1172_v11 = vand.u32 2147483648, %v6151_v0  ;;  %vm1272_vm4 = vweird.f32 %v6153_v27  ;;  %vm6191_vm6 = vmor %vm1151_vm0, %vm1152_vm2 }
 0x23f   :  { %v1148_v31 = vsub.f32 1.0, %v1147_v28  ;;  %5425 = vtanh.f32 %v1378_v57  ;;  %v6165_v37 = vadd.f32 1.0, %v5420_v32  ;;  %v1170_v61 = vand.u32 2147483647, %v6151_v0  ;;  %vm6206_vm7 = vmor %vm1271_vm1, %vm1272_vm4  ;;  %v5132_v32 = vld [vmem:[#allocation4 + $0x50] sm:$0xf0]  ;;  %1722 = vmatpush.bf16.msrb.mxu1 %v4412_v18 }
 0x240   :  { %v1268_v43 = vsub.f32 1.0, %v1267_v34  ;;  %5427 = vpow2.f32 %v4362_v23  ;;  %v6196_v63 = vor.u32 1.1754944e-38, %v1172_v11  ;;  %vm1166_vm9 = vweird.f32 %v6151_v0  ;;  %v5140_v34 = vld [vmem:[#allocation4 + $0x4c] sm:$0xf0] }
 0x241   :  { %v1149_v44 = vmul.f32 %v6149_v19, %v1148_v31  ;;  %5429 = vrcp.f32 %v6165_v37  ;;  %v1290_v60 = vand.u32 2147483647, %v6165_v37  ;;  %v1292_v42 = vand.u32 2147483648, %v6165_v37 }
 0x242   :  { %v1269_v45 = vmul.f32 %v6153_v27, %v1268_v43  ;;  %5431 = vtanh.f32 %v1380_v1  ;;  %v5156_v43 = vld [vmem:[#allocation4 + $0x54] sm:$0xf0]  ;;  %v4374_v1 = vor.u32 %v5132_v32, %v4373_v30  ;;  %vm1171_vm12 = vcmp.eq.f32.partialorder %v1170_v61, 8.507059e+37 }
 0x243   :  { %v6182_v49 = vpop.eup %5421  ;;  %v1150_v25 = vadd.f32 %v6149_v19, %v1149_v44  ;;  %v4446_v44 = vor.u32 %v5149_v15, %v4445_v13  ;;  %v4474_v22 = vor.u32 %v5156_v43, %v4473_v2  ;;  %vm1286_vm13 = vweird.f32 %v6165_v37  ;;  %v4433_v13 = vld [vmem:[#allocation4 + $0xc] sm:$0xf]  ;;  %v5146_v15 = vld [vmem:[#allocation4 + $0x18] sm:$0xf0] }
 0x244   :  { %v6185_v55 = vpop.eup %5423  ;;  %v1270_v35 = vadd.f32 %v6153_v27, %v1269_v45  ;;  %v1477_v10 = vmul.f32 %v6182_v49, %v6147_v16  ;;  %v4369_v45 = vld [vmem:[#allocation4 + $0x24] sm:$0xf]  ;;  %vm1291_vm15 = vcmp.eq.f32.partialorder %v1290_v60, 8.507059e+37  ;;  %1603 = vmatpush.bf16.msrb.mxu0 %v4374_v1  ;;  %v5130_v60 = vld [vmem:[#allocation4 + $0x10] sm:$0xf0]  ;;  %vm1482_vm0 = vweird.f32 %v6182_v49 }
 0x245   :  { %v5426_v3 = vpop.eup %5425  ;;  %v1154_v53 = vsel %vm6191_vm6, %v6149_v19, %v1150_v25  ;;  %v1162_v5 = vmul.f32 %v6185_v55, %v6151_v0  ;;  %vm1167_vm8 = vweird.f32 %v6185_v55  ;;  %1846 = vmatpush.bf16.msrb.mxu2 %v4446_v44  ;;  %v4370_v61 = vor.u32 %v5131_v52, %v4369_v45 }
 0x246   :  { %v5428_v20 = vpop.eup %5427  ;;  %v1159_v50 = vsel %vm6171_vm3, %v1158_v33, %v1154_v53  ;;  %v1274_v9 = vsel %vm6206_vm7, %v6153_v27, %v1270_v35  ;;  %v5157_v27 = vld [vmem:[#allocation4 + $0x74] sm:$0xf0]  ;;  %v4407_v33 = vld [vmem:[#allocation4 + $0x40] sm:$0xf]  ;;  %v1478_v51 = vsub.f32 1.0, %v1477_v10  ;;  %vm6238_vm10 = vmor %vm1166_vm9, %vm1167_vm8  ;;  %vm1481_vm1 = vweird.f32 %v6147_v16 }
 0x247   :  { %v6221_v57 = vpop.eup %5429  ;;  %v1176_v17 = vmul.f32 %v1159_v50, %v6093_v14  ;;  %v1279_v19 = vsel %vm6178_vm5, %v1278_v62, %v1274_v9  ;;  %v1163_v21 = vsub.f32 1.0, %v1162_v5  ;;  %v6226_v23 = vadd.f32 1.0, %v5428_v20  ;;  %v4437_v35 = vld [vmem:[#allocation4 + $0x2c] sm:$0xf]  ;;  %v5147_v5 = vld [vmem:[#allocation4 + $0x38] sm:$0xf0]  ;;  %vm6280_vm2 = vmor %vm1481_vm1, %vm1482_vm0 }
 0x248   :  { %v1384_v28 = vmul.f32 %v5426_v3, %v1279_v19  ;;  %v1282_v29 = vmul.f32 %v6221_v57, %v6165_v37  ;;  %v4478_v4 = vor.u32 %v5157_v27, %v4477_v26  ;;  %vm1287_vm11 = vweird.f32 %v6221_v57  ;;  %v5432_v62 = vpop.eup %5431  ;;  %v4365_v10 = vld [vmem:[#allocation4 + $0x4] sm:$0xf]  ;;  %v5154_v26 = vld [vmem:[#allocation4 + $0x14] sm:$0xf0]  ;;  %1604 = vmatpush.bf16.msrb.mxu0 %v4370_v61 }
 0x249   :  { %v1164_v14 = vmul.f32 %v6185_v55, %v1163_v21  ;;  %5433 = vrcp.f32 %v6226_v23  ;;  %v4408_v25 = vor.u32 %v5140_v34, %v4407_v33  ;;  %v1479_v3 = vmul.f32 %v6182_v49, %v1478_v51  ;;  %vm6258_vm14 = vmor %vm1286_vm13, %vm1287_vm11  ;;  %1847 = vmatpush.bf16.msrb.mxu2 %v4442_v59  ;;  %v4465_v21 = vld [vmem:[#allocation4 + $0x8] sm:$0xf] }
 0x24a   :  { %v1283_v31 = vsub.f32 1.0, %v1282_v29  ;;  %v6234_v11 = vadd.f32 %v1384_v28, %v1176_v17  ;;  %1932 = vmatpush.bf16.msrb.mxu3 %v4478_v4  ;;  %v4366_v28 = vor.u32 %v5130_v60, %v4365_v10  ;;  %v1485_v29 = vand.u32 2147483647, %v6147_v16 }
 0x24b   :  { %v1165_v41 = vadd.f32 %v6185_v55, %v1164_v14  ;;  %1723 = vmatpush.bf16.msrb.mxu1 %v4408_v25  ;;  %v1480_v27 = vadd.f32 %v6182_v49, %v1479_v3  ;;  %v4434_v34 = vor.u32 %v5146_v15, %v4433_v13  ;;  %v4466_v38 = vor.u32 %v5154_v26, %v4465_v21  ;;  %v4561_v15 = vld [vmem:[#allocation4 + $0xe0] sm:$0xf]  ;;  %v1519_v21 = vld [vmem:[#allocation6 + $0x78] sm:$0xff]  ;;  %v5177_v26 = vld [vmem:[#allocation4 + $0xec] sm:$0xf0] }
 0x24c   :  { %v1284_v48 = vmul.f32 %v6221_v57, %v1283_v31  ;;  %5435 = vtanh.f32 %v6234_v11  ;;  %v1502_v31 = vand.u32 2147483648, %v6226_v23  ;;  %vm1496_vm4 = vweird.f32 %v6226_v23  ;;  %1605 = vmatpush.bf16.msrb.mxu0 %v4366_v28 }
 0x24d   :  { %v1169_v58 = vsel %vm6238_vm10, %v6185_v55, %v1165_v41  ;;  %v5155_v55 = vld [vmem:[#allocation4 + $0x34] sm:$0xf0]  ;;  %vm1486_vm5 = vcmp.eq.f32.partialorder %v1485_v29, 8.507059e+37  ;;  %v1500_v18 = vand.u32 2147483647, %v6226_v23  ;;  %v1538_v56 = vrot.slane %v1516_v54, 4 }
 0x24e   :  { %v1174_v53 = vsel %vm1171_vm12, %v6196_v63, %v1169_v58  ;;  %v1285_v24 = vadd.f32 %v6221_v57, %v1284_v48  ;;  %v1293_v63 = vor.u32 1.1754944e-38, %v1292_v42  ;;  %1933 = vmatpush.bf16.msrb.mxu3 %v4474_v22  ;;  %v4438_v42 = vor.u32 %v5147_v5, %v4437_v35  ;;  %v1518_v22 = vld [vmem:[#allocation6 + $0x70] sm:$0xff] }
 0x24f   :  { %v6254_v7 = vpop.eup %5433  ;;  %v1177_v20 = vmul.f32 %v1174_v53, %v6131_v46  ;;  %v4470_v47 = vor.u32 %v5155_v55, %v4469_v6  ;;  %v5138_v46 = vld [vmem:[#allocation4 + $0xc] sm:$0xf0]  ;;  %1724 = vmatpush.bf16.msrb.mxu1 %v4404_v8  ;;  %v1503_v40 = vor.u32 1.1754944e-38, %v1502_v31  ;;  %vm1501_vm7 = vcmp.eq.f32.partialorder %v1500_v18, 8.507059e+37  ;;  %v1517_v55 = vld [vmem:[#allocation6 + $0x68] sm:$0xff] }
 0x250   :  { %v1289_v50 = vsel %vm6258_vm14, %v6221_v57, %v1285_v24  ;;  %v1492_v9 = vmul.f32 %v6254_v7, %v6226_v23  ;;  %v1487_v57 = vand.u32 2147483648, %v6147_v16  ;;  %v4400_v14 = vor.u32 %v5138_v46, %v4399_v12  ;;  %1848 = vmatpush.bf16.msrb.mxu2 %v4438_v42  ;;  %v4527_v12 = vld [vmem:[#allocation4 + $0xe4] sm:$0xf]  ;;  %v4557_v18 = vld [vmem:[#allocation4 + $0xc0] sm:$0xf] }
 0x251   :  { %v1294_v37 = vsel %vm1291_vm15, %v1293_v63, %v1289_v50  ;;  %vm1497_vm3 = vweird.f32 %v6254_v7  ;;  %v1484_v16 = vsel %vm6280_vm2, %v6182_v49, %v1480_v27  ;;  %v1542_v58 = vunpack.c.l.bf16 %v1538_v56 }
 0x252   :  { %v1385_v17 = vmul.f32 %v5432_v62, %v1294_v37  ;;  %v1493_v19 = vsub.f32 1.0, %v1492_v9  ;;  %1934 = vmatpush.bf16.msrb.mxu3 %v4470_v47  ;;  %v5436_v39 = vpop.eup %5435  ;;  %v1488_v51 = vor.u32 1.1754944e-38, %v1487_v57  ;;  %vm1498_vm6 = vmor %vm1496_vm4, %vm1497_vm3  ;;  %v1668_v59 = vunpack.c.l.bf16 %v1516_v54  ;;  %v5169_v37 = vld [vmem:[#allocation4 + $0xf0] sm:$0xf0] }
 0x253   :  { %1725 = vmatpush.bf16.msrb.mxu1 %v4400_v14  ;;  %v1539_v24 = vrot.slane %v1518_v22, 4  ;;  %v1669_v63 = vunpack.c.l.bf16 %v1518_v22  ;;  %v1788_v47 = vrot.slane %v1517_v55, 4  ;;  %v4528_v13 = vor.u32 %v5169_v37, %v4527_v12  ;;  %v5185_v14 = vld [vmem:[#allocation4 + $0xf8] sm:$0xf0] }
 0x254   :  { %v6284_v32 = vadd.f32 %v1385_v17, %v1177_v20  ;;  %v1494_v33 = vmul.f32 %v6254_v7, %v1493_v19  ;;  %v1489_v2 = vsel %vm1486_vm5, %v1488_v51, %v1484_v16  ;;  %1849 = vmatpush.bf16.msrb.mxu2 %v4434_v34  ;;  %v1879_v29 = vunpack.c.l.bf16 %v1519_v21  ;;  %v4627_v16 = vld [vmem:[#allocation4 + $0xe8] sm:$0xf]  ;;  %v4523_v51 = vld [vmem:[#allocation4 + $0xc4] sm:$0xf] }
 0x255   :  { %v1508_v43 = vmul.f32 %v5436_v39, %v1489_v2  ;;  %v1543_v0 = vunpack.c.l.bf16 %v1539_v24  ;;  %2072 = vmatpush.bf16.msra.mxu0 %v4528_v13  ;;  %v4562_v30 = vor.u32 %v5177_v26, %v4561_v15  ;;  %v1792_v34 = vunpack.c.l.bf16 %v1788_v47  ;;  %v5193_v39 = vld [vmem:[#allocation4 + $0xf4] sm:$0xf0]  ;;  %v5183_v47 = vld [vmem:[#allocation4 + $0xb8] sm:$0xf0]  ;;  %v4507_v15 = vld [vmem:[#allocation4 + $0x44] sm:$0xf] }
 0x256   :  { %5437 = vtanh.f32 %v6284_v32  ;;  %v1495_v36 = vadd.f32 %v6254_v7, %v1494_v33  ;;  %1935 = vmatpush.bf16.msrb.mxu3 %v4466_v38  ;;  %v4595_v33 = vld [vmem:[#allocation4 + $0xec] sm:$0xf]  ;;  %v1789_v31 = vrot.slane %v1519_v21, 4 }
 0x257   :  { %v1510_v45 = vpack.c.bf16 %v1508_v43, %v1508_v43  ;;  %2192 = vmatpush.bf16.msra.mxu1 %v4562_v30 }
 0x258   :  { %v1499_v49 = vsel %vm1498_vm6, %v6254_v7, %v1495_v36  ;;  %v1878_v7 = vunpack.c.l.bf16 %v1517_v55  ;;  %v5168_v36 = vld [vmem:[#allocation4 + $0xd0] sm:$0xf0] }
 0x259   :  { %v1504_v44 = vsel %vm1501_vm7, %v1503_v40, %v1499_v49  ;;  %v1546_v25 = vunpack.c.l.b16 %v1510_v45  ;;  %v5176_v40 = vld [vmem:[#allocation4 + $0xcc] sm:$0xf0]  ;;  %v4524_v45 = vor.u32 %v5168_v36, %v4523_v51 }
 0x25b   :  { %2073 = vmatpush.bf16.msra.mxu0 %v4524_v45 }
 0x25c   :  { %v5438_v41 = vpop.eup %5437 }
 0x25d   :  { %v1509_v4 = vmul.f32 %v5438_v41, %v1504_v44  ;;  %v4591_v41 = vld [vmem:[#allocation4 + $0xcc] sm:$0xf] }
 0x25f   :  { %v1511_v48 = vpack.c.bf16 %v1509_v4, %v1509_v4  ;;  %v5303_v1 = vpack.c.bf16 %v1509_v4, %v1508_v43  ;;  %v4596_v43 = vor.u32 %v5185_v14, %v4595_v33  ;;  %v4628_v4 = vor.u32 %v5193_v39, %v4627_v16  ;;  %v4619_v33 = vld [vmem:[#allocation4 + $0xa8] sm:$0xf]  ;;  %v5191_v14 = vld [vmem:[#allocation4 + $0xb4] sm:$0xf0]  ;;  %v4575_v39 = vld [vmem:[#allocation4 + $0x4c] sm:$0xf] }
 0x261   :  { %5304 = vst [vmem:[#allocation12 + $0x10] sm:$0xff] %v5303_v1   ;;  %v1547_v23 = vunpack.c.l.b16 %v1511_v48  ;;  %v4558_v48 = vor.u32 %v5176_v40, %v4557_v18  ;;  %v5184_v1 = vld [vmem:[#allocation4 + $0xd8] sm:$0xf0]  ;;  %2316 = vmatpush.bf16.msra.mxu2 %v4596_v43  ;;  %2402 = vmatpush.bf16.msra.mxu3 %v4628_v4 }
 0x263   :  { %v1548_v52 = vpack.c.b16 %v1547_v23, %v1546_v25  ;;  %v4623_v25 = vld [vmem:[#allocation4 + $0xc8] sm:$0xf]  ;;  %v5192_v23 = vld [vmem:[#allocation4 + $0xd4] sm:$0xf0]  ;;  %2193 = vmatpush.bf16.msra.mxu1 %v4558_v48 }
 0x265   :  { %1606 = vmatmul.bf16.vlgmr.msrb.gmra.mxu0 %v1548_v52  ;;  %1726 = vmatmul.bf16.vlgmr.msrb.gmra.mxu1 %v1548_v52 }
 0x266   :  { %1850 = vmatmul.bf16.vlgmr.msrb.gmra.mxu2 %v1548_v52  ;;  %1936 = vmatmul.bf16.vlgmr.msrb.gmra.mxu3 %v1548_v52 }
 0x2e2   :  { %v1607_v35 = vpop.f32.mrf.mxu0  ;;  %v1727_v62 = vpop.f32.mrf.mxu1 }
 0x2e3   :  { %v1608_v3 = vadd.f32 %v1607_v35, %v1542_v58  ;;  %v1728_v53 = vadd.f32 %v1727_v62, %v1668_v59  ;;  %v4592_v58 = vor.u32 %v5184_v1, %v4591_v41  ;;  %v1793_v35 = vunpack.c.l.bf16 %v1789_v31  ;;  %v4515_v41 = vld [vmem:[#allocation4 + $0x84] sm:$0xf] }
 0x2e5   :  { %v4395_v5 = vmul.f32 -1.442695, %v1608_v3  ;;  %v4429_v6 = vmul.f32 -1.442695, %v1728_v53  ;;  %v4624_v3 = vor.u32 %v5192_v23, %v4623_v25  ;;  %2317 = vmatpush.bf16.msra.mxu2 %v4592_v58  ;;  %v4620_v25 = vor.u32 %v5191_v14, %v4619_v33  ;;  %v5174_v23 = vld [vmem:[#allocation4 + $0x8c] sm:$0xf0] }
 0x2e7   :  { %5439 = vpow2.f32 %v4395_v5  ;;  %2403 = vmatpush.bf16.msra.mxu3 %v4624_v3 }
 0x2e8   :  { %5441 = vpow2.f32 %v4429_v6 }
 0x2e9   :  { %v1937_v61 = vpop.f32.mrf.mxu3  ;;  %v1851_v28 = vpop.f32.mrf.mxu2 }
 0x2ea   :  { %v1938_v8 = vadd.f32 %v1937_v61, %v1878_v7  ;;  %v1609_v20 = vpop.f32.mrf.mxu0  ;;  %v1729_v50 = vpop.f32.mrf.mxu1  ;;  %v1852_v54 = vadd.f32 %v1851_v28, %v1792_v34  ;;  %v4519_v61 = vld [vmem:[#allocation4 + $0xa4] sm:$0xf] }
 0x2eb   :  { %v1610_v9 = vadd.f32 %v1609_v20, %v1543_v0  ;;  %v1730_v10 = vadd.f32 %v1729_v50, %v1669_v63  ;;  %2404 = vmatpush.bf16.msra.mxu3 %v4620_v25  ;;  %v4537_v25 = vld [vmem:[#allocation4 + $0x20] sm:$0xf] }
 0x2ec   :  { %v4495_v60 = vmul.f32 -1.442695, %v1938_v8  ;;  %v5167_v8 = vld [vmem:[#allocation4 + $0xb0] sm:$0xf0] }
 0x2ed   :  { %v5440_v42 = vpop.eup %5439  ;;  %v4396_v46 = vmul.f32 -1.442695, %v1610_v9  ;;  %v4430_v19 = vmul.f32 -1.442695, %v1730_v10  ;;  %v4553_v10 = vld [vmem:[#allocation4 + $0xa0] sm:$0xf]  ;;  %v4520_v28 = vor.u32 %v5167_v8, %v4519_v61 }
 0x2ee   :  { %v5442_v57 = vpop.eup %5441  ;;  %v6297_v17 = vadd.f32 1.0, %v5440_v42  ;;  %5443 = vpow2.f32 %v4495_v60  ;;  %v5175_v60 = vld [vmem:[#allocation4 + $0xac] sm:$0xf0]  ;;  %v4587_v42 = vld [vmem:[#allocation4 + $0xac] sm:$0xf] }
 0x2ef   :  { %v6299_v27 = vadd.f32 1.0, %v5442_v57  ;;  %5445 = vpow2.f32 %v4396_v46  ;;  %v4588_v30 = vor.u32 %v5183_v47, %v4587_v42  ;;  %2074 = vmatpush.bf16.msra.mxu0 %v4520_v28  ;;  %v4579_v61 = vld [vmem:[#allocation4 + $0x6c] sm:$0xf]  ;;  %v5181_v8 = vld [vmem:[#allocation4 + $0x78] sm:$0xf0] }
 0x2f0   :  { %5447 = vrcp.f32 %v6297_v17  ;;  %v1631_v2 = vand.u32 2147483648, %v6297_v17  ;;  %v1629_v5 = vand.u32 2147483647, %v6297_v17  ;;  %vm1625_vm8 = vweird.f32 %v6297_v17  ;;  %v5164_v28 = vld [vmem:[#allocation4 + $0x50] sm:$0xf0] }
 0x2f1   :  { %5449 = vrcp.f32 %v6299_v27  ;;  %v1939_v38 = vpop.f32.mrf.mxu3  ;;  %v1749_v6 = vand.u32 2147483647, %v6299_v27  ;;  %v1751_v63 = vand.u32 2147483648, %v6299_v27  ;;  %v1853_v9 = vpop.f32.mrf.mxu2  ;;  %vm1745_vm9 = vweird.f32 %v6299_v27  ;;  %2318 = vmatpush.bf16.msra.mxu2 %v4588_v30  ;;  %v5172_v30 = vld [vmem:[#allocation4 + $0x4c] sm:$0xf0] }
 0x2f2   :  { %5451 = vpow2.f32 %v4430_v19  ;;  %v1940_v49 = vadd.f32 %v1939_v38, %v1879_v29  ;;  %v1632_v7 = vor.u32 1.1754944e-38, %v1631_v2  ;;  %vm6330_vm11 = vcmp.eq.f32.partialorder %v1629_v5, 8.507059e+37 }
 0x2f3   :  { %v1854_v19 = vadd.f32 %v1853_v9, %v1793_v35  ;;  %v4554_v29 = vor.u32 %v5175_v60, %v4553_v10  ;;  %vm6350_vm14 = vcmp.eq.f32.partialorder %v1749_v6, 8.507059e+37  ;;  %v1752_v51 = vor.u32 1.1754944e-38, %v1751_v63  ;;  %v5173_v63 = vld [vmem:[#allocation4 + $0x6c] sm:$0xf0] }
 0x2f4   :  { %v5444_v44 = vpop.eup %5443  ;;  %v4496_v62 = vmul.f32 -1.442695, %v1940_v49  ;;  %v4580_v38 = vor.u32 %v5181_v8, %v4579_v61  ;;  %v5162_v61 = vld [vmem:[#allocation4 + $0x10] sm:$0xf0]  ;;  %v4533_v8 = vld [vmem:[#allocation4] sm:$0xf] }
 0x2f5   :  { %v5446_v52 = vpop.eup %5445  ;;  %v6304_v56 = vadd.f32 1.0, %v5444_v44  ;;  %2194 = vmatpush.bf16.msra.mxu1 %v4554_v29  ;;  %v5166_v44 = vld [vmem:[#allocation4 + $0x90] sm:$0xf0]  ;;  %v4541_v29 = vld [vmem:[#allocation4 + $0x40] sm:$0xf] }
 0x2f6   :  { %v6306_v59 = vpop.eup %5447  ;;  %v6308_v22 = vadd.f32 1.0, %v5446_v52  ;;  %v4583_v52 = vld [vmem:[#allocation4 + $0x8c] sm:$0xf]  ;;  %v4516_v10 = vor.u32 %v5166_v44, %v4515_v41  ;;  %v4542_v49 = vor.u32 %v5172_v30, %v4541_v29 }
 0x2f7   :  { %v6310_v53 = vpop.eup %5449  ;;  %v1621_v24 = vmul.f32 %v6306_v59, %v6297_v17  ;;  %5453 = vrcp.f32 %v6304_v56  ;;  %vm1626_vm10 = vweird.f32 %v6306_v59  ;;  %v4607_v17 = vld [vmem:[#allocation4 + $0x48] sm:$0xf] }
 0x2f8   :  { %v5452_v55 = vpop.eup %5451  ;;  %v1741_v0 = vmul.f32 %v6310_v53, %v6299_v27  ;;  %5455 = vrcp.f32 %v6308_v22  ;;  %v1646_v37 = vand.u32 2147483648, %v6308_v22  ;;  %v1644_v13 = vand.u32 2147483647, %v6308_v22  ;;  %vm6345_vm13 = vmor %vm1625_vm8, %vm1626_vm10  ;;  %v4549_v27 = vld [vmem:[#allocation4 + $0x80] sm:$0xf]  ;;  %2075 = vmatpush.bf16.msra.mxu0 %v4516_v10 }
 0x2f9   :  { %v1622_v20 = vsub.f32 1.0, %v1621_v24  ;;  %5457 = vtanh.f32 %v1852_v54  ;;  %v6322_v50 = vadd.f32 1.0, %v5452_v55  ;;  %vm1746_vm12 = vweird.f32 %v6310_v53  ;;  %v5182_v54 = vld [vmem:[#allocation4 + $0x98] sm:$0xf0]  ;;  %v5190_v24 = vld [vmem:[#allocation4 + $0x94] sm:$0xf0] }
 0x2fa   :  { %v1742_v12 = vsub.f32 1.0, %v1741_v0  ;;  %5459 = vpow2.f32 %v4496_v62  ;;  %v6354_v31 = vor.u32 1.1754944e-38, %v1646_v37  ;;  %vm6363_vm15 = vmor %vm1745_vm9, %vm1746_vm12  ;;  %vm6369_vm0 = vcmp.eq.f32.partialorder %v1644_v13, 8.507059e+37  ;;  %v4511_v55 = vld [vmem:[#allocation4 + $0x64] sm:$0xf] }
 0x2fb   :  { %v1623_v46 = vmul.f32 %v6306_v59, %v1622_v20  ;;  %5461 = vrcp.f32 %v6322_v50  ;;  %v1764_v43 = vand.u32 2147483647, %v6322_v50  ;;  %v1766_v40 = vand.u32 2147483648, %v6322_v50  ;;  %v4545_v0 = vld [vmem:[#allocation4 + $0x60] sm:$0xf] }
 0x2fc   :  { %v1743_v57 = vmul.f32 %v6310_v53, %v1742_v12  ;;  %5463 = vtanh.f32 %v1854_v19  ;;  %vm1640_vm2 = vweird.f32 %v6308_v22  ;;  %v4550_v60 = vor.u32 %v5174_v23, %v4549_v27  ;;  %v4611_v12 = vld [vmem:[#allocation4 + $0x68] sm:$0xf]  ;;  %v5189_v37 = vld [vmem:[#allocation4 + $0x74] sm:$0xf0]  ;;  %v5170_v10 = vld [vmem:[#allocation4 + $0xc] sm:$0xf0] }
 0x2fd   :  { %v6336_v21 = vpop.eup %5453  ;;  %v1624_v26 = vadd.f32 %v6306_v59, %v1623_v46  ;;  %v4584_v46 = vor.u32 %v5182_v54, %v4583_v52  ;;  %vm6412_vm5 = vcmp.eq.f32.partialorder %v1764_v43, 8.507059e+37  ;;  %vm1760_vm7 = vweird.f32 %v6322_v50  ;;  %v5171_v52 = vld [vmem:[#allocation4 + $0x2c] sm:$0xf0]  ;;  %v4571_v54 = vld [vmem:[#allocation4 + $0x2c] sm:$0xf] }
 0x2fe   :  { %v6339_v34 = vpop.eup %5455  ;;  %v1744_v16 = vadd.f32 %v6310_v53, %v1743_v57  ;;  %v6382_v1 = vmul.f32 %v6336_v21, %v6304_v56  ;;  %2195 = vmatpush.bf16.msra.mxu1 %v4550_v60  ;;  %vm1956_vm6 = vweird.f32 %v6336_v21  ;;  %v1767_v44 = vor.u32 1.1754944e-38, %v1766_v40  ;;  %v4567_v60 = vld [vmem:[#allocation4 + $0xc] sm:$0xf] }
 0x2ff   :  { %v5458_v36 = vpop.eup %5457  ;;  %v1628_v18 = vsel %vm6345_vm13, %v6306_v59, %v1624_v26  ;;  %v1636_v2 = vmul.f32 %v6339_v34, %v6308_v22  ;;  %vm1641_vm1 = vweird.f32 %v6339_v34  ;;  %v4546_v26 = vor.u32 %v5173_v63, %v4545_v0  ;;  %2319 = vmatpush.bf16.msra.mxu2 %v4584_v46  ;;  %v4499_v63 = vld [vmem:[#allocation4 + $0x4] sm:$0xf]  ;;  %v4599_v46 = vld [vmem:[#allocation4 + $0x8] sm:$0xf] }
 0x300   :  { %v5460_v4 = vpop.eup %5459  ;;  %v1633_v45 = vsel %vm6330_vm11, %v1632_v7, %v1628_v18  ;;  %v1748_v48 = vsel %vm6363_vm15, %v6310_v53, %v1744_v16  ;;  %v4615_v53 = vld [vmem:[#allocation4 + $0x88] sm:$0xf]  ;;  %v5165_v7 = vld [vmem:[#allocation4 + $0x70] sm:$0xf0]  ;;  %v1952_v20 = vsub.f32 1.0, %v6382_v1  ;;  %vm6402_vm3 = vmor %vm1640_vm2, %vm1641_vm1  ;;  %v4612_v16 = vor.u32 %v5189_v37, %v4611_v12 }
 0x301   :  { %v6384_v58 = vpop.eup %5461  ;;  %v1650_v59 = vmul.f32 %v1633_v45, %v6234_v11  ;;  %v1753_v35 = vsel %vm6350_vm14, %v1752_v51, %v1748_v48  ;;  %v1637_v62 = vsub.f32 1.0, %v1636_v2  ;;  %v6389_v3 = vadd.f32 1.0, %v5460_v4  ;;  %v5188_v2 = vld [vmem:[#allocation4 + $0x54] sm:$0xf0]  ;;  %v4503_v48 = vld [vmem:[#allocation4 + $0x24] sm:$0xf] }
 0x302   :  { %v1858_v5 = vmul.f32 %v5458_v36, %v1753_v35  ;;  %v1756_v6 = vmul.f32 %v6384_v58, %v6322_v50  ;;  %v4616_v13 = vor.u32 %v5190_v24, %v4615_v53  ;;  %vm1761_vm4 = vweird.f32 %v6384_v58  ;;  %v5464_v51 = vpop.eup %5463  ;;  %2196 = vmatpush.bf16.msra.mxu1 %v4546_v26  ;;  %v5163_v1 = vld [vmem:[#allocation4 + $0x30] sm:$0xf0]  ;;  %v5187_v53 = vld [vmem:[#allocation4 + $0x34] sm:$0xf0]  ;;  %v5178_v12 = vld [vmem:[#allocation4 + $0x18] sm:$0xf0] }
 0x303   :  { %v1638_v11 = vmul.f32 %v6339_v34, %v1637_v62  ;;  %5465 = vrcp.f32 %v6389_v3  ;;  %v4512_v19 = vor.u32 %v5165_v7, %v4511_v55  ;;  %v1953_v41 = vmul.f32 %v6336_v21, %v1952_v20  ;;  %vm1762_vm8 = vmor %vm1760_vm7, %vm1761_vm4  ;;  %2320 = vmatpush.bf16.msra.mxu2 %v4580_v38  ;;  %v4603_v62 = vld [vmem:[#allocation4 + $0x28] sm:$0xf] }
 0x304   :  { %v1757_v9 = vsub.f32 1.0, %v1756_v6  ;;  %v6398_v42 = vadd.f32 %v1858_v5, %v1650_v59  ;;  %2405 = vmatpush.bf16.msra.mxu3 %v4616_v13  ;;  %v4508_v27 = vor.u32 %v5164_v28, %v4507_v15  ;;  %v4608_v23 = vor.u32 %v5188_v2, %v4607_v17  ;;  %v5186_v13 = vld [vmem:[#allocation4 + $0x14] sm:$0xf0] }
 0x305   :  { %v1639_v22 = vadd.f32 %v6339_v34, %v1638_v11  ;;  %2076 = vmatpush.bf16.msra.mxu0 %v4512_v19  ;;  %vm1955_vm9 = vweird.f32 %v6304_v56  ;;  %v4504_v5 = vor.u32 %v5163_v1, %v4503_v48  ;;  %v1954_v6 = vadd.f32 %v6336_v21, %v1953_v41 }
 0x306   :  { %v1758_v57 = vmul.f32 %v6384_v58, %v1757_v9  ;;  %5467 = vtanh.f32 %v6398_v42  ;;  %vm6440_vm10 = vmor %vm1955_vm9, %vm1956_vm6  ;;  %v1959_v55 = vand.u32 2147483647, %v6304_v56  ;;  %2197 = vmatpush.bf16.msra.mxu1 %v4542_v49  ;;  %v4538_v11 = vor.u32 %v5171_v52, %v4537_v25  ;;  %v1992_v49 = vld [vmem:[#allocation6 + $0x90] sm:$0xff] }
 0x307   :  { %v1643_v33 = vsel %vm6402_vm3, %v6339_v34, %v1639_v22  ;;  %v5180_v34 = vld [vmem:[#allocation4 + $0x58] sm:$0xf0]  ;;  %v4604_v9 = vor.u32 %v5187_v53, %v4603_v62  ;;  %v1976_v22 = vand.u32 2147483648, %v6389_v3  ;;  %vm1970_vm12 = vweird.f32 %v6389_v3 }
 0x308   :  { %v1648_v36 = vsel %vm6369_vm0, %v6354_v31, %v1643_v33  ;;  %v1759_v18 = vadd.f32 %v6384_v58, %v1758_v57  ;;  %2406 = vmatpush.bf16.msra.mxu3 %v4612_v16  ;;  %v4576_v40 = vor.u32 %v5180_v34, %v4575_v39  ;;  %v4500_v57 = vor.u32 %v5162_v61, %v4499_v63  ;;  %v4695_v61 = vld [vmem:[#allocation4 + $0xe0] sm:$0xf] }
 0x309   :  { %v6422_v43 = vpop.eup %5465  ;;  %v1651_v31 = vmul.f32 %v1648_v36, %v6284_v32  ;;  %v5179_v32 = vld [vmem:[#allocation4 + $0x38] sm:$0xf0]  ;;  %2077 = vmatpush.bf16.msra.mxu0 %v4508_v27  ;;  %vm1960_vm13 = vcmp.eq.f32.partialorder %v1959_v55, 8.507059e+37  ;;  %v1974_v19 = vand.u32 2147483647, %v6389_v3  ;;  %v4534_v26 = vor.u32 %v5170_v10, %v4533_v8 }
 0x30a   :  { %v1763_v4 = vsel %vm1762_vm8, %v6384_v58, %v1759_v18  ;;  %v1966_v45 = vmul.f32 %v6422_v43, %v6389_v3  ;;  %v1961_v58 = vand.u32 2147483648, %v6304_v56  ;;  %vm1971_vm11 = vweird.f32 %v6422_v43  ;;  %2321 = vmatpush.bf16.msra.mxu2 %v4576_v40  ;;  %2198 = vmatpush.bf16.msra.mxu1 %v4538_v11  ;;  %v1991_v40 = vld [vmem:[#allocation6 + $0x88] sm:$0xff]  ;;  %v1993_v10 = vld [vmem:[#allocation6 + $0x98] sm:$0xff] }
 0x30b   :  { %v1768_v50 = vsel %vm6412_vm5, %v1767_v44, %v1763_v4  ;;  %v4572_v20 = vor.u32 %v5179_v32, %v4571_v54  ;;  %v1958_v56 = vsel %vm6440_vm10, %v6336_v21, %v1954_v6  ;;  %vm6460_vm14 = vmor %vm1970_vm12, %vm1971_vm11  ;;  %v4568_v28 = vor.u32 %v5178_v12, %v4567_v60  ;;  %v5201_v6 = vld [vmem:[#allocation4 + $0xf0] sm:$0xf0]  ;;  %v5209_v60 = vld [vmem:[#allocation4 + $0xec] sm:$0xf0] }
 0x30c   :  { %v1859_v59 = vmul.f32 %v5464_v51, %v1768_v50  ;;  %v1967_v35 = vsub.f32 1.0, %v1966_v45  ;;  %2407 = vmatpush.bf16.msra.mxu3 %v4608_v23  ;;  %v5468_v37 = vpop.eup %5467  ;;  %v1962_v47 = vor.u32 1.1754944e-38, %v1961_v58  ;;  %v4600_v30 = vor.u32 %v5186_v13, %v4599_v46  ;;  %v5217_v46 = vld [vmem:[#allocation4 + $0xf8] sm:$0xf0]  ;;  %v4657_v21 = vld [vmem:[#allocation4 + $0xc4] sm:$0xf] }
 0x30d   :  { %2078 = vmatpush.bf16.msra.mxu0 %v4504_v5  ;;  %v1977_v3 = vor.u32 1.1754944e-38, %v1976_v22  ;;  %vm1975_vm15 = vcmp.eq.f32.partialorder %v1974_v19, 8.507059e+37  ;;  %v2013_v1 = vrot.slane %v1992_v49, 4  ;;  %v2352_v23 = vunpack.c.l.bf16 %v1991_v40  ;;  %v4661_v5 = vld [vmem:[#allocation4 + $0xe4] sm:$0xf] }
 0x30e   :  { %v6446_v7 = vadd.f32 %v1859_v59, %v1651_v31  ;;  %v1968_v0 = vmul.f32 %v6422_v43, %v1967_v35  ;;  %v1963_v29 = vsel %vm1960_vm13, %v1962_v47, %v1958_v56  ;;  %2322 = vmatpush.bf16.msra.mxu2 %v4572_v20  ;;  %2199 = vmatpush.bf16.msra.mxu1 %v4534_v26  ;;  %v2143_v54 = vunpack.c.l.bf16 %v1992_v49  ;;  %v4729_v22 = vld [vmem:[#allocation4 + $0xec] sm:$0xf]  ;;  %v5225_v19 = vld [vmem:[#allocation4 + $0xf4] sm:$0xf0] }
 0x30f   :  { %v1982_v14 = vmul.f32 %v5468_v37, %v1963_v29  ;;  %v2017_v52 = vunpack.c.l.bf16 %v2013_v1  ;;  %v4662_v63 = vor.u32 %v5201_v6, %v4661_v5  ;;  %v2353_v37 = vunpack.c.l.bf16 %v1993_v10  ;;  %v4691_v29 = vld [vmem:[#allocation4 + $0xc0] sm:$0xf] }
 0x310   :  { %5469 = vtanh.f32 %v6446_v7  ;;  %v1969_v15 = vadd.f32 %v6422_v43, %v1968_v0  ;;  %2408 = vmatpush.bf16.msra.mxu3 %v4604_v9  ;;  %v2262_v0 = vrot.slane %v1991_v40, 4  ;;  %v4696_v47 = vor.u32 %v5209_v60, %v4695_v61  ;;  %v4641_v61 = vld [vmem:[#allocation4 + $0x44] sm:$0xf] }
 0x311   :  { %2079 = vmatpush.bf16.msra.mxu0 %v4500_v57  ;;  %v1984_v51 = vpack.c.bf16 %v1982_v14, %v1982_v14  ;;  %v4761_v57 = vld [vmem:[#allocation4 + $0xe8] sm:$0xf]  ;;  %v2263_v26 = vrot.slane %v1993_v10, 4 }
 0x312   :  { %v1973_v33 = vsel %vm6460_vm14, %v6422_v43, %v1969_v15  ;;  %2323 = vmatpush.bf16.msra.mxu2 %v4568_v28  ;;  %v1990_v43 = vld [vmem:[#allocation6 + $0x80] sm:$0xff]  ;;  %v2266_v13 = vunpack.c.l.bf16 %v2262_v0  ;;  %2666 = vmatpush.bf16.msrb.mxu1 %v4696_v47  ;;  %v5200_v28 = vld [vmem:[#allocation4 + $0xd0] sm:$0xf0]  ;;  %v5215_v0 = vld [vmem:[#allocation4 + $0xb8] sm:$0xf0] }
 0x313   :  { %v1978_v16 = vsel %vm1975_vm15, %v1977_v3, %v1973_v33  ;;  %v2020_v34 = vunpack.c.l.b16 %v1984_v51  ;;  %v2012_v41 = vrot.slane %v1990_v43, 4  ;;  %v2142_v27 = vunpack.c.l.bf16 %v1990_v43  ;;  %v5208_v3 = vld [vmem:[#allocation4 + $0xcc] sm:$0xf0] }
 0x314   :  { %2409 = vmatpush.bf16.msra.mxu3 %v4600_v30  ;;  %v4658_v51 = vor.u32 %v5200_v28, %v4657_v21 }
 0x315   :  { %v2016_v44 = vunpack.c.l.bf16 %v2012_v41  ;;  %2546 = vmatpush.bf16.msrb.mxu0 %v4662_v63 }
 0x316   :  { %v5470_v38 = vpop.eup %5469 }
 0x317   :  { %v1983_v39 = vmul.f32 %v5470_v38, %v1978_v16  ;;  %v4725_v38 = vld [vmem:[#allocation4 + $0xcc] sm:$0xf] }
 0x319   :  { %v1985_v36 = vpack.c.bf16 %v1983_v39, %v1983_v39  ;;  %v5308_v18 = vpack.c.bf16 %v1983_v39, %v1982_v14  ;;  %v4730_v14 = vor.u32 %v5217_v46, %v4729_v22  ;;  %v4762_v39 = vor.u32 %v5225_v19, %v4761_v57  ;;  %2547 = vmatpush.bf16.msrb.mxu0 %v4658_v51  ;;  %v4753_v22 = vld [vmem:[#allocation4 + $0xa8] sm:$0xf]  ;;  %v5223_v46 = vld [vmem:[#allocation4 + $0xb4] sm:$0xf0]  ;;  %v4709_v19 = vld [vmem:[#allocation4 + $0x4c] sm:$0xf] }
 0x31b   :  { %5309 = vst [vmem:[#allocation12 + $0x18] sm:$0xff] %v5308_v18   ;;  %v2021_v17 = vunpack.c.l.b16 %v1985_v36  ;;  %v4692_v36 = vor.u32 %v5208_v3, %v4691_v29  ;;  %v5216_v18 = vld [vmem:[#allocation4 + $0xd8] sm:$0xf0]  ;;  %2790 = vmatpush.bf16.msrb.mxu2 %v4730_v14  ;;  %2876 = vmatpush.bf16.msrb.mxu3 %v4762_v39 }
 0x31d   :  { %v2022_v2 = vpack.c.b16 %v2021_v17, %v2020_v34  ;;  %v4757_v34 = vld [vmem:[#allocation4 + $0xc8] sm:$0xf]  ;;  %v5224_v17 = vld [vmem:[#allocation4 + $0xd4] sm:$0xf0]  ;;  %2667 = vmatpush.bf16.msrb.mxu1 %v4692_v36 }
 0x31f   :  { %2080 = vmatmul.bf16.vlgmr.msra.gmra.mxu0 %v2022_v2  ;;  %2200 = vmatmul.bf16.vlgmr.msra.gmra.mxu1 %v2022_v2 }
 0x320   :  { %2324 = vmatmul.bf16.vlgmr.msra.gmra.mxu2 %v2022_v2  ;;  %2410 = vmatmul.bf16.vlgmr.msra.gmra.mxu3 %v2022_v2 }
 0x39c   :  { %v2081_v31 = vpop.f32.mrf.mxu0  ;;  %v2201_v4 = vpop.f32.mrf.mxu1 }
 0x39d   :  { %v2082_v45 = vadd.f32 %v2081_v31, %v2016_v44  ;;  %v2202_v48 = vadd.f32 %v2201_v4, %v2142_v27  ;;  %v4726_v44 = vor.u32 %v5216_v18, %v4725_v38  ;;  %v2267_v31 = vunpack.c.l.bf16 %v2263_v26  ;;  %v4649_v38 = vld [vmem:[#allocation4 + $0x84] sm:$0xf] }
 0x39f   :  { %v4529_v25 = vmul.f32 -1.442695, %v2082_v45  ;;  %v4563_v50 = vmul.f32 -1.442695, %v2202_v48  ;;  %v4758_v45 = vor.u32 %v5224_v17, %v4757_v34  ;;  %2791 = vmatpush.bf16.msrb.mxu2 %v4726_v44  ;;  %v4754_v34 = vor.u32 %v5223_v46, %v4753_v22  ;;  %v5206_v17 = vld [vmem:[#allocation4 + $0x8c] sm:$0xf0] }
 0x3a1   :  { %5471 = vpow2.f32 %v4529_v25  ;;  %2877 = vmatpush.bf16.msrb.mxu3 %v4758_v45 }
 0x3a2   :  { %5473 = vpow2.f32 %v4563_v50 }
 0x3a3   :  { %v2411_v32 = vpop.f32.mrf.mxu3  ;;  %v2325_v56 = vpop.f32.mrf.mxu2 }
 0x3a4   :  { %v2412_v58 = vadd.f32 %v2411_v32, %v2352_v23  ;;  %v2083_v59 = vpop.f32.mrf.mxu0  ;;  %v2203_v35 = vpop.f32.mrf.mxu1  ;;  %v2326_v43 = vadd.f32 %v2325_v56, %v2266_v13  ;;  %v4653_v32 = vld [vmem:[#allocation4 + $0xa4] sm:$0xf] }
 0x3a5   :  { %v2084_v62 = vadd.f32 %v2083_v59, %v2017_v52  ;;  %v2204_v53 = vadd.f32 %v2203_v35, %v2143_v54  ;;  %2878 = vmatpush.bf16.msrb.mxu3 %v4754_v34  ;;  %v4671_v34 = vld [vmem:[#allocation4 + $0x20] sm:$0xf] }
 0x3a6   :  { %v4629_v24 = vmul.f32 -1.442695, %v2412_v58  ;;  %v5199_v58 = vld [vmem:[#allocation4 + $0xb0] sm:$0xf0] }
 0x3a7   :  { %v5472_v55 = vpop.eup %5471  ;;  %v4530_v11 = vmul.f32 -1.442695, %v2084_v62  ;;  %v4564_v9 = vmul.f32 -1.442695, %v2204_v53  ;;  %v4687_v53 = vld [vmem:[#allocation4 + $0xa0] sm:$0xf]  ;;  %v4654_v56 = vor.u32 %v5199_v58, %v4653_v32 }
 0x3a8   :  { %v5474_v8 = vpop.eup %5473  ;;  %v6467_v20 = vadd.f32 1.0, %v5472_v55  ;;  %5475 = vpow2.f32 %v4629_v24  ;;  %v5207_v24 = vld [vmem:[#allocation4 + $0xac] sm:$0xf0]  ;;  %v4721_v55 = vld [vmem:[#allocation4 + $0xac] sm:$0xf] }
 0x3a9   :  { %v6469_v12 = vadd.f32 1.0, %v5474_v8  ;;  %5477 = vpow2.f32 %v4530_v11  ;;  %v4722_v47 = vor.u32 %v5215_v0, %v4721_v55  ;;  %2548 = vmatpush.bf16.msrb.mxu0 %v4654_v56  ;;  %v4713_v32 = vld [vmem:[#allocation4 + $0x6c] sm:$0xf]  ;;  %v5213_v58 = vld [vmem:[#allocation4 + $0x78] sm:$0xf0] }
 0x3aa   :  { %5479 = vrcp.f32 %v6467_v20  ;;  %v2105_v30 = vand.u32 2147483648, %v6467_v20  ;;  %v2103_v25 = vand.u32 2147483647, %v6467_v20  ;;  %vm2099_vm0 = vweird.f32 %v6467_v20  ;;  %v5196_v56 = vld [vmem:[#allocation4 + $0x50] sm:$0xf0] }
 0x3ab   :  { %5481 = vrcp.f32 %v6469_v12  ;;  %v2413_v15 = vpop.f32.mrf.mxu3  ;;  %v2223_v50 = vand.u32 2147483647, %v6469_v12  ;;  %v2225_v54 = vand.u32 2147483648, %v6469_v12  ;;  %v2327_v62 = vpop.f32.mrf.mxu2  ;;  %vm2219_vm1 = vweird.f32 %v6469_v12  ;;  %2792 = vmatpush.bf16.msrb.mxu2 %v4722_v47  ;;  %v5204_v47 = vld [vmem:[#allocation4 + $0x4c] sm:$0xf0] }
 0x3ac   :  { %5483 = vpow2.f32 %v4564_v9  ;;  %v2414_v33 = vadd.f32 %v2413_v15, %v2353_v37  ;;  %v2106_v23 = vor.u32 1.1754944e-38, %v2105_v30  ;;  %vm6500_vm3 = vcmp.eq.f32.partialorder %v2103_v25, 8.507059e+37 }
 0x3ad   :  { %v2328_v9 = vadd.f32 %v2327_v62, %v2267_v31  ;;  %v4688_v37 = vor.u32 %v5207_v24, %v4687_v53  ;;  %vm6520_vm6 = vcmp.eq.f32.partialorder %v2223_v50, 8.507059e+37  ;;  %v2226_v21 = vor.u32 1.1754944e-38, %v2225_v54  ;;  %v5205_v54 = vld [vmem:[#allocation4 + $0x6c] sm:$0xf0] }
 0x3ae   :  { %v5476_v16 = vpop.eup %5475  ;;  %v4630_v4 = vmul.f32 -1.442695, %v2414_v33  ;;  %v4714_v15 = vor.u32 %v5213_v58, %v4713_v32  ;;  %v5194_v32 = vld [vmem:[#allocation4 + $0x10] sm:$0xf0]  ;;  %v4667_v58 = vld [vmem:[#allocation4] sm:$0xf] }
 0x3af   :  { %v5478_v2 = vpop.eup %5477  ;;  %v6474_v41 = vadd.f32 1.0, %v5476_v16  ;;  %2668 = vmatpush.bf16.msrb.mxu1 %v4688_v37  ;;  %v5198_v16 = vld [vmem:[#allocation4 + $0x90] sm:$0xf0]  ;;  %v4675_v37 = vld [vmem:[#allocation4 + $0x40] sm:$0xf] }
 0x3b0   :  { %v6476_v27 = vpop.eup %5479  ;;  %v6478_v49 = vadd.f32 1.0, %v5478_v2  ;;  %v4717_v2 = vld [vmem:[#allocation4 + $0x8c] sm:$0xf]  ;;  %v4650_v53 = vor.u32 %v5198_v16, %v4649_v38  ;;  %v4676_v33 = vor.u32 %v5204_v47, %v4675_v37 }
 0x3b1   :  { %v6480_v48 = vpop.eup %5481  ;;  %v2095_v1 = vmul.f32 %v6476_v27, %v6467_v20  ;;  %5485 = vrcp.f32 %v6474_v41  ;;  %vm2100_vm2 = vweird.f32 %v6476_v27  ;;  %v4741_v20 = vld [vmem:[#allocation4 + $0x48] sm:$0xf] }
 0x3b2   :  { %v5484_v40 = vpop.eup %5483  ;;  %v2215_v52 = vmul.f32 %v6480_v48, %v6469_v12  ;;  %5487 = vrcp.f32 %v6478_v49  ;;  %v2120_v6 = vand.u32 2147483648, %v6478_v49  ;;  %v2118_v63 = vand.u32 2147483647, %v6478_v49  ;;  %vm6515_vm5 = vmor %vm2099_vm0, %vm2100_vm2  ;;  %v4683_v12 = vld [vmem:[#allocation4 + $0x80] sm:$0xf]  ;;  %2549 = vmatpush.bf16.msrb.mxu0 %v4650_v53 }
 0x3b3   :  { %v2096_v59 = vsub.f32 1.0, %v2095_v1  ;;  %5489 = vtanh.f32 %v2326_v43  ;;  %v6492_v35 = vadd.f32 1.0, %v5484_v40  ;;  %vm2220_vm4 = vweird.f32 %v6480_v48  ;;  %v5214_v43 = vld [vmem:[#allocation4 + $0x98] sm:$0xf0]  ;;  %v5222_v1 = vld [vmem:[#allocation4 + $0x94] sm:$0xf0] }
 0x3b4   :  { %v2216_v5 = vsub.f32 1.0, %v2215_v52  ;;  %5491 = vpow2.f32 %v4630_v4  ;;  %v6524_v26 = vor.u32 1.1754944e-38, %v2120_v6  ;;  %vm6533_vm7 = vmor %vm2219_vm1, %vm2220_vm4  ;;  %vm6539_vm8 = vcmp.eq.f32.partialorder %v2118_v63, 8.507059e+37  ;;  %v4645_v40 = vld [vmem:[#allocation4 + $0x64] sm:$0xf] }
 0x3b5   :  { %v2097_v11 = vmul.f32 %v6476_v27, %v2096_v59  ;;  %5493 = vrcp.f32 %v6492_v35  ;;  %v2238_v14 = vand.u32 2147483647, %v6492_v35  ;;  %v2240_v3 = vand.u32 2147483648, %v6492_v35  ;;  %v4679_v52 = vld [vmem:[#allocation4 + $0x60] sm:$0xf] }
 0x3b6   :  { %v2217_v8 = vmul.f32 %v6480_v48, %v2216_v5  ;;  %5495 = vtanh.f32 %v2328_v9  ;;  %vm2114_vm10 = vweird.f32 %v6478_v49  ;;  %v4684_v24 = vor.u32 %v5206_v17, %v4683_v12  ;;  %v4745_v5 = vld [vmem:[#allocation4 + $0x68] sm:$0xf]  ;;  %v5221_v6 = vld [vmem:[#allocation4 + $0x74] sm:$0xf0]  ;;  %v5202_v53 = vld [vmem:[#allocation4 + $0xc] sm:$0xf0] }
 0x3b7   :  { %v6506_v10 = vpop.eup %5485  ;;  %v2098_v60 = vadd.f32 %v6476_v27, %v2097_v11  ;;  %v4718_v11 = vor.u32 %v5214_v43, %v4717_v2  ;;  %vm6582_vm13 = vcmp.eq.f32.partialorder %v2238_v14, 8.507059e+37  ;;  %vm2234_vm15 = vweird.f32 %v6492_v35  ;;  %v5203_v2 = vld [vmem:[#allocation4 + $0x2c] sm:$0xf0]  ;;  %v4705_v43 = vld [vmem:[#allocation4 + $0x2c] sm:$0xf] }
 0x3b8   :  { %v6509_v13 = vpop.eup %5487  ;;  %v2218_v57 = vadd.f32 %v6480_v48, %v2217_v8  ;;  %v6552_v18 = vmul.f32 %v6506_v10, %v6474_v41  ;;  %2669 = vmatpush.bf16.msrb.mxu1 %v4684_v24  ;;  %vm2430_vm14 = vweird.f32 %v6506_v10  ;;  %v2241_v16 = vor.u32 1.1754944e-38, %v2240_v3  ;;  %v4701_v24 = vld [vmem:[#allocation4 + $0xc] sm:$0xf] }
 0x3b9   :  { %v5490_v28 = vpop.eup %5489  ;;  %v2102_v29 = vsel %vm6515_vm5, %v6476_v27, %v2098_v60  ;;  %v2110_v30 = vmul.f32 %v6509_v13, %v6478_v49  ;;  %vm2115_vm9 = vweird.f32 %v6509_v13  ;;  %v4680_v60 = vor.u32 %v5205_v54, %v4679_v52  ;;  %2793 = vmatpush.bf16.msrb.mxu2 %v4718_v11  ;;  %v4633_v54 = vld [vmem:[#allocation4 + $0x4] sm:$0xf]  ;;  %v4733_v11 = vld [vmem:[#allocation4 + $0x8] sm:$0xf] }
 0x3ba   :  { %v5492_v39 = vpop.eup %5491  ;;  %v2107_v51 = vsel %vm6500_vm3, %v2106_v23, %v2102_v29  ;;  %v2222_v36 = vsel %vm6533_vm7, %v6480_v48, %v2218_v57  ;;  %v4749_v48 = vld [vmem:[#allocation4 + $0x88] sm:$0xf]  ;;  %v5197_v23 = vld [vmem:[#allocation4 + $0x70] sm:$0xf0]  ;;  %v2426_v59 = vsub.f32 1.0, %v6552_v18  ;;  %vm6572_vm11 = vmor %vm2114_vm10, %vm2115_vm9  ;;  %v4746_v57 = vor.u32 %v5221_v6, %v4745_v5 }
 0x3bb   :  { %v6554_v44 = vpop.eup %5493  ;;  %v2124_v27 = vmul.f32 %v2107_v51, %v6398_v42  ;;  %v2227_v31 = vsel %vm6520_vm6, %v2226_v21, %v2222_v36  ;;  %v2111_v4 = vsub.f32 1.0, %v2110_v30  ;;  %v6559_v45 = vadd.f32 1.0, %v5492_v39  ;;  %v5220_v30 = vld [vmem:[#allocation4 + $0x54] sm:$0xf0]  ;;  %v4637_v36 = vld [vmem:[#allocation4 + $0x24] sm:$0xf] }
 0x3bc   :  { %v2332_v25 = vmul.f32 %v5490_v28, %v2227_v31  ;;  %v2230_v50 = vmul.f32 %v6554_v44, %v6492_v35  ;;  %v4750_v63 = vor.u32 %v5222_v1, %v4749_v48  ;;  %vm2235_vm12 = vweird.f32 %v6554_v44  ;;  %v5496_v21 = vpop.eup %5495  ;;  %2670 = vmatpush.bf16.msrb.mxu1 %v4680_v60  ;;  %v5195_v18 = vld [vmem:[#allocation4 + $0x30] sm:$0xf0]  ;;  %v5219_v48 = vld [vmem:[#allocation4 + $0x34] sm:$0xf0]  ;;  %v5210_v5 = vld [vmem:[#allocation4 + $0x18] sm:$0xf0] }
 0x3bd   :  { %v2112_v42 = vmul.f32 %v6509_v13, %v2111_v4  ;;  %5497 = vrcp.f32 %v6559_v45  ;;  %v4646_v9 = vor.u32 %v5197_v23, %v4645_v40  ;;  %v2427_v38 = vmul.f32 %v6506_v10, %v2426_v59  ;;  %vm2236_vm0 = vmor %vm2234_vm15, %vm2235_vm12  ;;  %2794 = vmatpush.bf16.msrb.mxu2 %v4714_v15  ;;  %v4737_v4 = vld [vmem:[#allocation4 + $0x28] sm:$0xf] }
 0x3be   :  { %v2231_v62 = vsub.f32 1.0, %v2230_v50  ;;  %v6568_v55 = vadd.f32 %v2332_v25, %v2124_v27  ;;  %2879 = vmatpush.bf16.msrb.mxu3 %v4750_v63  ;;  %v4642_v12 = vor.u32 %v5196_v56, %v4641_v61  ;;  %v4742_v17 = vor.u32 %v5220_v30, %v4741_v20  ;;  %v5218_v63 = vld [vmem:[#allocation4 + $0x14] sm:$0xf0] }
 0x3bf   :  { %v2113_v49 = vadd.f32 %v6509_v13, %v2112_v42  ;;  %2550 = vmatpush.bf16.msrb.mxu0 %v4646_v9  ;;  %vm2429_vm1 = vweird.f32 %v6474_v41  ;;  %v4638_v25 = vor.u32 %v5195_v18, %v4637_v36  ;;  %v2428_v50 = vadd.f32 %v6506_v10, %v2427_v38 }
 0x3c0   :  { %v2232_v8 = vmul.f32 %v6554_v44, %v2231_v62  ;;  %5499 = vtanh.f32 %v6568_v55  ;;  %vm6610_vm2 = vmor %vm2429_vm1, %vm2430_vm14  ;;  %v2433_v40 = vand.u32 2147483647, %v6474_v41  ;;  %2671 = vmatpush.bf16.msrb.mxu1 %v4676_v33  ;;  %v4672_v42 = vor.u32 %v5203_v2, %v4671_v34  ;;  %v2466_v33 = vld [vmem:[#allocation6 + $0xb0] sm:$0xff] }
 0x3c1   :  { %v2117_v22 = vsel %vm6572_vm11, %v6509_v13, %v2113_v49  ;;  %v5212_v13 = vld [vmem:[#allocation4 + $0x58] sm:$0xf0]  ;;  %v4738_v62 = vor.u32 %v5219_v48, %v4737_v4  ;;  %v2450_v49 = vand.u32 2147483648, %v6559_v45  ;;  %vm2444_vm4 = vweird.f32 %v6559_v45 }
 0x3c2   :  { %v2122_v28 = vsel %vm6539_vm8, %v6524_v26, %v2117_v22  ;;  %v2233_v29 = vadd.f32 %v6554_v44, %v2232_v8  ;;  %2880 = vmatpush.bf16.msrb.mxu3 %v4746_v57  ;;  %v4710_v3 = vor.u32 %v5212_v13, %v4709_v19  ;;  %v4634_v8 = vor.u32 %v5194_v32, %v4633_v54  ;;  %v4829_v32 = vld [vmem:[#allocation4 + $0xe0] sm:$0xf] }
 0x3c3   :  { %v6592_v14 = vpop.eup %5497  ;;  %v2125_v26 = vmul.f32 %v2122_v28, %v6446_v7  ;;  %v5211_v7 = vld [vmem:[#allocation4 + $0x38] sm:$0xf0]  ;;  %2551 = vmatpush.bf16.msrb.mxu0 %v4642_v12  ;;  %vm2434_vm5 = vcmp.eq.f32.partialorder %v2433_v40, 8.507059e+37  ;;  %v2448_v9 = vand.u32 2147483647, %v6559_v45  ;;  %v4668_v60 = vor.u32 %v5202_v53, %v4667_v58 }
 0x3c4   :  { %v2237_v39 = vsel %vm2236_vm0, %v6554_v44, %v2233_v29  ;;  %v2440_v51 = vmul.f32 %v6592_v14, %v6559_v45  ;;  %v2435_v44 = vand.u32 2147483648, %v6474_v41  ;;  %vm2445_vm3 = vweird.f32 %v6592_v14  ;;  %2795 = vmatpush.bf16.msrb.mxu2 %v4710_v3  ;;  %2672 = vmatpush.bf16.msrb.mxu1 %v4672_v42  ;;  %v2465_v3 = vld [vmem:[#allocation6 + $0xa8] sm:$0xff]  ;;  %v2467_v53 = vld [vmem:[#allocation6 + $0xb8] sm:$0xff] }
 0x3c5   :  { %v2242_v35 = vsel %vm6582_vm13, %v2241_v16, %v2237_v39  ;;  %v4706_v59 = vor.u32 %v5211_v7, %v4705_v43  ;;  %v2432_v41 = vsel %vm6610_vm2, %v6506_v10, %v2428_v50  ;;  %vm6630_vm6 = vmor %vm2444_vm4, %vm2445_vm3  ;;  %v4702_v56 = vor.u32 %v5210_v5, %v4701_v24  ;;  %v5233_v50 = vld [vmem:[#allocation4 + $0xf0] sm:$0xf0]  ;;  %v5241_v24 = vld [vmem:[#allocation4 + $0xec] sm:$0xf0] }
 0x3c6   :  { %v2333_v27 = vmul.f32 %v5496_v21, %v2242_v35  ;;  %v2441_v31 = vsub.f32 1.0, %v2440_v51  ;;  %2881 = vmatpush.bf16.msrb.mxu3 %v4742_v17  ;;  %v5500_v6 = vpop.eup %5499  ;;  %v2436_v0 = vor.u32 1.1754944e-38, %v2435_v44  ;;  %v4734_v47 = vor.u32 %v5218_v63, %v4733_v11  ;;  %v5249_v11 = vld [vmem:[#allocation4 + $0xf8] sm:$0xf0]  ;;  %v4791_v10 = vld [vmem:[#allocation4 + $0xc4] sm:$0xf] }
 0x3c7   :  { %2552 = vmatpush.bf16.msrb.mxu0 %v4638_v25  ;;  %v2451_v45 = vor.u32 1.1754944e-38, %v2450_v49  ;;  %vm2449_vm7 = vcmp.eq.f32.partialorder %v2448_v9, 8.507059e+37  ;;  %v2487_v18 = vrot.slane %v2466_v33, 4  ;;  %v2826_v17 = vunpack.c.l.bf16 %v2465_v3  ;;  %v4795_v25 = vld [vmem:[#allocation4 + $0xe4] sm:$0xf] }
 0x3c8   :  { %v6616_v23 = vadd.f32 %v2333_v27, %v2125_v26  ;;  %v2442_v52 = vmul.f32 %v6592_v14, %v2441_v31  ;;  %v2437_v37 = vsel %vm2434_vm5, %v2436_v0, %v2432_v41  ;;  %2796 = vmatpush.bf16.msrb.mxu2 %v4706_v59  ;;  %2673 = vmatpush.bf16.msrb.mxu1 %v4668_v60  ;;  %v2617_v43 = vunpack.c.l.bf16 %v2466_v33  ;;  %v4863_v49 = vld [vmem:[#allocation4 + $0xec] sm:$0xf]  ;;  %v5257_v9 = vld [vmem:[#allocation4 + $0xf4] sm:$0xf0] }
 0x3c9   :  { %v2456_v46 = vmul.f32 %v5500_v6, %v2437_v37  ;;  %v2491_v2 = vunpack.c.l.bf16 %v2487_v18  ;;  %v4796_v54 = vor.u32 %v5233_v50, %v4795_v25  ;;  %v2827_v6 = vunpack.c.l.bf16 %v2467_v53  ;;  %v4825_v37 = vld [vmem:[#allocation4 + $0xc0] sm:$0xf] }
 0x3ca   :  { %5501 = vtanh.f32 %v6616_v23  ;;  %v2443_v61 = vadd.f32 %v6592_v14, %v2442_v52  ;;  %2882 = vmatpush.bf16.msrb.mxu3 %v4738_v62  ;;  %v2736_v52 = vrot.slane %v2465_v3, 4  ;;  %v4830_v0 = vor.u32 %v5241_v24, %v4829_v32  ;;  %v4775_v32 = vld [vmem:[#allocation4 + $0x44] sm:$0xf] }
 0x3cb   :  { %2553 = vmatpush.bf16.msrb.mxu0 %v4634_v8  ;;  %v2458_v21 = vpack.c.bf16 %v2456_v46, %v2456_v46  ;;  %v4895_v8 = vld [vmem:[#allocation4 + $0xe8] sm:$0xf]  ;;  %v2737_v60 = vrot.slane %v2467_v53, 4 }
 0x3cc   :  { %v2447_v22 = vsel %vm6630_vm6, %v6592_v14, %v2443_v61  ;;  %2797 = vmatpush.bf16.msrb.mxu2 %v4702_v56  ;;  %v2464_v14 = vld [vmem:[#allocation6 + $0xa0] sm:$0xff]  ;;  %v2740_v63 = vunpack.c.l.bf16 %v2736_v52  ;;  %3140 = vmatpush.bf16.msra.mxu1 %v4830_v0  ;;  %v5232_v56 = vld [vmem:[#allocation4 + $0xd0] sm:$0xf0]  ;;  %v5247_v52 = vld [vmem:[#allocation4 + $0xb8] sm:$0xf0] }
 0x3cd   :  { %v2452_v57 = vsel %vm2449_vm7, %v2451_v45, %v2447_v22  ;;  %v2494_v13 = vunpack.c.l.b16 %v2458_v21  ;;  %v2486_v38 = vrot.slane %v2464_v14, 4  ;;  %v2616_v12 = vunpack.c.l.bf16 %v2464_v14  ;;  %v5240_v45 = vld [vmem:[#allocation4 + $0xcc] sm:$0xf0] }
 0x3ce   :  { %2883 = vmatpush.bf16.msrb.mxu3 %v4734_v47  ;;  %v4792_v21 = vor.u32 %v5232_v56, %v4791_v10 }
 0x3cf   :  { %v2490_v16 = vunpack.c.l.bf16 %v2486_v38  ;;  %3020 = vmatpush.bf16.msra.mxu0 %v4796_v54 }
 0x3d0   :  { %v5502_v15 = vpop.eup %5501 }
 0x3d1   :  { %v2457_v19 = vmul.f32 %v5502_v15, %v2452_v57  ;;  %v4859_v15 = vld [vmem:[#allocation4 + $0xcc] sm:$0xf] }
 0x3d3   :  { %v2459_v28 = vpack.c.bf16 %v2457_v19, %v2457_v19  ;;  %v5313_v29 = vpack.c.bf16 %v2457_v19, %v2456_v46  ;;  %v4864_v46 = vor.u32 %v5249_v11, %v4863_v49  ;;  %v4896_v19 = vor.u32 %v5257_v9, %v4895_v8  ;;  %3021 = vmatpush.bf16.msra.mxu0 %v4792_v21  ;;  %v4887_v49 = vld [vmem:[#allocation4 + $0xa8] sm:$0xf]  ;;  %v5255_v11 = vld [vmem:[#allocation4 + $0xb4] sm:$0xf0]  ;;  %v4843_v9 = vld [vmem:[#allocation4 + $0x4c] sm:$0xf] }
 0x3d5   :  { %5314 = vst [vmem:[#allocation12 + $0x20] sm:$0xff] %v5313_v29   ;;  %v2495_v20 = vunpack.c.l.b16 %v2459_v28  ;;  %v4826_v28 = vor.u32 %v5240_v45, %v4825_v37  ;;  %v5248_v29 = vld [vmem:[#allocation4 + $0xd8] sm:$0xf0]  ;;  %3264 = vmatpush.bf16.msra.mxu2 %v4864_v46  ;;  %3350 = vmatpush.bf16.msra.mxu3 %v4896_v19 }
 0x3d7   :  { %v2496_v30 = vpack.c.b16 %v2495_v20, %v2494_v13  ;;  %v4891_v13 = vld [vmem:[#allocation4 + $0xc8] sm:$0xf]  ;;  %v5256_v20 = vld [vmem:[#allocation4 + $0xd4] sm:$0xf0]  ;;  %3141 = vmatpush.bf16.msra.mxu1 %v4826_v28 }
 0x3d9   :  { %2554 = vmatmul.bf16.vlgmr.msrb.gmra.mxu0 %v2496_v30  ;;  %2674 = vmatmul.bf16.vlgmr.msrb.gmra.mxu1 %v2496_v30 }
 0x3da   :  { %2798 = vmatmul.bf16.vlgmr.msrb.gmra.mxu2 %v2496_v30  ;;  %2884 = vmatmul.bf16.vlgmr.msrb.gmra.mxu3 %v2496_v30 }
 0x456   :  { %v2555_v26 = vpop.f32.mrf.mxu0  ;;  %v2675_v39 = vpop.f32.mrf.mxu1 }
 0x457   :  { %v2556_v51 = vadd.f32 %v2555_v26, %v2490_v16  ;;  %v2676_v36 = vadd.f32 %v2675_v39, %v2616_v12  ;;  %v4860_v16 = vor.u32 %v5248_v29, %v4859_v15  ;;  %v2741_v26 = vunpack.c.l.bf16 %v2737_v60  ;;  %v4783_v15 = vld [vmem:[#allocation4 + $0x84] sm:$0xf] }
 0x459   :  { %v4663_v34 = vmul.f32 -1.442695, %v2556_v51  ;;  %v4697_v35 = vmul.f32 -1.442695, %v2676_v36  ;;  %v4892_v51 = vor.u32 %v5256_v20, %v4891_v13  ;;  %3265 = vmatpush.bf16.msra.mxu2 %v4860_v16  ;;  %v4888_v13 = vor.u32 %v5255_v11, %v4887_v49  ;;  %v5238_v20 = vld [vmem:[#allocation4 + $0x8c] sm:$0xf0] }
 0x45b   :  { %5503 = vpow2.f32 %v4663_v34  ;;  %3351 = vmatpush.bf16.msra.mxu3 %v4892_v51 }
 0x45c   :  { %5505 = vpow2.f32 %v4697_v35 }
 0x45d   :  { %v2885_v7 = vpop.f32.mrf.mxu3  ;;  %v2799_v41 = vpop.f32.mrf.mxu2 }
 0x45e   :  { %v2886_v44 = vadd.f32 %v2885_v7, %v2826_v17  ;;  %v2557_v27 = vpop.f32.mrf.mxu0  ;;  %v2677_v31 = vpop.f32.mrf.mxu1  ;;  %v2800_v14 = vadd.f32 %v2799_v41, %v2740_v63  ;;  %v4787_v7 = vld [vmem:[#allocation4 + $0xa4] sm:$0xf] }
 0x45f   :  { %v2558_v4 = vadd.f32 %v2557_v27, %v2491_v2  ;;  %v2678_v48 = vadd.f32 %v2677_v31, %v2617_v43  ;;  %3352 = vmatpush.bf16.msra.mxu3 %v4888_v13  ;;  %v4805_v13 = vld [vmem:[#allocation4 + $0x20] sm:$0xf] }
 0x460   :  { %v4763_v1 = vmul.f32 -1.442695, %v2886_v44  ;;  %v5231_v44 = vld [vmem:[#allocation4 + $0xb0] sm:$0xf0] }
 0x461   :  { %v5504_v40 = vpop.eup %5503  ;;  %v4664_v42 = vmul.f32 -1.442695, %v2558_v4  ;;  %v4698_v62 = vmul.f32 -1.442695, %v2678_v48  ;;  %v4821_v48 = vld [vmem:[#allocation4 + $0xa0] sm:$0xf]  ;;  %v4788_v41 = vor.u32 %v5231_v44, %v4787_v7 }
 0x462   :  { %v5506_v58 = vpop.eup %5505  ;;  %v6637_v59 = vadd.f32 1.0, %v5504_v40  ;;  %5507 = vpow2.f32 %v4763_v1  ;;  %v5239_v1 = vld [vmem:[#allocation4 + $0xac] sm:$0xf0]  ;;  %v4855_v40 = vld [vmem:[#allocation4 + $0xac] sm:$0xf] }
 0x463   :  { %v6639_v5 = vadd.f32 1.0, %v5506_v58  ;;  %5509 = vpow2.f32 %v4664_v42  ;;  %v4856_v0 = vor.u32 %v5247_v52, %v4855_v40  ;;  %3022 = vmatpush.bf16.msra.mxu0 %v4788_v41  ;;  %v4847_v7 = vld [vmem:[#allocation4 + $0x6c] sm:$0xf]  ;;  %v5245_v44 = vld [vmem:[#allocation4 + $0x78] sm:$0xf0] }
 0x464   :  { %5511 = vrcp.f32 %v6637_v59  ;;  %v2579_v47 = vand.u32 2147483648, %v6637_v59  ;;  %v2577_v34 = vand.u32 2147483647, %v6637_v59  ;;  %vm2573_vm8 = vweird.f32 %v6637_v59  ;;  %v5228_v41 = vld [vmem:[#allocation4 + $0x50] sm:$0xf0] }
 0x465   :  { %5513 = vrcp.f32 %v6639_v5  ;;  %v2887_v61 = vpop.f32.mrf.mxu3  ;;  %v2697_v35 = vand.u32 2147483647, %v6639_v5  ;;  %v2699_v43 = vand.u32 2147483648, %v6639_v5  ;;  %v2801_v4 = vpop.f32.mrf.mxu2  ;;  %vm2693_vm9 = vweird.f32 %v6639_v5  ;;  %3266 = vmatpush.bf16.msra.mxu2 %v4856_v0  ;;  %v5236_v0 = vld [vmem:[#allocation4 + $0x4c] sm:$0xf0] }
 0x466   :  { %5515 = vpow2.f32 %v4698_v62  ;;  %v2888_v22 = vadd.f32 %v2887_v61, %v2827_v6  ;;  %v2580_v17 = vor.u32 1.1754944e-38, %v2579_v47  ;;  %vm6670_vm11 = vcmp.eq.f32.partialorder %v2577_v34, 8.507059e+37 }
 0x467   :  { %v2802_v62 = vadd.f32 %v2801_v4, %v2741_v26  ;;  %v4822_v6 = vor.u32 %v5239_v1, %v4821_v48  ;;  %vm6690_vm14 = vcmp.eq.f32.partialorder %v2697_v35, 8.507059e+37  ;;  %v2700_v10 = vor.u32 1.1754944e-38, %v2699_v43  ;;  %v5237_v43 = vld [vmem:[#allocation4 + $0x6c] sm:$0xf0] }
 0x468   :  { %v5508_v57 = vpop.eup %5507  ;;  %v4764_v39 = vmul.f32 -1.442695, %v2888_v22  ;;  %v4848_v61 = vor.u32 %v5245_v44, %v4847_v7  ;;  %v5226_v7 = vld [vmem:[#allocation4 + $0x10] sm:$0xf0]  ;;  %v4801_v44 = vld [vmem:[#allocation4] sm:$0xf] }
 0x469   :  { %v5510_v30 = vpop.eup %5509  ;;  %v6644_v38 = vadd.f32 1.0, %v5508_v57  ;;  %3142 = vmatpush.bf16.msra.mxu1 %v4822_v6  ;;  %v5230_v57 = vld [vmem:[#allocation4 + $0x90] sm:$0xf0]  ;;  %v4809_v6 = vld [vmem:[#allocation4 + $0x40] sm:$0xf] }
 0x46a   :  { %v6646_v12 = vpop.eup %5511  ;;  %v6648_v33 = vadd.f32 1.0, %v5510_v30  ;;  %v4851_v30 = vld [vmem:[#allocation4 + $0x8c] sm:$0xf]  ;;  %v4784_v48 = vor.u32 %v5230_v57, %v4783_v15  ;;  %v4810_v22 = vor.u32 %v5236_v0, %v4809_v6 }
 0x46b   :  { %v6650_v36 = vpop.eup %5513  ;;  %v2569_v18 = vmul.f32 %v6646_v12, %v6637_v59  ;;  %5517 = vrcp.f32 %v6644_v38  ;;  %vm2574_vm10 = vweird.f32 %v6646_v12  ;;  %v4875_v59 = vld [vmem:[#allocation4 + $0x48] sm:$0xf] }
 0x46c   :  { %v5516_v3 = vpop.eup %5515  ;;  %v2689_v2 = vmul.f32 %v6650_v36, %v6639_v5  ;;  %5519 = vrcp.f32 %v6648_v33  ;;  %v2594_v50 = vand.u32 2147483648, %v6648_v33  ;;  %v2592_v54 = vand.u32 2147483647, %v6648_v33  ;;  %vm6685_vm13 = vmor %vm2573_vm8, %vm2574_vm10  ;;  %v4817_v5 = vld [vmem:[#allocation4 + $0x80] sm:$0xf]  ;;  %3023 = vmatpush.bf16.msra.mxu0 %v4784_v48 }
 0x46d   :  { %v2570_v27 = vsub.f32 1.0, %v2569_v18  ;;  %5521 = vtanh.f32 %v2800_v14  ;;  %v6662_v31 = vadd.f32 1.0, %v5516_v3  ;;  %vm2694_vm12 = vweird.f32 %v6650_v36  ;;  %v5246_v14 = vld [vmem:[#allocation4 + $0x98] sm:$0xf0]  ;;  %v5254_v18 = vld [vmem:[#allocation4 + $0x94] sm:$0xf0] }
 0x46e   :  { %v2690_v25 = vsub.f32 1.0, %v2689_v2  ;;  %5523 = vpow2.f32 %v4764_v39  ;;  %v6694_v60 = vor.u32 1.1754944e-38, %v2594_v50  ;;  %vm6703_vm15 = vmor %vm2693_vm9, %vm2694_vm12  ;;  %vm6709_vm0 = vcmp.eq.f32.partialorder %v2592_v54, 8.507059e+37  ;;  %v4779_v3 = vld [vmem:[#allocation4 + $0x64] sm:$0xf] }
 0x46f   :  { %v2571_v42 = vmul.f32 %v6646_v12, %v2570_v27  ;;  %5525 = vrcp.f32 %v6662_v31  ;;  %v2712_v46 = vand.u32 2147483647, %v6662_v31  ;;  %v2714_v45 = vand.u32 2147483648, %v6662_v31  ;;  %v4813_v2 = vld [vmem:[#allocation4 + $0x60] sm:$0xf] }
 0x470   :  { %v2691_v58 = vmul.f32 %v6650_v36, %v2690_v25  ;;  %5527 = vtanh.f32 %v2802_v62  ;;  %vm2588_vm2 = vweird.f32 %v6648_v33  ;;  %v4818_v1 = vor.u32 %v5238_v20, %v4817_v5  ;;  %v4879_v25 = vld [vmem:[#allocation4 + $0x68] sm:$0xf]  ;;  %v5253_v50 = vld [vmem:[#allocation4 + $0x74] sm:$0xf0]  ;;  %v5234_v48 = vld [vmem:[#allocation4 + $0xc] sm:$0xf0] }
 0x471   :  { %v6676_v53 = vpop.eup %5517  ;;  %v2572_v24 = vadd.f32 %v6646_v12, %v2571_v42  ;;  %v4852_v42 = vor.u32 %v5246_v14, %v4851_v30  ;;  %vm6752_vm5 = vcmp.eq.f32.partialorder %v2712_v46, 8.507059e+37  ;;  %vm2708_vm7 = vweird.f32 %v6662_v31  ;;  %v5235_v30 = vld [vmem:[#allocation4 + $0x2c] sm:$0xf0]  ;;  %v4839_v14 = vld [vmem:[#allocation4 + $0x2c] sm:$0xf] }
 0x472   :  { %v6679_v63 = vpop.eup %5519  ;;  %v2692_v8 = vadd.f32 %v6650_v36, %v2691_v58  ;;  %v6722_v29 = vmul.f32 %v6676_v53, %v6644_v38  ;;  %3143 = vmatpush.bf16.msra.mxu1 %v4818_v1  ;;  %vm2904_vm6 = vweird.f32 %v6676_v53  ;;  %v2715_v57 = vor.u32 1.1754944e-38, %v2714_v45  ;;  %v4835_v1 = vld [vmem:[#allocation4 + $0xc] sm:$0xf] }
 0x473   :  { %v5522_v56 = vpop.eup %5521  ;;  %v2576_v37 = vsel %vm6685_vm13, %v6646_v12, %v2572_v24  ;;  %v2584_v47 = vmul.f32 %v6679_v63, %v6648_v33  ;;  %vm2589_vm1 = vweird.f32 %v6679_v63  ;;  %v4814_v24 = vor.u32 %v5237_v43, %v4813_v2  ;;  %3267 = vmatpush.bf16.msra.mxu2 %v4852_v42  ;;  %v4767_v43 = vld [vmem:[#allocation4 + $0x4] sm:$0xf]  ;;  %v4867_v42 = vld [vmem:[#allocation4 + $0x8] sm:$0xf] }
 0x474   :  { %v5524_v19 = vpop.eup %5523  ;;  %v2581_v21 = vsel %vm6670_vm11, %v2580_v17, %v2576_v37  ;;  %v2696_v28 = vsel %vm6703_vm15, %v6650_v36, %v2692_v8  ;;  %v4883_v36 = vld [vmem:[#allocation4 + $0x88] sm:$0xf]  ;;  %v5229_v17 = vld [vmem:[#allocation4 + $0x70] sm:$0xf0]  ;;  %v2900_v27 = vsub.f32 1.0, %v6722_v29  ;;  %vm6742_vm3 = vmor %vm2588_vm2, %vm2589_vm1  ;;  %v4880_v8 = vor.u32 %v5253_v50, %v4879_v25 }
 0x475   :  { %v6724_v16 = vpop.eup %5525  ;;  %v2598_v12 = vmul.f32 %v2581_v21, %v6568_v55  ;;  %v2701_v26 = vsel %vm6690_vm14, %v2700_v10, %v2696_v28  ;;  %v2585_v39 = vsub.f32 1.0, %v2584_v47  ;;  %v6729_v51 = vadd.f32 1.0, %v5524_v19  ;;  %v5252_v47 = vld [vmem:[#allocation4 + $0x54] sm:$0xf0]  ;;  %v4771_v28 = vld [vmem:[#allocation4 + $0x24] sm:$0xf] }
 0x476   :  { %v2806_v34 = vmul.f32 %v5522_v56, %v2701_v26  ;;  %v2704_v35 = vmul.f32 %v6724_v16, %v6662_v31  ;;  %v4884_v54 = vor.u32 %v5254_v18, %v4883_v36  ;;  %vm2709_vm4 = vweird.f32 %v6724_v16  ;;  %v5528_v10 = vpop.eup %5527  ;;  %3144 = vmatpush.bf16.msra.mxu1 %v4814_v24  ;;  %v5227_v29 = vld [vmem:[#allocation4 + $0x30] sm:$0xf0]  ;;  %v5251_v36 = vld [vmem:[#allocation4 + $0x34] sm:$0xf0]  ;;  %v5242_v25 = vld [vmem:[#allocation4 + $0x18] sm:$0xf0] }
 0x477   :  { %v2586_v55 = vmul.f32 %v6679_v63, %v2585_v39  ;;  %5529 = vrcp.f32 %v6729_v51  ;;  %v4780_v62 = vor.u32 %v5229_v17, %v4779_v3  ;;  %v2901_v15 = vmul.f32 %v6676_v53, %v2900_v27  ;;  %vm2710_vm8 = vmor %vm2708_vm7, %vm2709_vm4  ;;  %3268 = vmatpush.bf16.msra.mxu2 %v4848_v61  ;;  %v4871_v39 = vld [vmem:[#allocation4 + $0x28] sm:$0xf] }
 0x478   :  { %v2705_v4 = vsub.f32 1.0, %v2704_v35  ;;  %v6738_v40 = vadd.f32 %v2806_v34, %v2598_v12  ;;  %3353 = vmatpush.bf16.msra.mxu3 %v4884_v54  ;;  %v4776_v5 = vor.u32 %v5228_v41, %v4775_v32  ;;  %v4876_v20 = vor.u32 %v5252_v47, %v4875_v59  ;;  %v5250_v54 = vld [vmem:[#allocation4 + $0x14] sm:$0xf0] }
 0x479   :  { %v2587_v33 = vadd.f32 %v6679_v63, %v2586_v55  ;;  %3024 = vmatpush.bf16.msra.mxu0 %v4780_v62  ;;  %vm2903_vm9 = vweird.f32 %v6644_v38  ;;  %v4772_v34 = vor.u32 %v5227_v29, %v4771_v28  ;;  %v2902_v35 = vadd.f32 %v6676_v53, %v2901_v15 }
 0x47a   :  { %v2706_v58 = vmul.f32 %v6724_v16, %v2705_v4  ;;  %5531 = vtanh.f32 %v6738_v40  ;;  %vm6780_vm10 = vmor %vm2903_vm9, %vm2904_vm6  ;;  %v2907_v3 = vand.u32 2147483647, %v6644_v38  ;;  %3145 = vmatpush.bf16.msra.mxu1 %v4810_v22  ;;  %v4806_v55 = vor.u32 %v5235_v30, %v4805_v13  ;;  %v2940_v22 = vld [vmem:[#allocation6 + $0xd0] sm:$0xff] }
 0x47b   :  { %v2591_v49 = vsel %vm6742_vm3, %v6679_v63, %v2587_v33  ;;  %v5244_v63 = vld [vmem:[#allocation4 + $0x58] sm:$0xf0]  ;;  %v4872_v4 = vor.u32 %v5251_v36, %v4871_v39  ;;  %v2924_v33 = vand.u32 2147483648, %v6729_v51  ;;  %vm2918_vm12 = vweird.f32 %v6729_v51 }
 0x47c   :  { %v2596_v56 = vsel %vm6709_vm0, %v6694_v60, %v2591_v49  ;;  %v2707_v37 = vadd.f32 %v6724_v16, %v2706_v58  ;;  %3354 = vmatpush.bf16.msra.mxu3 %v4880_v8  ;;  %v4844_v45 = vor.u32 %v5244_v63, %v4843_v9  ;;  %v4768_v58 = vor.u32 %v5226_v7, %v4767_v43  ;;  %v4963_v7 = vld [vmem:[#allocation4 + $0xe0] sm:$0xf] }
 0x47d   :  { %v6762_v46 = vpop.eup %5529  ;;  %v2599_v60 = vmul.f32 %v2596_v56, %v6616_v23  ;;  %v5243_v23 = vld [vmem:[#allocation4 + $0x38] sm:$0xf0]  ;;  %3025 = vmatpush.bf16.msra.mxu0 %v4776_v5  ;;  %vm2908_vm13 = vcmp.eq.f32.partialorder %v2907_v3, 8.507059e+37  ;;  %v2922_v62 = vand.u32 2147483647, %v6729_v51  ;;  %v4802_v24 = vor.u32 %v5234_v48, %v4801_v44 }
 0x47e   :  { %v2711_v19 = vsel %vm2710_vm8, %v6724_v16, %v2707_v37  ;;  %v2914_v21 = vmul.f32 %v6762_v46, %v6729_v51  ;;  %v2909_v16 = vand.u32 2147483648, %v6644_v38  ;;  %vm2919_vm11 = vweird.f32 %v6762_v46  ;;  %3269 = vmatpush.bf16.msra.mxu2 %v4844_v45  ;;  %3146 = vmatpush.bf16.msra.mxu1 %v4806_v55  ;;  %v2939_v45 = vld [vmem:[#allocation6 + $0xc8] sm:$0xff]  ;;  %v2941_v48 = vld [vmem:[#allocation6 + $0xd8] sm:$0xff] }
 0x47f   :  { %v2716_v31 = vsel %vm6752_vm5, %v2715_v57, %v2711_v19  ;;  %v4840_v27 = vor.u32 %v5243_v23, %v4839_v14  ;;  %v2906_v38 = vsel %vm6780_vm10, %v6676_v53, %v2902_v35  ;;  %vm6800_vm14 = vmor %vm2918_vm12, %vm2919_vm11  ;;  %v4836_v41 = vor.u32 %v5242_v25, %v4835_v1  ;;  %v5265_v35 = vld [vmem:[#allocation4 + $0xf0] sm:$0xf0]  ;;  %v5273_v1 = vld [vmem:[#allocation4 + $0xec] sm:$0xf0] }
 0x480   :  { %v2807_v12 = vmul.f32 %v5528_v10, %v2716_v31  ;;  %v2915_v26 = vsub.f32 1.0, %v2914_v21  ;;  %3355 = vmatpush.bf16.msra.mxu3 %v4876_v20  ;;  %v5532_v50 = vpop.eup %5531  ;;  %v2910_v52 = vor.u32 1.1754944e-38, %v2909_v16  ;;  %v4868_v0 = vor.u32 %v5250_v54, %v4867_v42  ;;  %v5281_v42 = vld [vmem:[#allocation4 + $0xf8] sm:$0xf0]  ;;  %v4925_v53 = vld [vmem:[#allocation4 + $0xc4] sm:$0xf] }
 0x481   :  { %3026 = vmatpush.bf16.msra.mxu0 %v4772_v34  ;;  %v2925_v51 = vor.u32 1.1754944e-38, %v2924_v33  ;;  %vm2923_vm15 = vcmp.eq.f32.partialorder %v2922_v62, 8.507059e+37  ;;  %v2961_v29 = vrot.slane %v2940_v22, 4  ;;  %v3300_v20 = vunpack.c.l.bf16 %v2939_v45  ;;  %v4929_v34 = vld [vmem:[#allocation4 + $0xe4] sm:$0xf] }
 0x482   :  { %v6786_v17 = vadd.f32 %v2807_v12, %v2599_v60  ;;  %v2916_v2 = vmul.f32 %v6762_v46, %v2915_v26  ;;  %v2911_v6 = vsel %vm2908_vm13, %v2910_v52, %v2906_v38  ;;  %3270 = vmatpush.bf16.msra.mxu2 %v4840_v27  ;;  %3147 = vmatpush.bf16.msra.mxu1 %v4802_v24  ;;  %v3091_v14 = vunpack.c.l.bf16 %v2940_v22  ;;  %v4997_v33 = vld [vmem:[#allocation4 + $0xec] sm:$0xf]  ;;  %v5289_v62 = vld [vmem:[#allocation4 + $0xf4] sm:$0xf0] }
 0x483   :  { %v2930_v11 = vmul.f32 %v5532_v50, %v2911_v6  ;;  %v2965_v30 = vunpack.c.l.bf16 %v2961_v29  ;;  %v4930_v43 = vor.u32 %v5265_v35, %v4929_v34  ;;  %v3301_v50 = vunpack.c.l.bf16 %v2941_v48  ;;  %v4959_v6 = vld [vmem:[#allocation4 + $0xc0] sm:$0xf] }
 0x484   :  { %5533 = vtanh.f32 %v6786_v17  ;;  %v2917_v32 = vadd.f32 %v6762_v46, %v2916_v2  ;;  %3356 = vmatpush.bf16.msra.mxu3 %v4872_v4  ;;  %v3210_v2 = vrot.slane %v2939_v45, 4  ;;  %v4964_v52 = vor.u32 %v5273_v1, %v4963_v7  ;;  %v4909_v7 = vld [vmem:[#allocation4 + $0x44] sm:$0xf] }
 0x485   :  { %3027 = vmatpush.bf16.msra.mxu0 %v4768_v58  ;;  %v2932_v10 = vpack.c.bf16 %v2930_v11, %v2930_v11  ;;  %v5029_v58 = vld [vmem:[#allocation4 + $0xe8] sm:$0xf]  ;;  %v3211_v24 = vrot.slane %v2941_v48, 4 }
 0x486   :  { %v2921_v49 = vsel %vm6800_vm14, %v6762_v46, %v2917_v32  ;;  %3271 = vmatpush.bf16.msra.mxu2 %v4836_v41  ;;  %v2938_v46 = vld [vmem:[#allocation6 + $0xc0] sm:$0xff]  ;;  %v3214_v54 = vunpack.c.l.bf16 %v3210_v2  ;;  %3614 = vmatpush.bf16.msrb.mxu1 %v4964_v52  ;;  %v5264_v41 = vld [vmem:[#allocation4 + $0xd0] sm:$0xf0]  ;;  %v5279_v2 = vld [vmem:[#allocation4 + $0xb8] sm:$0xf0] }
 0x487   :  { %v2926_v8 = vsel %vm2923_vm15, %v2925_v51, %v2921_v49  ;;  %v2968_v63 = vunpack.c.l.b16 %v2932_v10  ;;  %v2960_v15 = vrot.slane %v2938_v46, 4  ;;  %v3090_v5 = vunpack.c.l.bf16 %v2938_v46  ;;  %v5272_v51 = vld [vmem:[#allocation4 + $0xcc] sm:$0xf0] }
 0x488   :  { %3357 = vmatpush.bf16.msra.mxu3 %v4868_v0  ;;  %v4926_v10 = vor.u32 %v5264_v41, %v4925_v53 }
 0x489   :  { %v2964_v57 = vunpack.c.l.bf16 %v2960_v15  ;;  %3494 = vmatpush.bf16.msrb.mxu0 %v4930_v43 }
 0x48a   :  { %v5534_v61 = vpop.eup %5533 }
 0x48b   :  { %v2931_v9 = vmul.f32 %v5534_v61, %v2926_v8  ;;  %v4993_v61 = vld [vmem:[#allocation4 + $0xcc] sm:$0xf] }
 0x48d   :  { %v2933_v56 = vpack.c.bf16 %v2931_v9, %v2931_v9  ;;  %v5318_v37 = vpack.c.bf16 %v2931_v9, %v2930_v11  ;;  %v4998_v11 = vor.u32 %v5281_v42, %v4997_v33  ;;  %v5030_v9 = vor.u32 %v5289_v62, %v5029_v58  ;;  %3495 = vmatpush.bf16.msrb.mxu0 %v4926_v10  ;;  %v5021_v33 = vld [vmem:[#allocation4 + $0xa8] sm:$0xf]  ;;  %v5287_v42 = vld [vmem:[#allocation4 + $0xb4] sm:$0xf0]  ;;  %v4977_v62 = vld [vmem:[#allocation4 + $0x4c] sm:$0xf] }
 0x48f   :  { %5319 = vst [vmem:[#allocation12 + $0x28] sm:$0xff] %v5318_v37   ;;  %v2969_v59 = vunpack.c.l.b16 %v2933_v56  ;;  %v4960_v56 = vor.u32 %v5272_v51, %v4959_v6  ;;  %v5280_v37 = vld [vmem:[#allocation4 + $0xd8] sm:$0xf0]  ;;  %3738 = vmatpush.bf16.msrb.mxu2 %v4998_v11  ;;  %3824 = vmatpush.bf16.msrb.mxu3 %v5030_v9 }
 0x491   :  { %v2970_v47 = vpack.c.b16 %v2969_v59, %v2968_v63  ;;  %v5025_v63 = vld [vmem:[#allocation4 + $0xc8] sm:$0xf]  ;;  %v5288_v59 = vld [vmem:[#allocation4 + $0xd4] sm:$0xf0]  ;;  %3615 = vmatpush.bf16.msrb.mxu1 %v4960_v56 }
 0x493   :  { %3028 = vmatmul.bf16.vlgmr.msra.gmra.mxu0 %v2970_v47  ;;  %3148 = vmatmul.bf16.vlgmr.msra.gmra.mxu1 %v2970_v47 }
 0x494   :  { %3272 = vmatmul.bf16.vlgmr.msra.gmra.mxu2 %v2970_v47  ;;  %3358 = vmatmul.bf16.vlgmr.msra.gmra.mxu3 %v2970_v47 }
 0x510   :  { %v3029_v60 = vpop.f32.mrf.mxu0  ;;  %v3149_v19 = vpop.f32.mrf.mxu1 }
 0x511   :  { %v3030_v21 = vadd.f32 %v3029_v60, %v2964_v57  ;;  %v3150_v28 = vadd.f32 %v3149_v19, %v3090_v5  ;;  %v4994_v57 = vor.u32 %v5280_v37, %v4993_v61  ;;  %v3215_v60 = vunpack.c.l.bf16 %v3211_v24  ;;  %v4917_v61 = vld [vmem:[#allocation4 + $0x84] sm:$0xf] }
 0x513   :  { %v4797_v13 = vmul.f32 -1.442695, %v3030_v21  ;;  %v4831_v31 = vmul.f32 -1.442695, %v3150_v28  ;;  %v5026_v21 = vor.u32 %v5288_v59, %v5025_v63  ;;  %3739 = vmatpush.bf16.msrb.mxu2 %v4994_v57  ;;  %v5022_v63 = vor.u32 %v5287_v42, %v5021_v33  ;;  %v5270_v59 = vld [vmem:[#allocation4 + $0x8c] sm:$0xf0] }
 0x515   :  { %5535 = vpow2.f32 %v4797_v13  ;;  %3825 = vmatpush.bf16.msrb.mxu3 %v5026_v21 }
 0x516   :  { %5537 = vpow2.f32 %v4831_v31 }
 0x517   :  { %v3359_v23 = vpop.f32.mrf.mxu3  ;;  %v3273_v38 = vpop.f32.mrf.mxu2 }
 0x518   :  { %v3360_v16 = vadd.f32 %v3359_v23, %v3300_v20  ;;  %v3031_v12 = vpop.f32.mrf.mxu0  ;;  %v3151_v26 = vpop.f32.mrf.mxu1  ;;  %v3274_v46 = vadd.f32 %v3273_v38, %v3214_v54  ;;  %v4921_v23 = vld [vmem:[#allocation4 + $0xa4] sm:$0xf] }
 0x519   :  { %v3032_v39 = vadd.f32 %v3031_v12, %v2965_v30  ;;  %v3152_v36 = vadd.f32 %v3151_v26, %v3091_v14  ;;  %3826 = vmatpush.bf16.msrb.mxu3 %v5022_v63  ;;  %v4939_v63 = vld [vmem:[#allocation4 + $0x20] sm:$0xf] }
 0x51a   :  { %v4897_v18 = vmul.f32 -1.442695, %v3360_v16  ;;  %v5263_v16 = vld [vmem:[#allocation4 + $0xb0] sm:$0xf0] }
 0x51b   :  { %v5536_v3 = vpop.eup %5535  ;;  %v4798_v55 = vmul.f32 -1.442695, %v3032_v39  ;;  %v4832_v4 = vmul.f32 -1.442695, %v3152_v36  ;;  %v4955_v36 = vld [vmem:[#allocation4 + $0xa0] sm:$0xf]  ;;  %v4922_v38 = vor.u32 %v5263_v16, %v4921_v23 }
 0x51c   :  { %v5538_v44 = vpop.eup %5537  ;;  %v6807_v27 = vadd.f32 1.0, %v5536_v3  ;;  %5539 = vpow2.f32 %v4897_v18  ;;  %v5271_v18 = vld [vmem:[#allocation4 + $0xac] sm:$0xf0]  ;;  %v4989_v3 = vld [vmem:[#allocation4 + $0xac] sm:$0xf] }
 0x51d   :  { %v6809_v25 = vadd.f32 1.0, %v5538_v44  ;;  %5541 = vpow2.f32 %v4798_v55  ;;  %v4990_v52 = vor.u32 %v5279_v2, %v4989_v3  ;;  %3496 = vmatpush.bf16.msrb.mxu0 %v4922_v38  ;;  %v4981_v23 = vld [vmem:[#allocation4 + $0x6c] sm:$0xf]  ;;  %v5277_v16 = vld [vmem:[#allocation4 + $0x78] sm:$0xf0] }
 0x51e   :  { %5543 = vrcp.f32 %v6807_v27  ;;  %v3053_v0 = vand.u32 2147483648, %v6807_v27  ;;  %v3051_v13 = vand.u32 2147483647, %v6807_v27  ;;  %vm3047_vm0 = vweird.f32 %v6807_v27  ;;  %v5260_v38 = vld [vmem:[#allocation4 + $0x50] sm:$0xf0] }
 0x51f   :  { %5545 = vrcp.f32 %v6809_v25  ;;  %v3361_v32 = vpop.f32.mrf.mxu3  ;;  %v3171_v31 = vand.u32 2147483647, %v6809_v25  ;;  %v3173_v14 = vand.u32 2147483648, %v6809_v25  ;;  %v3275_v39 = vpop.f32.mrf.mxu2  ;;  %vm3167_vm1 = vweird.f32 %v6809_v25  ;;  %3740 = vmatpush.bf16.msrb.mxu2 %v4990_v52  ;;  %v5268_v52 = vld [vmem:[#allocation4 + $0x4c] sm:$0xf0] }
 0x520   :  { %5547 = vpow2.f32 %v4832_v4  ;;  %v3362_v49 = vadd.f32 %v3361_v32, %v3301_v50  ;;  %v3054_v20 = vor.u32 1.1754944e-38, %v3053_v0  ;;  %vm6840_vm3 = vcmp.eq.f32.partialorder %v3051_v13, 8.507059e+37 }
 0x521   :  { %v3276_v4 = vadd.f32 %v3275_v39, %v3215_v60  ;;  %v4956_v50 = vor.u32 %v5271_v18, %v4955_v36  ;;  %vm6860_vm6 = vcmp.eq.f32.partialorder %v3171_v31, 8.507059e+37  ;;  %v3174_v53 = vor.u32 1.1754944e-38, %v3173_v14  ;;  %v5269_v14 = vld [vmem:[#allocation4 + $0x6c] sm:$0xf0] }
 0x522   :  { %v5540_v8 = vpop.eup %5539  ;;  %v4898_v19 = vmul.f32 -1.442695, %v3362_v49  ;;  %v4982_v32 = vor.u32 %v5277_v16, %v4981_v23  ;;  %v5258_v23 = vld [vmem:[#allocation4 + $0x10] sm:$0xf0]  ;;  %v4935_v16 = vld [vmem:[#allocation4] sm:$0xf] }
 0x523   :  { %v5542_v47 = vpop.eup %5541  ;;  %v6814_v15 = vadd.f32 1.0, %v5540_v8  ;;  %3616 = vmatpush.bf16.msrb.mxu1 %v4956_v50  ;;  %v5262_v8 = vld [vmem:[#allocation4 + $0x90] sm:$0xf0]  ;;  %v4943_v50 = vld [vmem:[#allocation4 + $0x40] sm:$0xf] }
 0x524   :  { %v6816_v5 = vpop.eup %5543  ;;  %v6818_v22 = vadd.f32 1.0, %v5542_v47  ;;  %v4985_v47 = vld [vmem:[#allocation4 + $0x8c] sm:$0xf]  ;;  %v4918_v36 = vor.u32 %v5262_v8, %v4917_v61  ;;  %v4944_v49 = vor.u32 %v5268_v52, %v4943_v50 }
 0x525   :  { %v6820_v28 = vpop.eup %5545  ;;  %v3043_v29 = vmul.f32 %v6816_v5, %v6807_v27  ;;  %5549 = vrcp.f32 %v6814_v15  ;;  %vm3048_vm2 = vweird.f32 %v6816_v5  ;;  %v5009_v27 = vld [vmem:[#allocation4 + $0x48] sm:$0xf] }
 0x526   :  { %v5548_v45 = vpop.eup %5547  ;;  %v3163_v30 = vmul.f32 %v6820_v28, %v6809_v25  ;;  %5551 = vrcp.f32 %v6818_v22  ;;  %v3068_v35 = vand.u32 2147483648, %v6818_v22  ;;  %v3066_v43 = vand.u32 2147483647, %v6818_v22  ;;  %vm6855_vm5 = vmor %vm3047_vm0, %vm3048_vm2  ;;  %v4951_v25 = vld [vmem:[#allocation4 + $0x80] sm:$0xf]  ;;  %3497 = vmatpush.bf16.msrb.mxu0 %v4918_v36 }
 0x527   :  { %v3044_v12 = vsub.f32 1.0, %v3043_v29  ;;  %5553 = vtanh.f32 %v3274_v46  ;;  %v6832_v26 = vadd.f32 1.0, %v5548_v45  ;;  %vm3168_vm4 = vweird.f32 %v6820_v28  ;;  %v5278_v46 = vld [vmem:[#allocation4 + $0x98] sm:$0xf0]  ;;  %v5286_v29 = vld [vmem:[#allocation4 + $0x94] sm:$0xf0] }
 0x528   :  { %v3164_v34 = vsub.f32 1.0, %v3163_v30  ;;  %5555 = vpow2.f32 %v4898_v19  ;;  %v6864_v24 = vor.u32 1.1754944e-38, %v3068_v35  ;;  %vm6873_vm7 = vmor %vm3167_vm1, %vm3168_vm4  ;;  %vm6879_vm8 = vcmp.eq.f32.partialorder %v3066_v43, 8.507059e+37  ;;  %v4913_v45 = vld [vmem:[#allocation4 + $0x64] sm:$0xf] }
 0x529   :  { %v3045_v55 = vmul.f32 %v6816_v5, %v3044_v12  ;;  %5557 = vrcp.f32 %v6832_v26  ;;  %v3186_v11 = vand.u32 2147483647, %v6832_v26  ;;  %v3188_v51 = vand.u32 2147483648, %v6832_v26  ;;  %v4947_v30 = vld [vmem:[#allocation4 + $0x60] sm:$0xf] }
 0x52a   :  { %v3165_v44 = vmul.f32 %v6820_v28, %v3164_v34  ;;  %5559 = vtanh.f32 %v3276_v4  ;;  %vm3062_vm10 = vweird.f32 %v6818_v22  ;;  %v4952_v18 = vor.u32 %v5270_v59, %v4951_v25  ;;  %v5013_v34 = vld [vmem:[#allocation4 + $0x68] sm:$0xf]  ;;  %v5285_v35 = vld [vmem:[#allocation4 + $0x74] sm:$0xf0]  ;;  %v5266_v36 = vld [vmem:[#allocation4 + $0xc] sm:$0xf0] }
 0x52b   :  { %v6846_v48 = vpop.eup %5549  ;;  %v3046_v1 = vadd.f32 %v6816_v5, %v3045_v55  ;;  %v4986_v55 = vor.u32 %v5278_v46, %v4985_v47  ;;  %vm6922_vm13 = vcmp.eq.f32.partialorder %v3186_v11, 8.507059e+37  ;;  %vm3182_vm15 = vweird.f32 %v6832_v26  ;;  %v5267_v47 = vld [vmem:[#allocation4 + $0x2c] sm:$0xf0]  ;;  %v4973_v46 = vld [vmem:[#allocation4 + $0x2c] sm:$0xf] }
 0x52c   :  { %v6849_v54 = vpop.eup %5551  ;;  %v3166_v58 = vadd.f32 %v6820_v28, %v3165_v44  ;;  %v6892_v37 = vmul.f32 %v6846_v48, %v6814_v15  ;;  %3617 = vmatpush.bf16.msrb.mxu1 %v4952_v18  ;;  %vm3378_vm14 = vweird.f32 %v6846_v48  ;;  %v3189_v8 = vor.u32 1.1754944e-38, %v3188_v51  ;;  %v4969_v18 = vld [vmem:[#allocation4 + $0xc] sm:$0xf] }
 0x52d   :  { %v5554_v41 = vpop.eup %5553  ;;  %v3050_v6 = vsel %vm6855_vm5, %v6816_v5, %v3046_v1  ;;  %v3058_v0 = vmul.f32 %v6849_v54, %v6818_v22  ;;  %vm3063_vm9 = vweird.f32 %v6849_v54  ;;  %v4948_v1 = vor.u32 %v5269_v14, %v4947_v30  ;;  %3741 = vmatpush.bf16.msrb.mxu2 %v4986_v55  ;;  %v4901_v14 = vld [vmem:[#allocation4 + $0x4] sm:$0xf]  ;;  %v5001_v55 = vld [vmem:[#allocation4 + $0x8] sm:$0xf] }
 0x52e   :  { %v5556_v9 = vpop.eup %5555  ;;  %v3055_v10 = vsel %vm6840_vm3, %v3054_v20, %v3050_v6  ;;  %v3170_v56 = vsel %vm6873_vm7, %v6820_v28, %v3166_v58  ;;  %v5017_v28 = vld [vmem:[#allocation4 + $0x88] sm:$0xf]  ;;  %v5261_v20 = vld [vmem:[#allocation4 + $0x70] sm:$0xf0]  ;;  %v3374_v12 = vsub.f32 1.0, %v6892_v37  ;;  %vm6912_vm11 = vmor %vm3062_vm10, %vm3063_vm9  ;;  %v5014_v58 = vor.u32 %v5285_v35, %v5013_v34 }
 0x52f   :  { %v6894_v57 = vpop.eup %5557  ;;  %v3072_v5 = vmul.f32 %v3055_v10, %v6738_v40  ;;  %v3175_v60 = vsel %vm6860_vm6, %v3174_v53, %v3170_v56  ;;  %v3059_v19 = vsub.f32 1.0, %v3058_v0  ;;  %v6899_v21 = vadd.f32 1.0, %v5556_v9  ;;  %v5284_v0 = vld [vmem:[#allocation4 + $0x54] sm:$0xf0]  ;;  %v4905_v56 = vld [vmem:[#allocation4 + $0x24] sm:$0xf] }
 0x530   :  { %v3280_v13 = vmul.f32 %v5554_v41, %v3175_v60  ;;  %v3178_v31 = vmul.f32 %v6894_v57, %v6832_v26  ;;  %v5018_v43 = vor.u32 %v5286_v29, %v5017_v28  ;;  %vm3183_vm12 = vweird.f32 %v6894_v57  ;;  %v5560_v53 = vpop.eup %5559  ;;  %3618 = vmatpush.bf16.msrb.mxu1 %v4948_v1  ;;  %v5259_v37 = vld [vmem:[#allocation4 + $0x30] sm:$0xf0]  ;;  %v5283_v28 = vld [vmem:[#allocation4 + $0x34] sm:$0xf0]  ;;  %v5274_v34 = vld [vmem:[#allocation4 + $0x18] sm:$0xf0] }
 0x531   :  { %v3060_v40 = vmul.f32 %v6849_v54, %v3059_v19  ;;  %5561 = vrcp.f32 %v6899_v21  ;;  %v4914_v4 = vor.u32 %v5261_v20, %v4913_v45  ;;  %v3375_v61 = vmul.f32 %v6846_v48, %v3374_v12  ;;  %vm3184_vm0 = vmor %vm3182_vm15, %vm3183_vm12  ;;  %3742 = vmatpush.bf16.msrb.mxu2 %v4982_v32  ;;  %v5005_v19 = vld [vmem:[#allocation4 + $0x28] sm:$0xf] }
 0x532   :  { %v3179_v39 = vsub.f32 1.0, %v3178_v31  ;;  %v6908_v3 = vadd.f32 %v3280_v13, %v3072_v5  ;;  %3827 = vmatpush.bf16.msrb.mxu3 %v5018_v43  ;;  %v4910_v25 = vor.u32 %v5260_v38, %v4909_v7  ;;  %v5010_v59 = vor.u32 %v5284_v0, %v5009_v27  ;;  %v5282_v43 = vld [vmem:[#allocation4 + $0x14] sm:$0xf0] }
 0x533   :  { %v3061_v22 = vadd.f32 %v6849_v54, %v3060_v40  ;;  %3498 = vmatpush.bf16.msrb.mxu0 %v4914_v4  ;;  %vm3377_vm1 = vweird.f32 %v6814_v15  ;;  %v4906_v13 = vor.u32 %v5259_v37, %v4905_v56  ;;  %v3376_v31 = vadd.f32 %v6846_v48, %v3375_v61 }
 0x534   :  { %v3180_v44 = vmul.f32 %v6894_v57, %v3179_v39  ;;  %5563 = vtanh.f32 %v6908_v3  ;;  %vm6950_vm2 = vmor %vm3377_vm1, %vm3378_vm14  ;;  %v3381_v45 = vand.u32 2147483647, %v6814_v15  ;;  %3619 = vmatpush.bf16.msrb.mxu1 %v4944_v49  ;;  %v4940_v40 = vor.u32 %v5267_v47, %v4939_v63  ;;  %v3414_v49 = vld [vmem:[#allocation6 + $0xf0] sm:$0xff] }
 0x535   :  { %v3065_v33 = vsel %vm6912_vm11, %v6849_v54, %v3061_v22  ;;  %v5276_v54 = vld [vmem:[#allocation4 + $0x58] sm:$0xf0]  ;;  %v5006_v39 = vor.u32 %v5283_v28, %v5005_v19  ;;  %v3398_v22 = vand.u32 2147483648, %v6899_v21  ;;  %vm3392_vm4 = vweird.f32 %v6899_v21 }
 0x536   :  { %v3070_v41 = vsel %vm6879_vm8, %v6864_v24, %v3065_v33  ;;  %v3181_v6 = vadd.f32 %v6894_v57, %v3180_v44  ;;  %3828 = vmatpush.bf16.msrb.mxu3 %v5014_v58  ;;  %v4978_v51 = vor.u32 %v5276_v54, %v4977_v62  ;;  %v4902_v44 = vor.u32 %v5258_v23, %v4901_v14 }
 0x537   :  { %v6932_v11 = vpop.eup %5561  ;;  %v3073_v24 = vmul.f32 %v3070_v41, %v6786_v17  ;;  %v5275_v17 = vld [vmem:[#allocation4 + $0x38] sm:$0xf0]  ;;  %3499 = vmatpush.bf16.msrb.mxu0 %v4910_v25  ;;  %vm3382_vm5 = vcmp.eq.f32.partialorder %v3381_v45, 8.507059e+37  ;;  %v3396_v4 = vand.u32 2147483647, %v6899_v21  ;;  %v4936_v1 = vor.u32 %v5266_v36, %v4935_v16 }
 0x538   :  { %v3185_v9 = vsel %vm3184_vm0, %v6894_v57, %v3181_v6  ;;  %v3388_v10 = vmul.f32 %v6932_v11, %v6899_v21  ;;  %v3383_v57 = vand.u32 2147483648, %v6814_v15  ;;  %vm3393_vm3 = vweird.f32 %v6932_v11  ;;  %3743 = vmatpush.bf16.msrb.mxu2 %v4978_v51  ;;  %3620 = vmatpush.bf16.msrb.mxu1 %v4940_v40  ;;  %v3413_v51 = vld [vmem:[#allocation6 + $0xe8] sm:$0xff] }
 0x539   :  { %v3190_v26 = vsel %vm6922_vm13, %v3189_v8, %v3185_v9  ;;  %v4974_v12 = vor.u32 %v5275_v17, %v4973_v46  ;;  %v3380_v15 = vsel %vm6950_vm2, %v6846_v48, %v3376_v31  ;;  %vm6970_vm6 = vmor %vm3392_vm4, %vm3393_vm3  ;;  %v4970_v38 = vor.u32 %v5274_v34, %v4969_v18 }
 0x53a   :  { %v3281_v5 = vmul.f32 %v5560_v53, %v3190_v26  ;;  %v3389_v60 = vsub.f32 1.0, %v3388_v10  ;;  %3829 = vmatpush.bf16.msrb.mxu3 %v5010_v59  ;;  %v5564_v35 = vpop.eup %5563  ;;  %v3384_v2 = vor.u32 1.1754944e-38, %v3383_v57  ;;  %v5002_v52 = vor.u32 %v5282_v43, %v5001_v55 }
 0x53b   :  { %3500 = vmatpush.bf16.msrb.mxu0 %v4906_v13  ;;  %v3399_v21 = vor.u32 1.1754944e-38, %v3398_v22  ;;  %vm3397_vm7 = vcmp.eq.f32.partialorder %v3396_v4, 8.507059e+37  ;;  %v3435_v37 = vrot.slane %v3414_v49, 4  ;;  %v3774_v59 = vunpack.c.l.bf16 %v3413_v51 }
 0x53c   :  { %v6956_v20 = vadd.f32 %v3281_v5, %v3073_v24  ;;  %v3390_v30 = vmul.f32 %v6932_v11, %v3389_v60  ;;  %v3385_v50 = vsel %vm3382_vm5, %v3384_v2, %v3380_v15  ;;  %3744 = vmatpush.bf16.msrb.mxu2 %v4974_v12  ;;  %3621 = vmatpush.bf16.msrb.mxu1 %v4936_v1  ;;  %v3565_v46 = vunpack.c.l.bf16 %v3414_v49  ;;  %v3415_v12 = vld [vmem:[#allocation6 + $0xf8] sm:$0xff] }
 0x53d   :  { %v3404_v42 = vmul.f32 %v5564_v35, %v3385_v50  ;;  %v3439_v47 = vunpack.c.l.bf16 %v3435_v37  ;;  %v3684_v57 = vrot.slane %v3413_v51, 4  ;;  %v3775_v36 = vunpack.c.l.bf16 %v3415_v12 }
 0x53e   :  { %5565 = vtanh.f32 %v6956_v20  ;;  %v3391_v7 = vadd.f32 %v6932_v11, %v3390_v30  ;;  %3830 = vmatpush.bf16.msrb.mxu3 %v5006_v39  ;;  %v3685_v15 = vrot.slane %v3415_v12, 4 }
 0x53f   :  { %3501 = vmatpush.bf16.msrb.mxu0 %v4902_v44  ;;  %v3406_v53 = vpack.c.bf16 %v3404_v42, %v3404_v42  ;;  %v3688_v14 = vunpack.c.l.bf16 %v3684_v57 }
 0x540   :  { %v3395_v33 = vsel %vm6970_vm6, %v6932_v11, %v3391_v7  ;;  %3745 = vmatpush.bf16.msrb.mxu2 %v4970_v38  ;;  %v3412_v11 = vld [vmem:[#allocation6 + $0xe0] sm:$0xff]  ;;  %v3689_v1 = vunpack.c.l.bf16 %v3685_v15 }
 0x541   :  { %v3400_v58 = vsel %vm3397_vm7, %v3399_v21, %v3395_v33  ;;  %v3442_v54 = vunpack.c.l.b16 %v3406_v53  ;;  %v3434_v61 = vrot.slane %v3412_v11, 4  ;;  %v3564_v25 = vunpack.c.l.bf16 %v3412_v11 }
 0x542   :  { %3831 = vmatpush.bf16.msrb.mxu3 %v5002_v52 }
 0x543   :  { %v3438_v8 = vunpack.c.l.bf16 %v3434_v61 }
 0x544   :  { %v5566_v32 = vpop.eup %5565 }
 0x545   :  { %v3405_v62 = vmul.f32 %v5566_v32, %v3400_v58 }
 0x547   :  { %v3407_v41 = vpack.c.bf16 %v3405_v62, %v3405_v62  ;;  %v5323_v6 = vpack.c.bf16 %v3405_v62, %v3404_v42 }
 0x549   :  { %5324 = vst [vmem:[#allocation12 + $0x30] sm:$0xff] %v5323_v6   ;;  %v3443_v27 = vunpack.c.l.b16 %v3407_v41 }
 0x54b   :  { %v3444_v0 = vpack.c.b16 %v3443_v27, %v3442_v54 }
 0x54d   :  { %3502 = vmatmul.bf16.vlgmr.msrb.gmra.mxu0 %v3444_v0  ;;  %3622 = vmatmul.bf16.vlgmr.msrb.gmra.mxu1 %v3444_v0 }
 0x54e   :  { %3746 = vmatmul.bf16.vlgmr.msrb.gmra.mxu2 %v3444_v0  ;;  %3832 = vmatmul.bf16.vlgmr.msrb.gmra.mxu3 %v3444_v0 }
 0x5ca   :  { %v3503_v24 = vpop.f32.mrf.mxu0  ;;  %v3623_v9 = vpop.f32.mrf.mxu1 }
 0x5cb   :  { %v3504_v10 = vadd.f32 %v3503_v24, %v3438_v8  ;;  %v3624_v56 = vadd.f32 %v3623_v9, %v3564_v25 }
 0x5cd   :  { %v4931_v63 = vmul.f32 -1.442695, %v3504_v10  ;;  %v4965_v26 = vmul.f32 -1.442695, %v3624_v56 }
 0x5cf   :  { %5567 = vpow2.f32 %v4931_v63 }
 0x5d0   :  { %5569 = vpow2.f32 %v4965_v26 }
 0x5d1   :  { %v3833_v17 = vpop.f32.mrf.mxu3  ;;  %v3747_v23 = vpop.f32.mrf.mxu2 }
 0x5d2   :  { %v3834_v5 = vadd.f32 %v3833_v17, %v3774_v59  ;;  %v3505_v60 = vpop.f32.mrf.mxu0  ;;  %v3625_v19 = vpop.f32.mrf.mxu1  ;;  %v3748_v34 = vadd.f32 %v3747_v23, %v3688_v14 }
 0x5d3   :  { %v3506_v28 = vadd.f32 %v3505_v60, %v3439_v47  ;;  %v3626_v29 = vadd.f32 %v3625_v19, %v3565_v46 }
 0x5d4   :  { %v5031_v13 = vmul.f32 -1.442695, %v3834_v5 }
 0x5d5   :  { %v5568_v31 = vpop.eup %5567  ;;  %v4932_v45 = vmul.f32 -1.442695, %v3506_v28  ;;  %v4966_v16 = vmul.f32 -1.442695, %v3626_v29 }
 0x5d6   :  { %v5570_v30 = vpop.eup %5569  ;;  %v3514_v40 = vadd.f32 1.0, %v5568_v31  ;;  %5571 = vpow2.f32 %v5031_v13 }
 0x5d7   :  { %v3634_v39 = vadd.f32 1.0, %v5570_v30  ;;  %5573 = vpow2.f32 %v4932_v45 }
 0x5d8   :  { %5575 = vrcp.f32 %v3514_v40  ;;  %v3527_v42 = vand.u32 2147483648, %v3514_v40  ;;  %v3525_v21 = vand.u32 2147483647, %v3514_v40  ;;  %vm3521_vm10 = vweird.f32 %v3514_v40 }
 0x5d9   :  { %5577 = vrcp.f32 %v3634_v39  ;;  %v3835_v18 = vpop.f32.mrf.mxu3  ;;  %v3749_v52 = vpop.f32.mrf.mxu2  ;;  %v3645_v62 = vand.u32 2147483647, %v3634_v39  ;;  %v3647_v53 = vand.u32 2147483648, %v3634_v39  ;;  %vm3641_vm11 = vweird.f32 %v3634_v39 }
 0x5da   :  { %5579 = vpow2.f32 %v4966_v16  ;;  %v3836_v35 = vadd.f32 %v3835_v18, %v3775_v36  ;;  %v3750_v6 = vadd.f32 %v3749_v52, %v3689_v1  ;;  %v3528_v11 = vor.u32 1.1754944e-38, %v3527_v42 }
 0x5db   :  { %5581 = vtanh.f32 %v3748_v34  ;;  %vm3526_vm13 = vcmp.eq.f32.partialorder %v3525_v21, 8.507059e+37  ;;  %vm3646_vm14 = vcmp.eq.f32.partialorder %v3645_v62, 8.507059e+37  ;;  %v3648_v9 = vor.u32 1.1754944e-38, %v3647_v53 }
 0x5dc   :  { %v5572_v2 = vpop.eup %5571  ;;  %v5032_v44 = vmul.f32 -1.442695, %v3836_v35 }
 0x5dd   :  { %v5574_v22 = vpop.eup %5573  ;;  %v6977_v55 = vadd.f32 1.0, %v5572_v2 }
 0x5de   :  { %v5576_v43 = vpop.eup %5575  ;;  %v6979_v7 = vadd.f32 1.0, %v5574_v22 }
 0x5df   :  { %v5578_v4 = vpop.eup %5577  ;;  %v3517_v48 = vmul.f32 %v5576_v43, %v3514_v40  ;;  %5583 = vrcp.f32 %v6977_v55  ;;  %vm3522_vm8 = vweird.f32 %v5576_v43  ;;  %v3857_v45 = vand.u32 2147483648, %v6977_v55 }
 0x5e0   :  { %v5580_v38 = vpop.eup %5579  ;;  %v3637_v50 = vmul.f32 %v5578_v4, %v3634_v39  ;;  %5585 = vrcp.f32 %v6979_v7  ;;  %vm3642_vm9 = vweird.f32 %v5578_v4  ;;  %vm3523_vm12 = vmor %vm3521_vm10, %vm3522_vm8  ;;  %v3542_v51 = vand.u32 2147483648, %v6979_v7 }
 0x5e1   :  { %v3518_v33 = vsub.f32 1.0, %v3517_v48  ;;  %v6983_v32 = vadd.f32 1.0, %v5580_v38  ;;  %5587 = vpow2.f32 %v5032_v44  ;;  %v5582_v54 = vpop.eup %5581  ;;  %vm3643_vm15 = vmor %vm3641_vm11, %vm3642_vm9  ;;  %vm3536_vm0 = vweird.f32 %v6979_v7 }
 0x5e2   :  { %v3638_v58 = vsub.f32 1.0, %v3637_v50  ;;  %v3540_v29 = vand.u32 2147483647, %v6979_v7  ;;  %v3543_v31 = vor.u32 1.1754944e-38, %v3542_v51  ;;  %vm3851_vm6 = vweird.f32 %v6977_v55 }
 0x5e3   :  { %v3519_v41 = vmul.f32 %v5576_v43, %v3518_v33  ;;  %5589 = vrcp.f32 %v6983_v32  ;;  %v3662_v14 = vand.u32 2147483648, %v6983_v32  ;;  %v3660_v12 = vand.u32 2147483647, %v6983_v32 }
 0x5e4   :  { %v3639_v27 = vmul.f32 %v5578_v4, %v3638_v58  ;;  %5591 = vtanh.f32 %v3750_v6  ;;  %vm3541_vm5 = vcmp.eq.f32.partialorder %v3540_v29, 8.507059e+37  ;;  %v3855_v36 = vand.u32 2147483647, %v6977_v55 }
 0x5e5   :  { %v6986_v0 = vpop.eup %5583  ;;  %v3520_v61 = vadd.f32 %v5576_v43, %v3519_v41  ;;  %vm3656_vm7 = vweird.f32 %v6983_v32  ;;  %v3663_v2 = vor.u32 1.1754944e-38, %v3662_v14  ;;  %vm3661_vm10 = vcmp.eq.f32.partialorder %v3660_v12, 8.507059e+37 }
 0x5e6   :  { %v5586_v8 = vpop.eup %5585  ;;  %v3640_v25 = vadd.f32 %v5578_v4, %v3639_v27  ;;  %v3847_v49 = vmul.f32 %v6986_v0, %v6977_v55  ;;  %vm3852_vm2 = vweird.f32 %v6986_v0  ;;  %vm3856_vm11 = vcmp.eq.f32.partialorder %v3855_v36, 8.507059e+37 }
 0x5e7   :  { %v3524_v24 = vsel %vm3523_vm12, %v5576_v43, %v3520_v61  ;;  %v3532_v10 = vmul.f32 %v5586_v8, %v6979_v7  ;;  %v5588_v56 = vpop.eup %5587  ;;  %vm3537_vm1 = vweird.f32 %v5586_v8  ;;  %vm7010_vm8 = vmor %vm3851_vm6, %vm3852_vm2  ;;  %v3858_v43 = vor.u32 1.1754944e-38, %v3857_v45 }
 0x5e8   :  { %v3529_v37 = vsel %vm3526_vm13, %v3528_v11, %v3524_v24  ;;  %v3644_v63 = vsel %vm3643_vm15, %v5578_v4, %v3640_v25  ;;  %v3848_v26 = vsub.f32 1.0, %v3847_v49  ;;  %v6993_v57 = vadd.f32 1.0, %v5588_v56  ;;  %vm3538_vm3 = vmor %vm3536_vm0, %vm3537_vm1 }
 0x5e9   :  { %v5590_v59 = vpop.eup %5589  ;;  %v3546_v47 = vmul.f32 %v3529_v37, %v6908_v3  ;;  %v3649_v46 = vsel %vm3646_vm14, %v3648_v9, %v3644_v63  ;;  %v3533_v17 = vsub.f32 1.0, %v3532_v10 }
 0x5ea   :  { %v3754_v5 = vmul.f32 %v5582_v54, %v3649_v46  ;;  %v3652_v60 = vmul.f32 %v5590_v59, %v6983_v32  ;;  %v3849_v19 = vmul.f32 %v6986_v0, %v3848_v26  ;;  %5593 = vrcp.f32 %v6993_v57  ;;  %v5592_v30 = vpop.eup %5591 }
 0x5eb   :  { %v3534_v28 = vmul.f32 %v5586_v8, %v3533_v17  ;;  %vm3657_vm4 = vweird.f32 %v5590_v59  ;;  %vm3866_vm13 = vweird.f32 %v6993_v57  ;;  %v3870_v32 = vand.u32 2147483647, %v6993_v57 }
 0x5ec   :  { %v3756_v13 = vadd.f32 %v3754_v5, %v3546_v47  ;;  %v3653_v3 = vsub.f32 1.0, %v3652_v60  ;;  %v3850_v23 = vadd.f32 %v6986_v0, %v3849_v19  ;;  %vm3658_vm9 = vmor %vm3656_vm7, %vm3657_vm4 }
 0x5ed   :  { %v3535_v40 = vadd.f32 %v5586_v8, %v3534_v28  ;;  %vm3871_vm15 = vcmp.eq.f32.partialorder %v3870_v32, 8.507059e+37 }
 0x5ee   :  { %5595 = vtanh.f32 %v3756_v13  ;;  %3898 = vst [vmem:[#allocation15] sm:$0xff] %v3756_v13  ;;  %v3654_v16 = vmul.f32 %v5590_v59, %v3653_v3  ;;  %v3854_v22 = vsel %vm7010_vm8, %v6986_v0, %v3850_v23 }
 0x5ef   :  { %v3539_v39 = vsel %vm3538_vm3, %v5586_v8, %v3535_v40  ;;  %v3859_v50 = vsel %vm3856_vm11, %v3858_v43, %v3854_v22 }
 0x5f0   :  { %v3544_v18 = vsel %vm3541_vm5, %v3543_v31, %v3539_v39  ;;  %v3655_v34 = vadd.f32 %v5590_v59, %v3654_v16  ;;  %v5594_v35 = vpop.eup %5593 }
 0x5f1   :  { %v3547_v7 = vmul.f32 %v3544_v18, %v6956_v20  ;;  %v3862_v55 = vmul.f32 %v5594_v35, %v6993_v57  ;;  %vm3867_vm12 = vweird.f32 %v5594_v35  ;;  %v3872_v20 = vand.u32 2147483648, %v6993_v57 }
 0x5f2   :  { %v3659_v44 = vsel %vm3658_vm9, %v5590_v59, %v3655_v34  ;;  %vm3868_vm14 = vmor %vm3866_vm13, %vm3867_vm12 }
 0x5f3   :  { %v3664_v4 = vsel %vm3661_vm10, %v3663_v2, %v3659_v44  ;;  %v3863_v38 = vsub.f32 1.0, %v3862_v55  ;;  %v3873_v62 = vor.u32 1.1754944e-38, %v3872_v20 }
 0x5f4   :  { %v5596_v48 = vpop.eup %5595  ;;  %v3755_v1 = vmul.f32 %v5592_v30, %v3664_v4 }
 0x5f5   :  { %v3878_v52 = vmul.f32 %v5596_v48, %v3859_v50  ;;  %v3864_v42 = vmul.f32 %v5594_v35, %v3863_v38 }
 0x5f6   :  { %v3757_v33 = vadd.f32 %v3755_v1, %v3547_v7 }
 0x5f7   :  { %3894 = vst [vmem:[#allocation13] sm:$0xff] %v3878_v52  ;;  %v3865_v21 = vadd.f32 %v5594_v35, %v3864_v42 }
 0x5f8   :  { %5597 = vtanh.f32 %v3757_v33  ;;  %3899 = vst [vmem:[#allocation15 + $0x8] sm:$0xff] %v3757_v33 }
 0x5f9   :  { %v3869_v58 = vsel %vm3868_vm14, %v5594_v35, %v3865_v21 }
 0x5fa   :  { %v3874_v41 = vsel %vm3871_vm15, %v3873_v62, %v3869_v58 }
 0x5fe   :  { %v5598_v53 = vpop.eup %5597 }
 0x5ff   :  { %v3879_v6 = vmul.f32 %v5598_v53, %v3874_v41 }
 0x601   :  { %v5328_v54 = vpack.c.bf16 %v3879_v6, %v3878_v52  ;;  %3895 = vst [vmem:[#allocation13 + $0x8] sm:$0xff] %v3879_v6 }
 0x602   :  { %3925 = dma.vmem_to_hbm [thread:$0]  %s3918_s3, 256, %s3920_s21, [#allocation14], %s5778_s29, %s5778_s29, %s5779_s30  }
 0x603   :  { %5329 = vst [vmem:[#allocation12 + $0x38] sm:$0xff] %v5328_v54   ;;  %3938 = dma.vmem_to_hbm [thread:$0]  %s3931_s28, 256, %s3933_s2, [#allocation14], %s5778_s29, %s5778_s29, %s5779_s30  }
 0x604   :  { %3912 = dma.vmem_to_hbm [thread:$0]  %s3905_s23, 1024, %s3907_s26, [#allocation8], %s5788_s4, %s5788_s4, %s5789_s5  }
 0x605   :  { %5773 = dma.done.wait [#allocation8], 1024  }
 0x606   :  { %5774 = vsyncadd [#allocation8], 4294966272 }
 0x607   :  { %5775 = dma.done.wait [#allocation14], 512  }
 0x608   :  { %5776 = vsyncadd [#allocation14], 4294966784 }
 0x609   :  { %3951 = vsyncpa [#allocation7], 1 }
 0x60a   :  { %3952 = vsyncpa [#allocation10], 1 }
 0x60b   :  { %3953 = vsyncpa [#allocation8], 1 }
 0x60c   :  { %3954 = vsyncpa [#allocation14], 1 }
 0x60d   :  { %3955 = vsyncmov [#allocation5] }
 0x610   :  { %s3956_s6 = vpop.sfrf %3955 }
 0x611   :  { %p5033_p0 = scmp.ne.s32.totalorder %s3956_s6, 0 }
 0x613   :  { %3960 = shalt.err (%p5033_p0)  }

</bundles_post_ra>
